<compile_context>
chip_gen: v7x
topology: tpu7x:2x2x1
jax: 0.10.0
libtpu: 0.0.40
codegen_flags: <defaults>
</compile_context>

<pallas_src>
import functools
import math

import jax
import jax.numpy as jnp
from jax import lax
from jax.experimental import pallas as pl
from jax.experimental.pallas import tpu as pltpu


def transformer_block_kernel(
    x_ref,        # (bb, N, C) input tokens for this grid step
    gamma_ref,    # (1, C) layernorm weight (f32)
    beta_ref,     # (1, C) layernorm bias (f32)
    wqkv_ref,     # (C, 3C) fused Q|K|V weight, compute_dtype, y = x @ W
    bqkv_ref,     # (1, 3C) fused Q|K|V bias (f32)
    wo_ref,       # (C, C) output projection, compute_dtype (transposed)
    bo_ref,       # (1, C) output projection bias (f32)
    o_ref,        # (bb, N, C) output
    *,
    num_heads: int,
    compute_dtype,
):
    bb, N, C = x_ref.shape
    d_k = C // num_heads
    T = bb * N

    # ---- LayerNorm over last dim (PyTorch defaults: eps=1e-5, biased var), f32 ----
    x = x_ref[...].reshape(T, C).astype(jnp.float32)
    mu = jnp.mean(x, axis=-1, keepdims=True)
    xc = x - mu
    var = jnp.mean(xc * xc, axis=-1, keepdims=True)
    xn = xc * lax.rsqrt(var + 1e-5)
    xn = xn * gamma_ref[...] + beta_ref[...]            # broadcast (1, C)
    del x, xc  # end live range of the f32 input copy; x_ref re-read at residual

    # ---- Fused QKV projection: ONE MXU matmul (compute_dtype in, f32 accumulate) ----
    qkv = jnp.dot(xn.astype(compute_dtype), wqkv_ref[...],
                  preferred_element_type=jnp.float32) + bqkv_ref[...]
    qkv = qkv.reshape(bb, N, 3 * C)

    # Cast the qkv slab to the MXU input dtype ONCE (not per head / per slice);
    # fold the 1/sqrt(d_k) scale into q here (one f32 mul on (T, C) instead of
    # an (N, N) f32 mul per head).
    scale = 1.0 / math.sqrt(d_k)
    q_all = (qkv[:, :, :C] * scale).astype(compute_dtype)
    k_all = qkv[:, :, C:2 * C].astype(compute_dtype)
    v_all = qkv[:, :, 2 * C:].astype(compute_dtype)

    # ---- Per-head attention with the output projection fused in ----
    # out_acc accumulates attn_h @ wo[h*d_k:(h+1)*d_k, :] in f32, so there is no
    # (bb, N, C) scratch, no jnp.concatenate, and no per-head masked sub-128-lane
    # stores. Batched dot_generals contract on the last dim of q/k (no explicit
    # k.T / XLU transpose).
    # TODO(synk): attention dropout (p=0.1) treated as identity (eval-mode semantics).
    # TODO(synk): at realistic head counts / N, move heads and flash-style
    # q/kv tiles onto grid axes (heads "arbitrary", cache xn in VMEM under
    # pl.when(h==0), slice wqkv per head via BlockSpec) instead of this
    # unrolled Python loop + full (N, N) score materialization.
    dn_qk = (((2,), (2,)), ((0,), (0,)))   # contract d_k, batch over bb
    dn_pv = (((2,), (1,)), ((0,), (0,)))   # contract key axis, batch over bb
    dn_ow = (((2,), (0,)), ((), ()))       # contract d_k against wo rows
    out_acc = jnp.zeros((bb, N, C), jnp.float32)
    for h in range(num_heads):
        lo = h * d_k
        qh = q_all[:, :, lo:lo + d_k]                                   # (bb, N, d_k)
        kh = k_all[:, :, lo:lo + d_k]
        vh = v_all[:, :, lo:lo + d_k]
        s = lax.dot_general(qh, kh, dn_qk,
                            preferred_element_type=jnp.float32)         # (bb, N, N)
        m = jnp.max(s, axis=-1, keepdims=True)
        p = jnp.exp(s - m)
        # approx=True -> EUP vrcp slot (otherwise idle) instead of exact divide.
        p = p * pl.reciprocal(jnp.sum(p, axis=-1, keepdims=True), approx=True)
        attn_h = lax.dot_general(p.astype(compute_dtype), vh, dn_pv,
                                 preferred_element_type=jnp.float32)     # (bb, N, d_k)
        out_acc = out_acc + lax.dot_general(
            attn_h.astype(compute_dtype), wo_ref[lo:lo + d_k, :], dn_ow,
            preferred_element_type=jnp.float32)                         # (bb, N, C)

    # ---- Output bias + residual (re-read x_ref; f32 copy was not kept live) ----
    o_ref[...] = (out_acc + bo_ref[...] + x_ref[...].astype(jnp.float32)
                  ).astype(o_ref.dtype)


def _num_tensorcores() -> int:
    """2 for multi-TC chips (v7x), else 1 (v5e/v6e / unknown)."""
    try:
        kind = jax.devices()[0].device_kind.lower()
    except Exception:  # no device info -> safe default
        return 1
    return 2 if "v7" in kind else 1


def transformer_block(x_nchw, params, *, num_heads, batch_tiles=None,
                      compute_dtype=jnp.bfloat16):
    """x_nchw: (B, C, H, W). Returns (B, C, H, W).

    batch_tiles:
      number of grid steps along batch. None -> auto: 1 on single-TC chips
      (v5e/v6e: fold all batch elements into one token slab, fills the MXU row
      dim, no per-step overhead); 2 on v7x so each TensorCore takes a (B/2)*N
      slab via dimension_semantics=("parallel",).
    compute_dtype:
      dtype of the MXU matmul *inputs* (accumulation stays f32). Default
      bfloat16 (MXU-native on all generations); all VPU/EUP elementwise math
      stays f32 (v5e has no bf16 VPU/EUP). Pass jnp.float32 for bit-tight
      parity with the PyTorch reference.
    """
    B, C, H, W = x_nchw.shape
    N = H * W
    assert C % num_heads == 0

    if batch_tiles is None:
        n_tc = _num_tensorcores()
        batch_tiles = n_tc if (B % n_tc == 0) else 1
    assert B % batch_tiles == 0
    bb = B // batch_tiles

    # NCHW -> tokens [B, N, C].
    # NOTE(lane density): with C=32 the kernel's last dim fills only 32/128
    # lanes, so loads/stores are masked partial ops. Real workloads should use
    # C (and ideally d_k) as multiples of 128 for lane-dense stores; at these
    # toy shapes the relayout is not worth it.
    x_tok = jnp.transpose(x_nchw.reshape(B, C, N), (0, 2, 1))

    gamma = params["gamma"].reshape(1, C).astype(jnp.float32)
    beta = params["beta"].reshape(1, C).astype(jnp.float32)
    # PyTorch Linear: y = x @ W.T + b. Pre-transpose and fuse Q,K,V into one
    # (C, 3C) weight / (1, 3C) bias so the kernel does one projection matmul.
    wqkv = jnp.concatenate(
        [params["wq"].T, params["wk"].T, params["wv"].T], axis=1
    ).astype(compute_dtype)
    bqkv = jnp.concatenate(
        [params["bq"], params["bk"], params["bv"]]
    ).reshape(1, 3 * C).astype(jnp.float32)
    wo = params["wo"].T.astype(compute_dtype)
    bo = params["bo"].reshape(1, C).astype(jnp.float32)

    kernel = functools.partial(
        transformer_block_kernel, num_heads=num_heads, compute_dtype=compute_dtype)

    # Grid-invariant operands (weights/biases): full-array blocks.
    # TODO(synk): once jax's pallas TPU pipeline honors pipeline_mode on the
    # top-level grid, mark these pl.Buffered(1) to drop the redundant second
    # VMEM weight buffer (matters on v7x's 64 MiB VMEM at large C).
    full = lambda shape: pl.BlockSpec(shape, lambda b: (0,) * len(shape))

    out_tok = pl.pallas_call(
        kernel,
        out_shape=jax.ShapeDtypeStruct((B, N, C), x_tok.dtype),
        grid_spec=pltpu.PrefetchScalarGridSpec(
            num_scalar_prefetch=0,
            grid=(batch_tiles,),
            in_specs=[
                pl.BlockSpec((bb, N, C), lambda b: (b, 0, 0)),
                full((1, C)),        # gamma
                full((1, C)),        # beta
                full((C, 3 * C)),    # wqkv
                full((1, 3 * C)),    # bqkv
                full((C, C)),        # wo
                full((1, C)),        # bo
            ],
            out_specs=pl.BlockSpec((bb, N, C), lambda b: (b, 0, 0)),
        ),
        # TODO(synk): for large N the kernel materializes (N, N) f32 scores per
        # head; scaling requires flash-style query(parallel)/KV(arbitrary) grid
        # axes with online softmax and an explicit vmem_limit_bytes (v7x has
        # only 64 MiB physical VMEM).
        compiler_params=pltpu.CompilerParams(
            dimension_semantics=("parallel",),
        ),
    )(x_tok, gamma, beta, wqkv, bqkv, wo, bo)

    # tokens [B, N, C] -> NCHW
    return jnp.transpose(out_tok, (0, 2, 1)).reshape(B, C, H, W)


def reference_transformer_block(x_nchw, params, *, num_heads):
    """Pure-JAX reference mirroring the PyTorch forward (dropout as identity)."""
    B, C, H, W = x_nchw.shape
    N = H * W
    d_k = C // num_heads
    x = jnp.transpose(x_nchw.reshape(B, C, N), (0, 2, 1)).astype(jnp.float32)

    mu = jnp.mean(x, axis=-1, keepdims=True)
    var = jnp.mean((x - mu) ** 2, axis=-1, keepdims=True)
    xn = (x - mu) / jnp.sqrt(var + 1e-5)
    xn = xn * params["gamma"] + params["beta"]

    def lin(z, w, b):
        return jnp.einsum("bnc,dc->bnd", z, w) + b

    q = lin(xn, params["wq"], params["bq"])
    k = lin(xn, params["wk"], params["bk"])
    v = lin(xn, params["wv"], params["bv"])

    def split(z):
        return jnp.transpose(z.reshape(B, N, num_heads, d_k), (0, 2, 1, 3))

    qh, kh, vh = split(q), split(k), split(v)
    s = jnp.einsum("bhnd,bhmd->bhnm", qh, kh) / math.sqrt(d_k)
    p = jax.nn.softmax(s, axis=-1)
    o = jnp.einsum("bhnm,bhmd->bhnd", p, vh)
    o = jnp.transpose(o, (0, 2, 1, 3)).reshape(B, N, C)
    o = lin(o, params["wo"], params["bo"])
    out = o + x
    return jnp.transpose(out, (0, 2, 1)).reshape(B, C, H, W)


def make_params(key, dim):
    keys = jax.random.split(key, 10)
    scale = 1.0 / math.sqrt(dim)
    p = {
        "gamma": jnp.ones((dim,), jnp.float32),
        "beta": jnp.zeros((dim,), jnp.float32),
    }
    names = ["wq", "bq", "wk", "bk", "wv", "bv", "wo", "bo"]
    for i, name in enumerate(names):
        shape = (dim, dim) if name.startswith("w") else (dim,)
        p[name] = jax.random.uniform(keys[i], shape, jnp.float32, -scale, scale)
    return p


if __name__ == "__main__":
    B, C, H, W = 2, 32, 8, 8
    num_heads = 4

    key = jax.random.PRNGKey(0)
    kx, kp = jax.random.split(key)
    x = jax.random.normal(kx, (B, C, H, W), jnp.float32)
    params = make_params(kp, C)

    ref = reference_transformer_block(x, params, num_heads=num_heads)

    # f32 MXU inputs: near-bit parity with the reference (softmax denom still
    # uses the EUP approximate reciprocal). Exercise both griddings:
    # folded batch (v5e/v6e) and batch-split across 2 slabs (v7x style).
    for tiles in (1, 2):
        out = transformer_block(x, params, num_heads=num_heads,
                                batch_tiles=tiles, compute_dtype=jnp.float32)
        out = jax.block_until_ready(out)
        assert out.shape == (B, C, H, W)
        assert jnp.allclose(out, ref, atol=2e-3, rtol=2e-3), \
            f"mismatch (f32, batch_tiles={tiles})"

    # Default path: bf16 MXU operands (f32 accumulation / elementwise), auto
    # device-kind-driven gridding. Tolerance loosened for bf16 matmul inputs.
    out = jax.block_until_ready(transformer_block(x, params, num_heads=num_heads))
    assert out.shape == (B, C, H, W)
    assert jnp.allclose(out, ref, atol=6e-2, rtol=6e-2), "mismatch (bf16, auto)"

    print("KERNEL_OK")
</pallas_src>

<mosaic_0001>
module attributes {stable_mosaic.version = 11 : i64} {
  func.func @transformer_block_kernel(%arg0: i32, %arg1: memref<2x64x32xf32, #tpu.memory_space<vmem>>, %arg2: memref<1x32xf32, #tpu.memory_space<vmem>>, %arg3: memref<1x32xf32, #tpu.memory_space<vmem>>, %arg4: memref<32x96xf32, #tpu.memory_space<vmem>>, %arg5: memref<1x96xf32, #tpu.memory_space<vmem>>, %arg6: memref<32x32xf32, #tpu.memory_space<vmem>>, %arg7: memref<1x32xf32, #tpu.memory_space<vmem>>, %arg8: memref<2x64x32xf32, #tpu.memory_space<vmem>>) attributes {dimension_semantics = [#tpu.dimension_semantics<parallel>], iteration_bounds = array<i64: 1>, scalar_prefetch = 0 : i64, scratch_operands = 0 : i64, tpu.core_type = #tpu.core_type<tc>, window_params = [{transform_indices = @transform_0, window_bounds = array<i64: 2, 64, 32>}, {pipeline_mode = #tpu.pipeline_mode<synchronous>, transform_indices = @transform_1, window_bounds = array<i64: 1, 32>}, {pipeline_mode = #tpu.pipeline_mode<synchronous>, transform_indices = @transform_2, window_bounds = array<i64: 1, 32>}, {pipeline_mode = #tpu.pipeline_mode<synchronous>, transform_indices = @transform_3, window_bounds = array<i64: 32, 96>}, {pipeline_mode = #tpu.pipeline_mode<synchronous>, transform_indices = @transform_4, window_bounds = array<i64: 1, 96>}, {pipeline_mode = #tpu.pipeline_mode<synchronous>, transform_indices = @transform_5, window_bounds = array<i64: 32, 32>}, {pipeline_mode = #tpu.pipeline_mode<synchronous>, transform_indices = @transform_6, window_bounds = array<i64: 1, 32>}, {transform_indices = @transform_7, window_bounds = array<i64: 2, 64, 32>}]} {
    %c0 = arith.constant 0 : index
    %c0_0 = arith.constant 0 : index
    %c0_1 = arith.constant 0 : index
    %0 = vector.load %arg1[%c0, %c0_0, %c0_1] : memref<2x64x32xf32, #tpu.memory_space<vmem>>, vector<2x64x32xf32>
    %1 = vector.shape_cast %0 : vector<2x64x32xf32> to vector<128x32xf32>
    %cst = arith.constant dense<0.000000e+00> : vector<128xf32>
    %2 = vector.multi_reduction <add>, %1, %cst [1] : vector<128x32xf32> to vector<128xf32>
    %3 = vector.shape_cast %2 : vector<128xf32> to vector<128x1xf32>
    %cst_2 = arith.constant 3.200000e+01 : f32
    %4 = vector.broadcast %cst_2 : f32 to vector<128x1xf32>
    %5 = arith.divf %3, %4 : vector<128x1xf32>
    %6 = vector.broadcast %5 : vector<128x1xf32> to vector<128x32xf32>
    %7 = arith.subf %1, %6 : vector<128x32xf32>
    %8 = arith.mulf %7, %7 : vector<128x32xf32>
    %cst_3 = arith.constant dense<0.000000e+00> : vector<128xf32>
    %9 = vector.multi_reduction <add>, %8, %cst_3 [1] : vector<128x32xf32> to vector<128xf32>
    %10 = vector.shape_cast %9 : vector<128xf32> to vector<128x1xf32>
    %cst_4 = arith.constant 3.200000e+01 : f32
    %11 = vector.broadcast %cst_4 : f32 to vector<128x1xf32>
    %12 = arith.divf %10, %11 : vector<128x1xf32>
    %cst_5 = arith.constant 9.99999974E-6 : f32
    %13 = vector.broadcast %cst_5 : f32 to vector<128x1xf32>
    %14 = arith.addf %12, %13 : vector<128x1xf32>
    %15 = math.rsqrt %14 : vector<128x1xf32>
    %16 = vector.broadcast %15 : vector<128x1xf32> to vector<128x32xf32>
    %17 = arith.mulf %7, %16 : vector<128x32xf32>
    %c0_6 = arith.constant 0 : index
    %c0_7 = arith.constant 0 : index
    %18 = vector.load %arg2[%c0_6, %c0_7] : memref<1x32xf32, #tpu.memory_space<vmem>>, vector<1x32xf32>
    %19 = vector.broadcast %18 : vector<1x32xf32> to vector<128x32xf32>
    %20 = arith.mulf %17, %19 : vector<128x32xf32>
    %c0_8 = arith.constant 0 : index
    %c0_9 = arith.constant 0 : index
    %21 = vector.load %arg3[%c0_8, %c0_9] : memref<1x32xf32, #tpu.memory_space<vmem>>, vector<1x32xf32>
    %22 = vector.broadcast %21 : vector<1x32xf32> to vector<128x32xf32>
    %23 = arith.addf %20, %22 : vector<128x32xf32>
    %c0_10 = arith.constant 0 : index
    %c0_11 = arith.constant 0 : index
    %24 = vector.load %arg4[%c0_10, %c0_11] : memref<32x96xf32, #tpu.memory_space<vmem>>, vector<32x96xf32>
    %cst_12 = arith.constant dense<0.000000e+00> : vector<128x96xf32>
    %25 = tpu.matmul %23, %24, %cst_12 {dimension_numbers = #tpu.dot_dimension_numbers<[1], [0], [0], [1], [0, 0, 1, 1], [], []>} : vector<128x32xf32>, vector<32x96xf32>, vector<128x96xf32> -> vector<128x96xf32>
    %c0_13 = arith.constant 0 : index
    %c0_14 = arith.constant 0 : index
    %26 = vector.load %arg5[%c0_13, %c0_14] : memref<1x96xf32, #tpu.memory_space<vmem>>, vector<1x96xf32>
    %27 = vector.broadcast %26 : vector<1x96xf32> to vector<128x96xf32>
    %28 = arith.addf %25, %27 : vector<128x96xf32>
    %29 = vector.shape_cast %28 : vector<128x96xf32> to vector<2x64x96xf32>
    %30 = vector.extract_strided_slice %29 {offsets = [0, 0, 0], sizes = [2, 64, 32], strides = [1, 1, 1]} : vector<2x64x96xf32> to vector<2x64x32xf32>
    %cst_15 = arith.constant 0.353553385 : f32
    %31 = vector.broadcast %cst_15 : f32 to vector<2x64x32xf32>
    %32 = arith.mulf %30, %31 : vector<2x64x32xf32>
    %33 = vector.extract_strided_slice %29 {offsets = [0, 0, 32], sizes = [2, 64, 32], strides = [1, 1, 1]} : vector<2x64x96xf32> to vector<2x64x32xf32>
    %34 = vector.extract_strided_slice %29 {offsets = [0, 0, 64], sizes = [2, 64, 32], strides = [1, 1, 1]} : vector<2x64x96xf32> to vector<2x64x32xf32>
    %cst_16 = arith.constant 0.000000e+00 : f32
    %35 = vector.broadcast %cst_16 : f32 to vector<2x64x32xf32>
    %36 = vector.extract_strided_slice %32 {offsets = [0, 0, 0], sizes = [2, 64, 8], strides = [1, 1, 1]} : vector<2x64x32xf32> to vector<2x64x8xf32>
    %37 = vector.extract_strided_slice %33 {offsets = [0, 0, 0], sizes = [2, 64, 8], strides = [1, 1, 1]} : vector<2x64x32xf32> to vector<2x64x8xf32>
    %38 = vector.extract_strided_slice %34 {offsets = [0, 0, 0], sizes = [2, 64, 8], strides = [1, 1, 1]} : vector<2x64x32xf32> to vector<2x64x8xf32>
    %cst_17 = arith.constant dense<0.000000e+00> : vector<2x64x64xf32>
    %39 = tpu.matmul %36, %37, %cst_17 {dimension_numbers = #tpu.dot_dimension_numbers<[2], [2], [1], [1], [0, 0, 0, 1, 1, 1], [0], [0]>} : vector<2x64x8xf32>, vector<2x64x8xf32>, vector<2x64x64xf32> -> vector<2x64x64xf32>
    %cst_18 = arith.constant dense<0xFF800000> : vector<2x64xf32>
    %40 = vector.multi_reduction <maximumf>, %39, %cst_18 [2] : vector<2x64x64xf32> to vector<2x64xf32>
    %41 = vector.shape_cast %40 : vector<2x64xf32> to vector<2x64x1xf32>
    %42 = vector.broadcast %41 : vector<2x64x1xf32> to vector<2x64x64xf32>
    %43 = arith.subf %39, %42 : vector<2x64x64xf32>
    %44 = math.exp %43 : vector<2x64x64xf32>
    %cst_19 = arith.constant dense<0.000000e+00> : vector<2x64xf32>
    %45 = vector.multi_reduction <add>, %44, %cst_19 [2] : vector<2x64x64xf32> to vector<2x64xf32>
    %46 = vector.shape_cast %45 : vector<2x64xf32> to vector<2x64x1xf32>
    %47 = tpu.reciprocal %46 {approx = true} : vector<2x64x1xf32> -> vector<2x64x1xf32>
    %48 = vector.broadcast %47 : vector<2x64x1xf32> to vector<2x64x64xf32>
    %49 = arith.mulf %44, %48 : vector<2x64x64xf32>
    %cst_20 = arith.constant dense<0.000000e+00> : vector<2x64x8xf32>
    %50 = tpu.matmul %49, %38, %cst_20 {dimension_numbers = #tpu.dot_dimension_numbers<[2], [1], [1], [2], [0, 0, 0, 1, 1, 2], [0], [0]>} : vector<2x64x64xf32>, vector<2x64x8xf32>, vector<2x64x8xf32> -> vector<2x64x8xf32>
    %c0_21 = arith.constant 0 : index
    %c0_22 = arith.constant 0 : index
    %51 = vector.load %arg6[%c0_21, %c0_22] : memref<32x32xf32, #tpu.memory_space<vmem>>, vector<8x32xf32>
    %cst_23 = arith.constant dense<0.000000e+00> : vector<2x64x32xf32>
    %52 = tpu.matmul %50, %51, %cst_23 {dimension_numbers = #tpu.dot_dimension_numbers<[2], [0], [0, 1], [1], [0, 0, 0, 1, 1, 1], [], []>} : vector<2x64x8xf32>, vector<8x32xf32>, vector<2x64x32xf32> -> vector<2x64x32xf32>
    %53 = arith.addf %35, %52 : vector<2x64x32xf32>
    %54 = vector.extract_strided_slice %32 {offsets = [0, 0, 8], sizes = [2, 64, 8], strides = [1, 1, 1]} : vector<2x64x32xf32> to vector<2x64x8xf32>
    %55 = vector.extract_strided_slice %33 {offsets = [0, 0, 8], sizes = [2, 64, 8], strides = [1, 1, 1]} : vector<2x64x32xf32> to vector<2x64x8xf32>
    %56 = vector.extract_strided_slice %34 {offsets = [0, 0, 8], sizes = [2, 64, 8], strides = [1, 1, 1]} : vector<2x64x32xf32> to vector<2x64x8xf32>
    %cst_24 = arith.constant dense<0.000000e+00> : vector<2x64x64xf32>
    %57 = tpu.matmul %54, %55, %cst_24 {dimension_numbers = #tpu.dot_dimension_numbers<[2], [2], [1], [1], [0, 0, 0, 1, 1, 1], [0], [0]>} : vector<2x64x8xf32>, vector<2x64x8xf32>, vector<2x64x64xf32> -> vector<2x64x64xf32>
    %cst_25 = arith.constant dense<0xFF800000> : vector<2x64xf32>
    %58 = vector.multi_reduction <maximumf>, %57, %cst_25 [2] : vector<2x64x64xf32> to vector<2x64xf32>
    %59 = vector.shape_cast %58 : vector<2x64xf32> to vector<2x64x1xf32>
    %60 = vector.broadcast %59 : vector<2x64x1xf32> to vector<2x64x64xf32>
    %61 = arith.subf %57, %60 : vector<2x64x64xf32>
    %62 = math.exp %61 : vector<2x64x64xf32>
    %cst_26 = arith.constant dense<0.000000e+00> : vector<2x64xf32>
    %63 = vector.multi_reduction <add>, %62, %cst_26 [2] : vector<2x64x64xf32> to vector<2x64xf32>
    %64 = vector.shape_cast %63 : vector<2x64xf32> to vector<2x64x1xf32>
    %65 = tpu.reciprocal %64 {approx = true} : vector<2x64x1xf32> -> vector<2x64x1xf32>
    %66 = vector.broadcast %65 : vector<2x64x1xf32> to vector<2x64x64xf32>
    %67 = arith.mulf %62, %66 : vector<2x64x64xf32>
    %cst_27 = arith.constant dense<0.000000e+00> : vector<2x64x8xf32>
    %68 = tpu.matmul %67, %56, %cst_27 {dimension_numbers = #tpu.dot_dimension_numbers<[2], [1], [1], [2], [0, 0, 0, 1, 1, 2], [0], [0]>} : vector<2x64x64xf32>, vector<2x64x8xf32>, vector<2x64x8xf32> -> vector<2x64x8xf32>
    %c8 = arith.constant 8 : index
    %c0_28 = arith.constant 0 : index
    %69 = vector.load %arg6[%c8, %c0_28] : memref<32x32xf32, #tpu.memory_space<vmem>>, vector<8x32xf32>
    %cst_29 = arith.constant dense<0.000000e+00> : vector<2x64x32xf32>
    %70 = tpu.matmul %68, %69, %cst_29 {dimension_numbers = #tpu.dot_dimension_numbers<[2], [0], [0, 1], [1], [0, 0, 0, 1, 1, 1], [], []>} : vector<2x64x8xf32>, vector<8x32xf32>, vector<2x64x32xf32> -> vector<2x64x32xf32>
    %71 = arith.addf %53, %70 : vector<2x64x32xf32>
    %72 = vector.extract_strided_slice %32 {offsets = [0, 0, 16], sizes = [2, 64, 8], strides = [1, 1, 1]} : vector<2x64x32xf32> to vector<2x64x8xf32>
    %73 = vector.extract_strided_slice %33 {offsets = [0, 0, 16], sizes = [2, 64, 8], strides = [1, 1, 1]} : vector<2x64x32xf32> to vector<2x64x8xf32>
    %74 = vector.extract_strided_slice %34 {offsets = [0, 0, 16], sizes = [2, 64, 8], strides = [1, 1, 1]} : vector<2x64x32xf32> to vector<2x64x8xf32>
    %cst_30 = arith.constant dense<0.000000e+00> : vector<2x64x64xf32>
    %75 = tpu.matmul %72, %73, %cst_30 {dimension_numbers = #tpu.dot_dimension_numbers<[2], [2], [1], [1], [0, 0, 0, 1, 1, 1], [0], [0]>} : vector<2x64x8xf32>, vector<2x64x8xf32>, vector<2x64x64xf32> -> vector<2x64x64xf32>
    %cst_31 = arith.constant dense<0xFF800000> : vector<2x64xf32>
    %76 = vector.multi_reduction <maximumf>, %75, %cst_31 [2] : vector<2x64x64xf32> to vector<2x64xf32>
    %77 = vector.shape_cast %76 : vector<2x64xf32> to vector<2x64x1xf32>
    %78 = vector.broadcast %77 : vector<2x64x1xf32> to vector<2x64x64xf32>
    %79 = arith.subf %75, %78 : vector<2x64x64xf32>
    %80 = math.exp %79 : vector<2x64x64xf32>
    %cst_32 = arith.constant dense<0.000000e+00> : vector<2x64xf32>
    %81 = vector.multi_reduction <add>, %80, %cst_32 [2] : vector<2x64x64xf32> to vector<2x64xf32>
    %82 = vector.shape_cast %81 : vector<2x64xf32> to vector<2x64x1xf32>
    %83 = tpu.reciprocal %82 {approx = true} : vector<2x64x1xf32> -> vector<2x64x1xf32>
    %84 = vector.broadcast %83 : vector<2x64x1xf32> to vector<2x64x64xf32>
    %85 = arith.mulf %80, %84 : vector<2x64x64xf32>
    %cst_33 = arith.constant dense<0.000000e+00> : vector<2x64x8xf32>
    %86 = tpu.matmul %85, %74, %cst_33 {dimension_numbers = #tpu.dot_dimension_numbers<[2], [1], [1], [2], [0, 0, 0, 1, 1, 2], [0], [0]>} : vector<2x64x64xf32>, vector<2x64x8xf32>, vector<2x64x8xf32> -> vector<2x64x8xf32>
    %c16 = arith.constant 16 : index
    %c0_34 = arith.constant 0 : index
    %87 = vector.load %arg6[%c16, %c0_34] : memref<32x32xf32, #tpu.memory_space<vmem>>, vector<8x32xf32>
    %cst_35 = arith.constant dense<0.000000e+00> : vector<2x64x32xf32>
    %88 = tpu.matmul %86, %87, %cst_35 {dimension_numbers = #tpu.dot_dimension_numbers<[2], [0], [0, 1], [1], [0, 0, 0, 1, 1, 1], [], []>} : vector<2x64x8xf32>, vector<8x32xf32>, vector<2x64x32xf32> -> vector<2x64x32xf32>
    %89 = arith.addf %71, %88 : vector<2x64x32xf32>
    %90 = vector.extract_strided_slice %32 {offsets = [0, 0, 24], sizes = [2, 64, 8], strides = [1, 1, 1]} : vector<2x64x32xf32> to vector<2x64x8xf32>
    %91 = vector.extract_strided_slice %33 {offsets = [0, 0, 24], sizes = [2, 64, 8], strides = [1, 1, 1]} : vector<2x64x32xf32> to vector<2x64x8xf32>
    %92 = vector.extract_strided_slice %34 {offsets = [0, 0, 24], sizes = [2, 64, 8], strides = [1, 1, 1]} : vector<2x64x32xf32> to vector<2x64x8xf32>
    %cst_36 = arith.constant dense<0.000000e+00> : vector<2x64x64xf32>
    %93 = tpu.matmul %90, %91, %cst_36 {dimension_numbers = #tpu.dot_dimension_numbers<[2], [2], [1], [1], [0, 0, 0, 1, 1, 1], [0], [0]>} : vector<2x64x8xf32>, vector<2x64x8xf32>, vector<2x64x64xf32> -> vector<2x64x64xf32>
    %cst_37 = arith.constant dense<0xFF800000> : vector<2x64xf32>
    %94 = vector.multi_reduction <maximumf>, %93, %cst_37 [2] : vector<2x64x64xf32> to vector<2x64xf32>
    %95 = vector.shape_cast %94 : vector<2x64xf32> to vector<2x64x1xf32>
    %96 = vector.broadcast %95 : vector<2x64x1xf32> to vector<2x64x64xf32>
    %97 = arith.subf %93, %96 : vector<2x64x64xf32>
    %98 = math.exp %97 : vector<2x64x64xf32>
    %cst_38 = arith.constant dense<0.000000e+00> : vector<2x64xf32>
    %99 = vector.multi_reduction <add>, %98, %cst_38 [2] : vector<2x64x64xf32> to vector<2x64xf32>
    %100 = vector.shape_cast %99 : vector<2x64xf32> to vector<2x64x1xf32>
    %101 = tpu.reciprocal %100 {approx = true} : vector<2x64x1xf32> -> vector<2x64x1xf32>
    %102 = vector.broadcast %101 : vector<2x64x1xf32> to vector<2x64x64xf32>
    %103 = arith.mulf %98, %102 : vector<2x64x64xf32>
    %cst_39 = arith.constant dense<0.000000e+00> : vector<2x64x8xf32>
    %104 = tpu.matmul %103, %92, %cst_39 {dimension_numbers = #tpu.dot_dimension_numbers<[2], [1], [1], [2], [0, 0, 0, 1, 1, 2], [0], [0]>} : vector<2x64x64xf32>, vector<2x64x8xf32>, vector<2x64x8xf32> -> vector<2x64x8xf32>
    %c24 = arith.constant 24 : index
    %c0_40 = arith.constant 0 : index
    %105 = vector.load %arg6[%c24, %c0_40] : memref<32x32xf32, #tpu.memory_space<vmem>>, vector<8x32xf32>
    %cst_41 = arith.constant dense<0.000000e+00> : vector<2x64x32xf32>
    %106 = tpu.matmul %104, %105, %cst_41 {dimension_numbers = #tpu.dot_dimension_numbers<[2], [0], [0, 1], [1], [0, 0, 0, 1, 1, 1], [], []>} : vector<2x64x8xf32>, vector<8x32xf32>, vector<2x64x32xf32> -> vector<2x64x32xf32>
    %107 = arith.addf %89, %106 : vector<2x64x32xf32>
    %c0_42 = arith.constant 0 : index
    %c0_43 = arith.constant 0 : index
    %108 = vector.load %arg7[%c0_42, %c0_43] : memref<1x32xf32, #tpu.memory_space<vmem>>, vector<1x32xf32>
    %109 = vector.shape_cast %108 : vector<1x32xf32> to vector<1x1x32xf32>
    %110 = vector.broadcast %109 : vector<1x1x32xf32> to vector<2x64x32xf32>
    %111 = arith.addf %107, %110 : vector<2x64x32xf32>
    %c0_44 = arith.constant 0 : index
    %c0_45 = arith.constant 0 : index
    %c0_46 = arith.constant 0 : index
    %112 = vector.load %arg1[%c0_44, %c0_45, %c0_46] : memref<2x64x32xf32, #tpu.memory_space<vmem>>, vector<2x64x32xf32>
    %113 = arith.addf %111, %112 : vector<2x64x32xf32>
    %c0_47 = arith.constant 0 : index
    %c0_48 = arith.constant 0 : index
    %c0_49 = arith.constant 0 : index
    %114 = vector.load %arg8[%c0_47, %c0_48, %c0_49] : memref<2x64x32xf32, #tpu.memory_space<vmem>>, vector<2x64x32xf32>
    tpu.vector_store %arg8[%c0_47, %c0_48, %c0_49], %113 {strides = array<i32>} : memref<2x64x32xf32, #tpu.memory_space<vmem>>, vector<2x64x32xf32>,
    return
  }
  func.func @transform_0(%arg0: i32) -> (i32, i32, i32) {
    %c0_i32 = arith.constant 0 : i32
    %c0_i32_0 = arith.constant 0 : i32
    %c0_i32_1 = arith.constant 0 : i32
    return %arg0, %c0_i32, %c0_i32_0 : i32, i32, i32
  }
  func.func @transform_1(%arg0: i32) -> (i32, i32) {
    %c0_i32 = arith.constant 0 : i32
    %c0_i32_0 = arith.constant 0 : i32
    %c0_i32_1 = arith.constant 0 : i32
    return %c0_i32, %c0_i32_0 : i32, i32
  }
  func.func @transform_2(%arg0: i32) -> (i32, i32) {
    %c0_i32 = arith.constant 0 : i32
    %c0_i32_0 = arith.constant 0 : i32
    %c0_i32_1 = arith.constant 0 : i32
    return %c0_i32, %c0_i32_0 : i32, i32
  }
  func.func @transform_3(%arg0: i32) -> (i32, i32) {
    %c0_i32 = arith.constant 0 : i32
    %c0_i32_0 = arith.constant 0 : i32
    %c0_i32_1 = arith.constant 0 : i32
    return %c0_i32, %c0_i32_0 : i32, i32
  }
  func.func @transform_4(%arg0: i32) -> (i32, i32) {
    %c0_i32 = arith.constant 0 : i32
    %c0_i32_0 = arith.constant 0 : i32
    %c0_i32_1 = arith.constant 0 : i32
    return %c0_i32, %c0_i32_0 : i32, i32
  }
  func.func @transform_5(%arg0: i32) -> (i32, i32) {
    %c0_i32 = arith.constant 0 : i32
    %c0_i32_0 = arith.constant 0 : i32
    %c0_i32_1 = arith.constant 0 : i32
    return %c0_i32, %c0_i32_0 : i32, i32
  }
  func.func @transform_6(%arg0: i32) -> (i32, i32) {
    %c0_i32 = arith.constant 0 : i32
    %c0_i32_0 = arith.constant 0 : i32
    %c0_i32_1 = arith.constant 0 : i32
    return %c0_i32, %c0_i32_0 : i32, i32
  }
  func.func @transform_7(%arg0: i32) -> (i32, i32, i32) {
    %c0_i32 = arith.constant 0 : i32
    %c0_i32_0 = arith.constant 0 : i32
    %c0_i32_1 = arith.constant 0 : i32
    return %arg0, %c0_i32, %c0_i32_0 : i32, i32, i32
  }
}

</mosaic_0001>

<bundles_post_ra>
// kernel: tpu_custom_call.1
= control target key start
LH: loop header
LB: loop body
LE: loop exit
PB: predicated region body
PF: predicated region fallthrough
CT: control target
= control target key end

     0   :  { %vm42_vm0 = vcmask 261120   ;;  %vm542_vm1 = vcmask 64512   ;;  %s6890_s21 = smov 96   ;;  %s6892_s22 = smov 88   ;;  %vm857_vm3 = vcmask 523264   ;;  %s8788_s0 = inlined_call_operand.vmem [shape: f32[2,64,32], index: 0, kind: input, shape index: {}]   ;;  %s8789_s3 = inlined_call_operand.vmem [shape: f32[32,96], index: 3, kind: input, shape index: {}]   ;;  %s8790_s1 = inlined_call_operand.vmem [shape: f32[1,32], index: 1, kind: input, shape index: {}]   ;;  %s8791_s2 = inlined_call_operand.vmem [shape: f32[1,32], index: 2, kind: input, shape index: {}]   ;;  %s8792_s4 = inlined_call_operand.vmem [shape: f32[1,96], index: 4, kind: input, shape index: {}]   ;;  %s8793_s5 = inlined_call_operand.vmem [shape: f32[32,32], index: 5, kind: input, shape index: {}]   ;;  %s8794_s6 = inlined_call_operand.vmem [shape: f32[1,32], index: 6, kind: input, shape index: {}]   ;;  %s8795_s7 = inlined_call_operand.vmem [shape: f32[2,64,32], index: 7, kind: output, shape index: {}]  }
   0x1   :  { %v26_v0 = vld [vmem:[%s8788_s0] sm:$0xff]  ;;  %v28_v1 = vld [vmem:[%s8788_s0 + $0x10] sm:$0xff]  ;;  %v27_v2 = vld [vmem:[%s8788_s0 + $0x8] sm:$0xff]  ;;  %s6893_s23 = smov 120   ;;  %s6894_s24 = smov 56  }
   0x2   :  { %v43_v3 = vsel %vm42_vm0, %v26_v0, 0.0  ;;  %v49_v4 = vsel %vm42_vm0, %v28_v1, 0.0  ;;  %v29_v5 = vld [vmem:[%s8788_s0 + $0x18] sm:$0xff]  ;;  %v46_v6 = vsel %vm42_vm0, %v27_v2, 0.0  ;;  %v30_v8 = vld [vmem:[%s8788_s0 + $0x20] sm:$0xff]  ;;  %v31_v9 = vld [vmem:[%s8788_s0 + $0x28] sm:$0xff] }
   0x3   :  { %44 = vadd.xlane.f32.xlu0 %v43_v3  ;;  %50 = vadd.xlane.f32.xlu1 %v49_v4  ;;  %v52_v7 = vsel %vm42_vm0, %v29_v5, 0.0  ;;  %v55_v10 = vsel %vm42_vm0, %v30_v8, 0.0  ;;  %v58_v11 = vsel %vm42_vm0, %v31_v9, 0.0  ;;  %v6968_v12 = vld [vmem:[%s8788_s0 + $0x30] sm:$0xff]  ;;  %v6973_v13 = vld [vmem:[%s8788_s0 + $0x38] sm:$0xff]  ;;  %v6982_v16 = vld [vmem:[%s8788_s0 + $0x40] sm:$0xff] }
   0x4   :  { %v61_v14 = vsel %vm42_vm0, %v6968_v12, 0.0  ;;  %v64_v15 = vsel %vm42_vm0, %v6973_v13, 0.0  ;;  %v6987_v17 = vld [vmem:[%s8788_s0 + $0x48] sm:$0xff]  ;;  %v67_v18 = vsel %vm42_vm0, %v6982_v16, 0.0  ;;  %v6996_v20 = vld [vmem:[%s8788_s0 + $0x50] sm:$0xff]  ;;  %v7001_v21 = vld [vmem:[%s8788_s0 + $0x58] sm:$0xff] }
   0x5   :  { %v70_v19 = vsel %vm42_vm0, %v6987_v17, 0.0  ;;  %v73_v22 = vsel %vm42_vm0, %v6996_v20, 0.0  ;;  %v76_v23 = vsel %vm42_vm0, %v7001_v21, 0.0  ;;  %v7010_v24 = vld [vmem:[%s8788_s0 + $0x60] sm:$0xff]  ;;  %v7015_v25 = vld [vmem:[%s8788_s0 + $0x68] sm:$0xff]  ;;  %v7024_v28 = vld [vmem:[%s8788_s0 + $0x70] sm:$0xff] }
   0x6   :  { %v79_v26 = vsel %vm42_vm0, %v7010_v24, 0.0  ;;  %v82_v27 = vsel %vm42_vm0, %v7015_v25, 0.0  ;;  %v7029_v29 = vld [vmem:[%s8788_s0 + $0x78] sm:$0xff]  ;;  %v85_v30 = vsel %vm42_vm0, %v7024_v28, 0.0  ;;  %vm7331_vm2 = vmpackc.low %vm542_vm1, %vm542_vm1  ;;  %s6895_s25 = smov 80   ;;  %s6896_s26 = smov 112  }
   0x7   :  { %47 = vadd.xlane.f32.xlu0 %v46_v6  ;;  %53 = vadd.xlane.f32.xlu1 %v52_v7  ;;  %v88_v31 = vsel %vm42_vm0, %v7029_v29, 0.0  ;;  %s6897_s27 = smov 48   ;;  %s6898_s9 = smov 72  }
   0x8   :  { %s6899_s10 = smov 104   ;;  %s6900_s13 = smov 40  }
   0xb   :  { %56 = vadd.xlane.f32.xlu0 %v55_v10  ;;  %59 = vadd.xlane.f32.xlu1 %v58_v11 }
   0xf   :  { %62 = vadd.xlane.f32.xlu0 %v61_v14  ;;  %65 = vadd.xlane.f32.xlu1 %v64_v15 }
  0x13   :  { %68 = vadd.xlane.f32.xlu0 %v67_v18  ;;  %71 = vadd.xlane.f32.xlu1 %v70_v19 }
  0x17   :  { %74 = vadd.xlane.f32.xlu0 %v73_v22  ;;  %77 = vadd.xlane.f32.xlu1 %v76_v23 }
  0x1b   :  { %80 = vadd.xlane.f32.xlu0 %v79_v26  ;;  %83 = vadd.xlane.f32.xlu1 %v82_v27 }
  0x1f   :  { %86 = vadd.xlane.f32.xlu0 %v85_v30  ;;  %89 = vadd.xlane.f32.xlu1 %v88_v31 }
  0x90   :  { %v45_v32 = vpop.xlane.xlu0 %44  ;;  %v51_v33 = vpop.xlane.xlu1 %50 }
  0x91   :  { %v92_v34 = vmul.f32 0.03125, %v45_v32  ;;  %v94_v35 = vmul.f32 0.03125, %v51_v33 }
  0x93   :  { %v7035_v36 = vsub.f32 %v26_v0, %v92_v34  ;;  %v7037_v37 = vsub.f32 %v28_v1, %v94_v35 }
  0x94   :  { %v48_v38 = vpop.xlane.xlu0 %47  ;;  %v54_v39 = vpop.xlane.xlu1 %53 }
  0x95   :  { %v93_v40 = vmul.f32 0.03125, %v48_v38  ;;  %v95_v41 = vmul.f32 0.03125, %v54_v39  ;;  %v124_v42 = vmul.f32 %v7035_v36, %v7035_v36  ;;  %v126_v43 = vmul.f32 %v7037_v37, %v7037_v37 }
  0x97   :  { %v7043_v44 = vsub.f32 %v27_v2, %v93_v40  ;;  %v7045_v45 = vsub.f32 %v29_v5, %v95_v41  ;;  %v140_v46 = vsel %vm42_vm0, %v124_v42, 0.0  ;;  %v146_v49 = vsel %vm42_vm0, %v126_v43, 0.0 }
  0x98   :  { %141 = vadd.xlane.f32.xlu0 %v140_v46  ;;  %v57_v47 = vpop.xlane.xlu0 %56  ;;  %v60_v48 = vpop.xlane.xlu1 %59 }
  0x99   :  { %v96_v50 = vmul.f32 0.03125, %v57_v47  ;;  %v97_v51 = vmul.f32 0.03125, %v60_v48  ;;  %v125_v52 = vmul.f32 %v7043_v44, %v7043_v44  ;;  %v127_v53 = vmul.f32 %v7045_v45, %v7045_v45 }
  0x9b   :  { %v7053_v54 = vsub.f32 %v30_v8, %v96_v50  ;;  %v7055_v55 = vsub.f32 %v31_v9, %v97_v51  ;;  %v143_v56 = vsel %vm42_vm0, %v125_v52, 0.0  ;;  %v149_v59 = vsel %vm42_vm0, %v127_v53, 0.0  ;;  %v299_v53 = vld [vmem:[%s8789_s3 + $0x8] sm:$0xff] }
  0x9c   :  { %147 = vadd.xlane.f32.xlu0 %v146_v49  ;;  %144 = vadd.xlane.f32.xlu1 %v143_v56  ;;  %v63_v57 = vpop.xlane.xlu0 %62  ;;  %v66_v58 = vpop.xlane.xlu1 %65 }
  0x9d   :  { %v98_v60 = vmul.f32 0.03125, %v63_v57  ;;  %v99_v61 = vmul.f32 0.03125, %v66_v58  ;;  %v128_v62 = vmul.f32 %v7053_v54, %v7053_v54  ;;  %v129_v63 = vmul.f32 %v7055_v55, %v7055_v55  ;;  %v300_v57 = vld [vmem:[%s8789_s3 + $0x10] sm:$0xff]  ;;  %v301_v58 = vld [vmem:[%s8789_s3 + $0x18] sm:$0xff] }
  0x9f   :  { %v7064_v0 = vsub.f32 %v6968_v12, %v98_v60  ;;  %v7067_v1 = vsub.f32 %v6973_v13, %v99_v61  ;;  %v152_v2 = vsel %vm42_vm0, %v128_v62, 0.0  ;;  %v155_v5 = vsel %vm42_vm0, %v129_v63, 0.0 }
  0xa0   :  { %150 = vadd.xlane.f32.xlu1 %v149_v59  ;;  %153 = vadd.xlane.f32.xlu0 %v152_v2  ;;  %v69_v3 = vpop.xlane.xlu0 %68  ;;  %v72_v4 = vpop.xlane.xlu1 %71  ;;  %v5875_v59 = vpack.c.bf16 %v301_v58, %v300_v57 }
  0xa1   :  { %v100_v6 = vmul.f32 0.03125, %v69_v3  ;;  %v101_v7 = vmul.f32 0.03125, %v72_v4  ;;  %v130_v8 = vmul.f32 %v7064_v0, %v7064_v0  ;;  %v131_v9 = vmul.f32 %v7067_v1, %v7067_v1 }
  0xa3   :  { %v7076_v10 = vsub.f32 %v6982_v16, %v100_v6  ;;  %v7079_v11 = vsub.f32 %v6987_v17, %v101_v7  ;;  %v158_v12 = vsel %vm42_vm0, %v130_v8, 0.0  ;;  %v161_v15 = vsel %vm42_vm0, %v131_v9, 0.0 }
  0xa4   :  { %156 = vadd.xlane.f32.xlu1 %v155_v5  ;;  %159 = vadd.xlane.f32.xlu0 %v158_v12  ;;  %v75_v13 = vpop.xlane.xlu0 %74  ;;  %v78_v14 = vpop.xlane.xlu1 %77 }
  0xa5   :  { %v102_v18 = vmul.f32 0.03125, %v75_v13  ;;  %v103_v19 = vmul.f32 0.03125, %v78_v14  ;;  %v132_v22 = vmul.f32 %v7076_v10, %v7076_v10  ;;  %v133_v16 = vmul.f32 %v7079_v11, %v7079_v11 }
  0xa7   :  { %v7088_v23 = vsub.f32 %v6996_v20, %v102_v18  ;;  %v7091_v17 = vsub.f32 %v7001_v21, %v103_v19  ;;  %v164_v26 = vsel %vm42_vm0, %v132_v22, 0.0  ;;  %v167_v31 = vsel %vm42_vm0, %v133_v16, 0.0 }
  0xa8   :  { %162 = vadd.xlane.f32.xlu1 %v161_v15  ;;  %165 = vadd.xlane.f32.xlu0 %v164_v26  ;;  %v81_v27 = vpop.xlane.xlu0 %80  ;;  %v84_v30 = vpop.xlane.xlu1 %83 }
  0xa9   :  { %v104_v32 = vmul.f32 0.03125, %v81_v27  ;;  %v105_v33 = vmul.f32 0.03125, %v84_v30  ;;  %v134_v34 = vmul.f32 %v7088_v23, %v7088_v23  ;;  %v135_v20 = vmul.f32 %v7091_v17, %v7091_v17  ;;  %v7140_v30 = vld [vmem:[%s8790_s1] ss:$0 sm:$0xff] }
  0xab   :  { %v7100_v35 = vsub.f32 %v7010_v24, %v104_v32  ;;  %v7103_v21 = vsub.f32 %v7015_v25, %v105_v33  ;;  %v170_v38 = vsel %vm42_vm0, %v134_v34, 0.0  ;;  %v173_v41 = vsel %vm42_vm0, %v135_v20, 0.0 }
  0xac   :  { %168 = vadd.xlane.f32.xlu1 %v167_v31  ;;  %171 = vadd.xlane.f32.xlu0 %v170_v38  ;;  %v87_v39 = vpop.xlane.xlu0 %86  ;;  %v90_v40 = vpop.xlane.xlu1 %89  ;;  %v7146_v38 = vld [vmem:[%s8791_s2] ss:$0 sm:$0xff] }
  0xad   :  { %v106_v42 = vmul.f32 0.03125, %v87_v39  ;;  %v107_v43 = vmul.f32 0.03125, %v90_v40  ;;  %v136_v46 = vmul.f32 %v7100_v35, %v7100_v35  ;;  %v137_v24 = vmul.f32 %v7103_v21, %v7103_v21 }
  0xaf   :  { %v7112_v47 = vsub.f32 %v7024_v28, %v106_v42  ;;  %v7115_v25 = vsub.f32 %v7029_v29, %v107_v43  ;;  %v176_v48 = vsel %vm42_vm0, %v136_v46, 0.0  ;;  %v179_v49 = vsel %vm42_vm0, %v137_v24, 0.0  ;;  %v298_v29 = vld [vmem:[%s8789_s3] sm:$0xff] }
  0xb0   :  { %174 = vadd.xlane.f32.xlu1 %v173_v41  ;;  %177 = vadd.xlane.f32.xlu0 %v176_v48  ;;  %v5871_v56 = vpack.c.bf16 %v299_v53, %v298_v29 }
  0xb1   :  { %v138_v50 = vmul.f32 %v7112_v47, %v7112_v47  ;;  %v139_v51 = vmul.f32 %v7115_v25, %v7115_v25 }
  0xb2   :  { %5872 = vmatprep.subr.bf16.mxu0 %v5871_v56 }
  0xb3   :  { %v182_v52 = vsel %vm42_vm0, %v138_v50, 0.0  ;;  %v185_v28 = vsel %vm42_vm0, %v139_v51, 0.0  ;;  %5874 = vmatpush3.bf16.msra.mxu0 %v5871_v56 }
  0xb4   :  { %180 = vadd.xlane.f32.xlu1 %v179_v49  ;;  %183 = vadd.xlane.f32.xlu0 %v182_v52 }
  0xb5   :  { %5876 = vmatprep.subr.bf16.mxu0 %v5875_v59 }
  0xb7   :  { %5878 = vmatpush3.bf16.msra.mxu0 %v5875_v59 }
  0xb8   :  { %186 = vadd.xlane.f32.xlu1 %v185_v28 }
 0x125   :  { %v142_v60 = vpop.xlane.xlu0 %141 }
 0x126   :  { %v188_v61 = vmul.f32 0.03125, %v142_v60 }
 0x128   :  { %v204_v62 = vadd.f32 1e-05, %v188_v61 }
 0x129   :  { %v145_v63 = vpop.xlane.xlu1 %144  ;;  %v148_v2 = vpop.xlane.xlu0 %147 }
 0x12a   :  { %6586 = vrsqrt.f32 %v204_v62  ;;  %v189_v3 = vmul.f32 0.03125, %v145_v63  ;;  %v190_v4 = vmul.f32 0.03125, %v148_v2 }
 0x12c   :  { %v205_v5 = vadd.f32 1e-05, %v189_v3  ;;  %v206_v6 = vadd.f32 1e-05, %v190_v4 }
 0x12d   :  { %v151_v7 = vpop.xlane.xlu1 %150  ;;  %v154_v8 = vpop.xlane.xlu0 %153 }
 0x12e   :  { %6588 = vrsqrt.f32 %v205_v5  ;;  %v191_v9 = vmul.f32 0.03125, %v151_v7  ;;  %v192_v12 = vmul.f32 0.03125, %v154_v8 }
 0x12f   :  { %6590 = vrsqrt.f32 %v206_v6 }
 0x130   :  { %v207_v13 = vadd.f32 1e-05, %v191_v9  ;;  %v208_v14 = vadd.f32 1e-05, %v192_v12 }
 0x131   :  { %v157_v15 = vpop.xlane.xlu1 %156  ;;  %v160_v18 = vpop.xlane.xlu0 %159 }
 0x132   :  { %6592 = vrsqrt.f32 %v207_v13  ;;  %v193_v19 = vmul.f32 0.03125, %v157_v15  ;;  %v194_v22 = vmul.f32 0.03125, %v160_v18 }
 0x133   :  { %6594 = vrsqrt.f32 %v208_v14 }
 0x134   :  { %v6587_v16 = vpop.eup %6586  ;;  %v209_v26 = vadd.f32 1e-05, %v193_v19  ;;  %v210_v27 = vadd.f32 1e-05, %v194_v22 }
 0x135   :  { %v163_v31 = vpop.xlane.xlu1 %162  ;;  %v166_v32 = vpop.xlane.xlu0 %165  ;;  %v236_v33 = vmul.f32 %v6587_v16, %v7035_v36 }
 0x136   :  { %6596 = vrsqrt.f32 %v209_v26  ;;  %v195_v34 = vmul.f32 0.03125, %v163_v31  ;;  %v196_v20 = vmul.f32 0.03125, %v166_v32 }
 0x137   :  { %6598 = vrsqrt.f32 %v210_v27  ;;  %v259_v39 = vmul.f32 %v7140_v30, %v236_v33 }
 0x138   :  { %v6589_v40 = vpop.eup %6588  ;;  %v211_v41 = vadd.f32 1e-05, %v195_v34  ;;  %v212_v42 = vadd.f32 1e-05, %v196_v20 }
 0x139   :  { %v6591_v43 = vpop.eup %6590  ;;  %v169_v46 = vpop.xlane.xlu1 %168  ;;  %v282_v48 = vadd.f32 %v7146_v38, %v259_v39  ;;  %v237_v36 = vmul.f32 %v6589_v40, %v7043_v44 }
 0x13a   :  { %v172_v24 = vpop.xlane.xlu0 %171  ;;  %6600 = vrsqrt.f32 %v211_v41  ;;  %v197_v49 = vmul.f32 0.03125, %v169_v46  ;;  %v238_v51 = vmul.f32 %v6591_v43, %v7037_v37 }
 0x13b   :  { %v198_v50 = vmul.f32 0.03125, %v172_v24  ;;  %6602 = vrsqrt.f32 %v212_v42  ;;  %5295 = vmatprep.mubr.msk.f32.mxu0 %vm42_vm0, %v282_v48  ;;  %v260_v52 = vmul.f32 %v7140_v30, %v237_v36 }
 0x13c   :  { %v6593_v28 = vpop.eup %6592  ;;  %v213_v29 = vadd.f32 1e-05, %v197_v49  ;;  %v261_v56 = vmul.f32 %v7140_v30, %v238_v51 }
 0x13d   :  { %v214_v53 = vadd.f32 1e-05, %v198_v50  ;;  %v6595_v57 = vpop.eup %6594  ;;  %v175_v58 = vpop.xlane.xlu1 %174  ;;  %v283_v44 = vadd.f32 %v7146_v38, %v260_v52  ;;  %v239_v60 = vmul.f32 %v6593_v28, %v7045_v45 }
 0x13e   :  { %v178_v59 = vpop.xlane.xlu0 %177  ;;  %6604 = vrsqrt.f32 %v213_v29  ;;  %v199_v61 = vmul.f32 0.03125, %v175_v58  ;;  %v284_v62 = vadd.f32 %v7146_v38, %v261_v56  ;;  %v240_v2 = vmul.f32 %v6595_v57, %v7053_v54 }
 0x13f   :  { %v200_v37 = vmul.f32 0.03125, %v178_v59  ;;  %6606 = vrsqrt.f32 %v214_v53  ;;  %5296 = vmatmul.mubr.msk.f32.vlgmr.msra.gmra.mrb[0].mxu0 %vm42_vm0, %v283_v44  ;;  %v262_v63 = vmul.f32 %v7140_v30, %v239_v60 }
 0x140   :  { %v6597_v3 = vpop.eup %6596  ;;  %v215_v4 = vadd.f32 1e-05, %v199_v61  ;;  %5298 = vmatprep.mubr.msk.f32.mxu0 %vm42_vm0, %v284_v62  ;;  %v263_v9 = vmul.f32 %v7140_v30, %v240_v2  ;;  %v4669_v62 = vld [vmem:[%s8792_s4] ss:$0 sm:$0xff]  ;;  %s6891_s4 = smov 64  }
 0x141   :  { %v216_v5 = vadd.f32 1e-05, %v200_v37  ;;  %v6599_v6 = vpop.eup %6598  ;;  %v181_v7 = vpop.xlane.xlu1 %180  ;;  %v285_v8 = vadd.f32 %v7146_v38, %v262_v63  ;;  %v241_v12 = vmul.f32 %v6597_v3, %v7055_v55 }
 0x142   :  { %v184_v45 = vpop.xlane.xlu0 %183  ;;  %6608 = vrsqrt.f32 %v215_v4  ;;  %v201_v13 = vmul.f32 0.03125, %v181_v7  ;;  %v242_v15 = vmul.f32 %v6599_v6, %v7064_v0  ;;  %v286_v54 = vadd.f32 %v7146_v38, %v263_v9 }
 0x143   :  { %v202_v14 = vmul.f32 0.03125, %v184_v45  ;;  %6610 = vrsqrt.f32 %v216_v5  ;;  %5299 = vmatmul.mubr.msk.f32.gmra.mrb[2].mxu0 %vm42_vm0, %v285_v8  ;;  %v264_v18 = vmul.f32 %v7140_v30, %v241_v12 }
 0x144   :  { %v6601_v19 = vpop.eup %6600  ;;  %v217_v22 = vadd.f32 1e-05, %v201_v13  ;;  %v265_v26 = vmul.f32 %v7140_v30, %v242_v15  ;;  %5301 = vmatprep.mubr.msk.f32.mxu0 %vm42_vm0, %v286_v54 }
 0x145   :  { %v218_v16 = vadd.f32 1e-05, %v202_v14  ;;  %v6603_v27 = vpop.eup %6602  ;;  %v187_v55 = vpop.xlane.xlu1 %186  ;;  %v287_v31 = vadd.f32 %v7146_v38, %v264_v18  ;;  %v243_v0 = vmul.f32 %v6601_v19, %v7067_v1 }
 0x146   :  { %6612 = vrsqrt.f32 %v217_v22  ;;  %v203_v32 = vmul.f32 0.03125, %v187_v55  ;;  %v288_v33 = vadd.f32 %v7146_v38, %v265_v26  ;;  %v244_v34 = vmul.f32 %v6603_v27, %v7076_v10 }
 0x147   :  { %6614 = vrsqrt.f32 %v218_v16  ;;  %5302 = vmatmul.mubr.msk.f32.gmra.mrb[4].mxu0 %vm42_vm0, %v287_v31  ;;  %v266_v20 = vmul.f32 %v7140_v30, %v243_v0 }
 0x148   :  { %v6605_v39 = vpop.eup %6604  ;;  %v219_v40 = vadd.f32 1e-05, %v203_v32  ;;  %5304 = vmatprep.mubr.msk.f32.mxu0 %vm42_vm0, %v288_v33  ;;  %v267_v41 = vmul.f32 %v7140_v30, %v244_v34 }
 0x149   :  { %v6607_v42 = vpop.eup %6606  ;;  %v289_v1 = vadd.f32 %v7146_v38, %v266_v20  ;;  %v245_v43 = vmul.f32 %v6605_v39, %v7079_v11 }
 0x14a   :  { %6616 = vrsqrt.f32 %v219_v40  ;;  %v290_v46 = vadd.f32 %v7146_v38, %v267_v41  ;;  %v246_v10 = vmul.f32 %v6607_v42, %v7088_v23 }
 0x14b   :  { %5305 = vmatmul.mubr.msk.f32.gmra.mrb[6].mxu0 %vm42_vm0, %v289_v1  ;;  %v268_v24 = vmul.f32 %v7140_v30, %v245_v43 }
 0x14c   :  { %v6609_v48 = vpop.eup %6608  ;;  %5307 = vmatprep.mubr.msk.f32.mxu0 %vm42_vm0, %v290_v46  ;;  %v269_v36 = vmul.f32 %v7140_v30, %v246_v10 }
 0x14d   :  { %v6611_v49 = vpop.eup %6610  ;;  %v291_v50 = vadd.f32 %v7146_v38, %v268_v24  ;;  %v247_v51 = vmul.f32 %v6609_v48, %v7091_v17 }
 0x14e   :  { %v292_v11 = vadd.f32 %v7146_v38, %v269_v36  ;;  %v248_v52 = vmul.f32 %v6611_v49, %v7100_v35 }
 0x14f   :  { %5308 = vmatmul.mubr.msk.f32.gmra.mrb[8].mxu0 %vm42_vm0, %v291_v50  ;;  %v270_v23 = vmul.f32 %v7140_v30, %v247_v51 }
 0x150   :  { %v6613_v28 = vpop.eup %6612  ;;  %5310 = vmatprep.mubr.msk.f32.mxu0 %vm42_vm0, %v292_v11  ;;  %v271_v29 = vmul.f32 %v7140_v30, %v248_v52 }
 0x151   :  { %v6615_v53 = vpop.eup %6614  ;;  %v293_v56 = vadd.f32 %v7146_v38, %v270_v23  ;;  %v249_v57 = vmul.f32 %v6613_v28, %v7103_v21 }
 0x152   :  { %v294_v17 = vadd.f32 %v7146_v38, %v271_v29  ;;  %v250_v58 = vmul.f32 %v6615_v53, %v7112_v47 }
 0x153   :  { %5311 = vmatmul.mubr.msk.f32.gmra.mrb[10].mxu0 %vm42_vm0, %v293_v56  ;;  %v272_v35 = vmul.f32 %v7140_v30, %v249_v57 }
 0x154   :  { %v6617_v59 = vpop.eup %6616  ;;  %5313 = vmatprep.mubr.msk.f32.mxu0 %vm42_vm0, %v294_v17  ;;  %v273_v44 = vmul.f32 %v7140_v30, %v250_v58 }
 0x155   :  { %v295_v60 = vadd.f32 %v7146_v38, %v272_v35  ;;  %v251_v61 = vmul.f32 %v6617_v59, %v7115_v25 }
 0x156   :  { %v296_v37 = vadd.f32 %v7146_v38, %v273_v44 }
 0x157   :  { %5314 = vmatmul.mubr.msk.f32.gmra.mrb[12].mxu0 %vm42_vm0, %v295_v60  ;;  %v274_v21 = vmul.f32 %v7140_v30, %v251_v61 }
 0x158   :  { %5316 = vmatprep.mubr.msk.f32.mxu0 %vm42_vm0, %v296_v37 }
 0x159   :  { %v297_v47 = vadd.f32 %v7146_v38, %v274_v21 }
 0x15b   :  { %5317 = vmatmul.mubr.msk.f32.gmra.mrb[14].mxu0 %vm42_vm0, %v297_v47 }
 0x212   :  { %v5297_v63 = vpop.f32.mrb[0].mxu0 }
 0x213   :  { %v7214_v2 = vadd.f32 %v5297_v63, %v4669_v62  ;;  %v423_v25 = vpop.f32.mrb[1].mxu0 }
 0x214   :  { %v424_v3 = vadd.f32 %v4669_v62, %v423_v25 }
 0x215   :  { %v7310_v49 = vmul.f32 0.35355338, %v7214_v2 }
 0x216   :  { %v5300_v4 = vpop.f32.mrb[2].mxu0  ;;  %v7217_v5 = vpack.i.bf16 %v7214_v2, %v424_v3  ;;  %v7219_v30 = vmul.f32 0.35355338, %v424_v3 }
 0x217   :  { %v7221_v6 = vadd.f32 %v5300_v4, %v4669_v62  ;;  %v433_v38 = vpop.f32.mrb[3].mxu0 }
 0x218   :  { %8811 = vst [vmem:[#allocation2_spill] sm:$0xff] %v7219_v30  ;;  %v7223_v7 = vadd.f32 %v4669_v62, %v433_v38  ;;  %6267 = vrot.lane.b32.xlu0 %v7217_v5, %s6890_s21  ;;  %5335 = vmatprep.mubr.msk.f32.mxu1 %vm542_vm1, %v7219_v30 }
 0x219   :  { %v7316_v50 = vmul.f32 0.35355338, %v7221_v6 }
 0x21a   :  { %v5303_v45 = vpop.f32.mrb[4].mxu0  ;;  %v7231_v8 = vpack.i.bf16 %v7221_v6, %v7223_v7  ;;  %v7323_v51 = vmul.f32 0.35355338, %v7223_v7 }
 0x21b   :  { %v7233_v9 = vadd.f32 %v5303_v45, %v4669_v62  ;;  %v443_v12 = vpop.f32.mrb[5].mxu0 }
 0x21c   :  { %v7235_v13 = vadd.f32 %v4669_v62, %v443_v12  ;;  %6272 = vrot.lane.b32.xlu1 %v7231_v8, %s6890_s21  ;;  %8812 = vst [vmem:[#allocation3_spill] sm:$0xff] %v7323_v51 }
 0x21e   :  { %v5306_v14 = vpop.f32.mrb[6].mxu0  ;;  %v7241_v15 = vpack.i.bf16 %v7233_v9, %v7235_v13 }
 0x21f   :  { %v7243_v54 = vadd.f32 %v5306_v14, %v4669_v62  ;;  %v453_v18 = vpop.f32.mrb[7].mxu0 }
 0x220   :  { %v7245_v19 = vadd.f32 %v4669_v62, %v453_v18  ;;  %6277 = vrot.lane.b32.xlu1 %v7241_v15, %s6890_s21 }
 0x222   :  { %v5309_v22 = vpop.f32.mrb[8].mxu0  ;;  %v7251_v16 = vpack.i.bf16 %v7243_v54, %v7245_v19 }
 0x223   :  { %v7253_v26 = vadd.f32 %v5309_v22, %v4669_v62  ;;  %v463_v27 = vpop.f32.mrb[9].mxu0 }
 0x224   :  { %v464_v55 = vadd.f32 %v4669_v62, %v463_v27  ;;  %6287 = vrot.lane.b32.xlu0 %v7251_v16, %s6890_s21 }
 0x226   :  { %v5312_v31 = vpop.f32.mrb[10].mxu0  ;;  %v7258_v0 = vpack.i.bf16 %v7253_v26, %v464_v55  ;;  %v7260_v32 = vmul.f32 0.35355338, %v464_v55 }
 0x227   :  { %v7262_v33 = vadd.f32 %v5312_v31, %v4669_v62  ;;  %v473_v34 = vpop.f32.mrb[11].mxu0 }
 0x228   :  { %v7264_v20 = vadd.f32 %v4669_v62, %v473_v34  ;;  %6282 = vrot.lane.b32.xlu1 %v7258_v0, %s6890_s21  ;;  %5363 = vmatprep.mubr.msk.f32.mxu0 %vm542_vm1, %v7260_v32 }
 0x22a   :  { %v5315_v39 = vpop.f32.mrb[12].mxu0  ;;  %v7272_v40 = vpack.i.bf16 %v7262_v33, %v7264_v20 }
 0x22b   :  { %v7274_v41 = vadd.f32 %v5315_v39, %v4669_v62  ;;  %v483_v42 = vpop.f32.mrb[13].mxu0 }
 0x22c   :  { %v7276_v1 = vadd.f32 %v4669_v62, %v483_v42  ;;  %6292 = vrot.lane.b32.xlu1 %v7272_v40, %s6890_s21 }
 0x22e   :  { %v5318_v43 = vpop.f32.mrb[14].mxu0  ;;  %v7282_v46 = vpack.i.bf16 %v7274_v41, %v7276_v1 }
 0x22f   :  { %v7284_v10 = vadd.f32 %v5318_v43, %v4669_v62  ;;  %v493_v24 = vpop.f32.mrb[15].mxu0 }
 0x230   :  { %v7286_v48 = vadd.f32 %v4669_v62, %v493_v24  ;;  %6297 = vrot.lane.b32.xlu0 %v7282_v46, %s6890_s21 }
 0x232   :  { %v7292_v36 = vpack.i.bf16 %v7284_v10, %v7286_v48 }
 0x234   :  { %6307 = vrot.lane.b32.xlu0 %v7217_v5, %s6891_s4  ;;  %6302 = vrot.lane.b32.xlu1 %v7292_v36, %s6890_s21 }
 0x238   :  { %6322 = vrot.lane.b32.xlu0 %v7251_v16, %s6891_s4  ;;  %6312 = vrot.lane.b32.xlu1 %v7231_v8, %s6891_s4 }
 0x23c   :  { %6327 = vrot.lane.b32.xlu0 %v7258_v0, %s6891_s4  ;;  %6317 = vrot.lane.b32.xlu1 %v7241_v15, %s6891_s4 }
 0x240   :  { %6337 = vrot.lane.b32.xlu0 %v7217_v5, %s6892_s22  ;;  %6332 = vrot.lane.b32.xlu1 %v7272_v40, %s6891_s4 }
 0x244   :  { %6342 = vrot.lane.b32.xlu0 %v7282_v46, %s6891_s4  ;;  %6347 = vrot.lane.b32.xlu1 %v7231_v8, %s6892_s22 }
 0x248   :  { %6352 = vrot.lane.b32.xlu0 %v7241_v15, %s6892_s22  ;;  %6357 = vrot.lane.b32.xlu1 %v7258_v0, %s6892_s22 }
 0x24c   :  { %6362 = vrot.lane.b32.xlu0 %v7251_v16, %s6892_s22  ;;  %6367 = vrot.lane.b32.xlu1 %v7272_v40, %s6892_s22 }
 0x250   :  { %1343 = vrot.lane.b32.xlu0 %v7310_v49, %s6893_s23  ;;  %6372 = vrot.lane.b32.xlu1 %v7282_v46, %s6892_s22 }
 0x254   :  { %1347 = vrot.lane.b32.xlu0 %v7316_v50, %s6893_s23  ;;  %1341 = vrot.lane.b32.xlu1 %v7219_v30, %s6893_s23 }
 0x258   :  { %1345 = vrot.lane.b32.xlu1 %v7323_v51, %s6893_s23 }
 0x25c   :  { %6377 = vrot.lane.b32.xlu1 %v7292_v36, %s6891_s4 }
 0x260   :  { %6382 = vrot.lane.b32.xlu1 %v7292_v36, %s6892_s22 }
 0x28a   :  { %v6268_v11 = vpop.permute.xlu0 %6267 }
 0x28b   :  { %v6270_v52 = vunpack.i.h.bf16 %v6268_v11  ;;  %v6269_v23 = vunpack.i.l.bf16 %v6268_v11 }
 0x28d   :  { %v5879_v29 = vpack.c.bf16 %v6270_v52, %v6269_v23 }
 0x28e   :  { %v6273_v53 = vpop.permute.xlu1 %6272 }
 0x28f   :  { %v6275_v56 = vunpack.i.h.bf16 %v6273_v53  ;;  %v6274_v57 = vunpack.i.l.bf16 %v6273_v53  ;;  %5881 = vmatprep.subr.msk.bf16.mxu1 %vm7331_vm2, %v5879_v29 }
 0x290   :  { %5884 = vmatpush3.bf16.xpose.msk.msra.mxu1 %vm7331_vm2, %v5879_v29 }
 0x291   :  { %v5885_v17 = vpack.c.bf16 %v6275_v56, %v6274_v57 }
 0x292   :  { %v6278_v58 = vpop.permute.xlu1 %6277 }
 0x293   :  { %v6280_v35 = vunpack.i.h.bf16 %v6278_v58  ;;  %v6279_v59 = vunpack.i.l.bf16 %v6278_v58  ;;  %5887 = vmatprep.subr.msk.bf16.mxu1 %vm7331_vm2, %v5885_v17 }
 0x295   :  { %v5891_v44 = vpack.c.bf16 %v6280_v35, %v6279_v59 }
 0x296   :  { %v6288_v60 = vpop.permute.xlu0 %6287 }
 0x297   :  { %v6290_v37 = vunpack.i.h.bf16 %v6288_v60  ;;  %v6289_v21 = vunpack.i.l.bf16 %v6288_v60 }
 0x298   :  { %5890 = vmatpush3.bf16.xpose.msk.msra.mxu1 %vm7331_vm2, %v5885_v17  ;;  %v7370_v17 = vmul.f32 0.35355338, %v7235_v13  ;;  %v7382_v13 = vmul.f32 0.35355338, %v7245_v19 }
 0x299   :  { %5893 = vmatprep.subr.msk.bf16.mxu1 %vm7331_vm2, %v5891_v44  ;;  %v5897_v25 = vpack.c.bf16 %v6290_v37, %v6289_v21  ;;  %v7377_v37 = vmul.f32 0.35355338, %v7233_v9 }
 0x29a   :  { %v6283_v61 = vpop.permute.xlu1 %6282  ;;  %8815 = vst [vmem:[#allocation4_spill] sm:$0xff] %v7370_v17 }
 0x29b   :  { %v6285_v47 = vunpack.i.h.bf16 %v6283_v61  ;;  %v6284_v62 = vunpack.i.l.bf16 %v6283_v61  ;;  %8816 = vst [vmem:[#allocation5_spill] sm:$0xff] %v7377_v37 }
 0x29d   :  { %v5903_v63 = vpack.c.bf16 %v6285_v47, %v6284_v62 }
 0x29e   :  { %v6293_v2 = vpop.permute.xlu1 %6292 }
 0x29f   :  { %v6295_v3 = vunpack.i.h.bf16 %v6293_v2  ;;  %v6294_v4 = vunpack.i.l.bf16 %v6293_v2  ;;  %5905 = vmatprep.subr.msk.bf16.mxu0 %vm7331_vm2, %v5903_v63  ;;  %v7391_v2 = vmul.f32 0.35355338, %v7243_v54 }
 0x2a0   :  { %5896 = vmatpush3.bf16.xpose.msk.msra.mxu1 %vm7331_vm2, %v5891_v44  ;;  %5908 = vmatpush3.bf16.xpose.msk.msra.mxu0 %vm7331_vm2, %v5903_v63 }
 0x2a1   :  { %v5909_v6 = vpack.c.bf16 %v6295_v3, %v6294_v4  ;;  %5899 = vmatprep.subr.msk.bf16.mxu1 %vm7331_vm2, %v5897_v25  ;;  %8817 = vst [vmem:[#allocation6_spill] sm:$0xff] %v7391_v2 }
 0x2a2   :  { %v6298_v38 = vpop.permute.xlu0 %6297 }
 0x2a3   :  { %v6300_v7 = vunpack.i.h.bf16 %v6298_v38  ;;  %v6299_v45 = vunpack.i.l.bf16 %v6298_v38  ;;  %5911 = vmatprep.subr.msk.bf16.mxu0 %vm7331_vm2, %v5909_v6  ;;  %v7398_v38 = vmul.f32 0.35355338, %v7253_v26  ;;  %v7413_v26 = vmul.f32 0.35355338, %v7262_v33 }
 0x2a4   :  { %v7430_v33 = vmul.f32 0.35355338, %v7286_v48 }
 0x2a5   :  { %v5915_v18 = vpack.c.bf16 %v6300_v7, %v6299_v45  ;;  %8818 = vst [vmem:[#allocation7_spill] sm:$0xff] %v7398_v38  ;;  %v7406_v7 = vmul.f32 0.35355338, %v7264_v20  ;;  %8819 = vst [vmem:[#allocation8_spill] sm:$0xff] %v7413_v26 }
 0x2a6   :  { %v6303_v12 = vpop.permute.xlu1 %6302  ;;  %v6308_v14 = vpop.permute.xlu0 %6307  ;;  %8822 = vst [vmem:[#allocation11_spill] sm:$0xff] %v7430_v33 }
 0x2a7   :  { %v6310_v22 = vunpack.i.h.bf16 %v6308_v14  ;;  %v6309_v27 = vunpack.i.l.bf16 %v6308_v14  ;;  %v6305_v39 = vunpack.i.h.bf16 %v6303_v12  ;;  %v6304_v42 = vunpack.i.l.bf16 %v6303_v12 }
 0x2a8   :  { %5902 = vmatpush3.bf16.xpose.msk.msra.mxu1 %vm7331_vm2, %v5897_v25  ;;  %5914 = vmatpush3.bf16.xpose.msk.msra.mxu0 %vm7331_vm2, %v5909_v6 }
 0x2a9   :  { %5917 = vmatprep.subr.msk.bf16.mxu0 %vm7331_vm2, %v5915_v18  ;;  %v5927_v55 = vpack.c.bf16 %v6310_v22, %v6309_v27  ;;  %v5921_v52 = vpack.c.bf16 %v6305_v39, %v6304_v42  ;;  %v7418_v22 = vmul.f32 0.35355338, %v7276_v1  ;;  %v7425_v27 = vmul.f32 0.35355338, %v7274_v41 }
 0x2aa   :  { %v6313_v31 = vpop.permute.xlu1 %6312  ;;  %v6323_v34 = vpop.permute.xlu0 %6322  ;;  %v7437_v1 = vmul.f32 0.35355338, %v7284_v10 }
 0x2ab   :  { %5928 = vmatprep.subr.bf16.mxu1 %v5927_v55  ;;  %v6315_v43 = vunpack.i.h.bf16 %v6313_v31  ;;  %v6314_v24 = vunpack.i.l.bf16 %v6313_v31  ;;  %v6325_v59 = vunpack.i.h.bf16 %v6323_v34  ;;  %v6324_v44 = vunpack.i.l.bf16 %v6323_v34  ;;  %8820 = vst [vmem:[#allocation9_spill] sm:$0xff] %v7418_v22  ;;  %8821 = vst [vmem:[#allocation10_spill] sm:$0xff] %v7425_v27 }
 0x2ac   :  { %8823 = vst [vmem:[#allocation12_spill] sm:$0xff] %v7437_v1 }
 0x2ad   :  { %v5931_v56 = vpack.c.bf16 %v6315_v43, %v6314_v24  ;;  %v5939_v9 = vpack.c.bf16 %v6325_v59, %v6324_v44 }
 0x2ae   :  { %v6318_v11 = vpop.permute.xlu1 %6317  ;;  %v6328_v23 = vpop.permute.xlu0 %6327 }
 0x2af   :  { %5336 = vmatmul.mubr.msk.f32.vlgmr.msra.gmra.mrb[0].mxu1 %vm542_vm1, %v7310_v49  ;;  %v6320_v29 = vunpack.i.h.bf16 %v6318_v11  ;;  %v6319_v53 = vunpack.i.l.bf16 %v6318_v11  ;;  %v6330_v58 = vunpack.i.h.bf16 %v6328_v23  ;;  %v6329_v35 = vunpack.i.l.bf16 %v6328_v23 }
 0x2b0   :  { %5338 = vmatprep.mubr.msk.f32.mxu1 %vm542_vm1, %v7323_v51  ;;  %5920 = vmatpush3.bf16.xpose.msk.msra.mxu0 %vm7331_vm2, %v5915_v18 }
 0x2b1   :  { %5930 = vmatpush3.bf16.msra.mxu1 %v5927_v55  ;;  %5923 = vmatprep.subr.msk.bf16.mxu0 %vm7331_vm2, %v5921_v52  ;;  %v5935_v60 = vpack.c.bf16 %v6320_v29, %v6319_v53  ;;  %v5943_v47 = vpack.c.bf16 %v6330_v58, %v6329_v35 }
 0x2b2   :  { %5932 = vmatprep.subr.bf16.mxu1 %v5931_v56  ;;  %v6333_v57 = vpop.permute.xlu1 %6332  ;;  %v6338_v61 = vpop.permute.xlu0 %6337 }
 0x2b3   :  { %5339 = vmatmul.mubr.msk.f32.gmra.mrb[2].mxu1 %vm542_vm1, %v7316_v50  ;;  %v6340_v62 = vunpack.i.h.bf16 %v6338_v61  ;;  %v6339_v63 = vunpack.i.l.bf16 %v6338_v61  ;;  %v6335_v25 = vunpack.i.h.bf16 %v6333_v57  ;;  %v6334_v3 = vunpack.i.l.bf16 %v6333_v57 }
 0x2b4   :  { %5341 = vmatprep.mubr.msk.f32.mxu1 %vm542_vm1, %v7370_v17 }
 0x2b5   :  { %5934 = vmatpush3.bf16.msra.mxu1 %v5931_v56  ;;  %v7395_v4 = vpack.c.bf16 %v6340_v62, %v6339_v63  ;;  %v5947_v14 = vpack.c.bf16 %v6335_v25, %v6334_v3 }
 0x2b6   :  { %5936 = vmatprep.subr.bf16.mxu1 %v5935_v60  ;;  %v7379_v21 = vpop.permute.xlu1 %6347  ;;  %v6343_v6 = vpop.permute.xlu0 %6342 }
 0x2b7   :  { %5342 = vmatmul.mubr.msk.f32.gmra.mrb[4].mxu1 %vm542_vm1, %v7377_v37  ;;  %v6345_v45 = vunpack.i.h.bf16 %v6343_v6  ;;  %v6344_v12 = vunpack.i.l.bf16 %v6343_v6 }
 0x2b8   :  { %5344 = vmatprep.mubr.msk.f32.mxu1 %vm542_vm1, %v7382_v13  ;;  %5926 = vmatpush3.bf16.xpose.msk.msra.mxu0 %vm7331_vm2, %v5921_v52 }
 0x2b9   :  { %5938 = vmatpush3.bf16.msra.mxu1 %v5935_v60  ;;  %5944 = vmatprep.subr.bf16.mxu0 %v5943_v47  ;;  %v5951_v20 = vpack.c.bf16 %v6345_v45, %v6344_v12 }
 0x2ba   :  { %5940 = vmatprep.subr.bf16.mxu1 %v5939_v9  ;;  %v6358_v19 = vpop.permute.xlu1 %6357 }
 0x2bb   :  { %5345 = vmatmul.mubr.msk.f32.gmra.mrb[6].mxu1 %vm542_vm1, %v7391_v2  ;;  %v6360_v34 = vunpack.i.h.bf16 %v6358_v19  ;;  %v6359_v39 = vunpack.i.l.bf16 %v6358_v19 }
 0x2bd   :  { %5942 = vmatpush3.bf16.msra.mxu1 %v5939_v9  ;;  %v7443_v24 = vpack.c.bf16 %v6360_v34, %v6359_v39 }
 0x2be   :  { %5961 = vmatprep.subr.msk.bf16.mxu1 %vm7331_vm2, %v7395_v4  ;;  %v7403_v54 = vpop.permute.xlu1 %6367 }
 0x2bf   :  { %5364 = vmatmul.mubr.msk.f32.vlgmr.msra.gmra.mrb[16].mxu0 %vm542_vm1, %v7398_v38 }
 0x2c0   :  { %5366 = vmatprep.mubr.msk.f32.mxu0 %vm542_vm1, %v7406_v7  ;;  %5946 = vmatpush3.bf16.msra.mxu0 %v5943_v47 }
 0x2c1   :  { %5948 = vmatprep.subr.bf16.mxu0 %v5947_v14 }
 0x2c2   :  { %v7415_v18 = vpop.permute.xlu1 %6372 }
 0x2c3   :  { %5367 = vmatmul.mubr.msk.f32.gmra.mrb[18].mxu0 %vm542_vm1, %v7413_v26 }
 0x2c4   :  { %5369 = vmatprep.mubr.msk.f32.mxu0 %vm542_vm1, %v7418_v22  ;;  %5950 = vmatpush3.bf16.msra.mxu0 %v5947_v14 }
 0x2c5   :  { %5952 = vmatprep.subr.bf16.mxu0 %v5951_v20 }
 0x2c6   :  { %v7427_v55 = vpop.permute.xlu1 %1341 }
 0x2c7   :  { %5370 = vmatmul.mubr.msk.f32.gmra.mrb[20].mxu0 %vm542_vm1, %v7425_v27 }
 0x2c8   :  { %5372 = vmatprep.mubr.msk.f32.mxu0 %vm542_vm1, %v7430_v33  ;;  %5954 = vmatpush3.bf16.msra.mxu0 %v5951_v20 }
 0x2ca   :  { %v7439_v31 = vpop.permute.xlu1 %1345 }
 0x2cb   :  { %5373 = vmatmul.mubr.msk.f32.gmra.mrb[22].mxu0 %vm542_vm1, %v7437_v1 }
 0x2ce   :  { %v6378_v41 = vpop.permute.xlu1 %6377 }
 0x2cf   :  { %v6380_v48 = vunpack.i.h.bf16 %v6378_v41  ;;  %v6379_v42 = vunpack.i.l.bf16 %v6378_v41 }
 0x2d1   :  { %v5955_v43 = vpack.c.bf16 %v6380_v48, %v6379_v42 }
 0x2d3   :  { %5956 = vmatprep.subr.bf16.mxu0 %v5955_v43 }
 0x2d4   :  { %5958 = vmatpush3.bf16.msra.mxu0 %v5955_v43 }
 0x2d5   :  { %5985 = vmatprep.subr.msk.bf16.mxu0 %vm7331_vm2, %v7443_v24 }
 0x382   :  { %v5337_v10 = vpop.f32.mrb[0].mxu1 }
 0x383   :  { %v649_v11 = vpop.f32.mrb[1].mxu1  ;;  %v861_v52 = vsel %vm857_vm3, %v5337_v10, -inf }
 0x384   :  { %862 = vmax.xlane.f32.xlu1 %v861_v52  ;;  %v858_v23 = vsel %vm857_vm3, %v649_v11, -inf  ;;  %v7504_v52 = vpop.permute.xlu0 %6352 }
 0x385   :  { %859 = vmax.xlane.f32.xlu0 %v858_v23 }
 0x386   :  { %v5340_v29 = vpop.f32.mrb[2].mxu1 }
 0x387   :  { %v659_v53 = vpop.f32.mrb[3].mxu1  ;;  %v867_v56 = vsel %vm857_vm3, %v5340_v29, -inf }
 0x388   :  { %868 = vmax.xlane.f32.xlu1 %v867_v56  ;;  %v864_v57 = vsel %vm857_vm3, %v659_v53, -inf  ;;  %v7506_v23 = vpop.permute.xlu0 %6362 }
 0x389   :  { %865 = vmax.xlane.f32.xlu0 %v864_v57  ;;  %v7510_v57 = vpop.permute.xlu1 %6382 }
 0x38a   :  { %v7452_v58 = vpop.f32.mrb[4].mxu1 }
 0x38b   :  { %v7454_v35 = vpop.f32.mrb[5].mxu1  ;;  %v873_v59 = vsel %vm857_vm3, %v7452_v58, -inf }
 0x38c   :  { %874 = vmax.xlane.f32.xlu1 %v873_v59  ;;  %v870_v44 = vsel %vm857_vm3, %v7454_v35, -inf  ;;  %v7508_v56 = vpop.permute.xlu0 %1343 }
 0x38d   :  { %871 = vmax.xlane.f32.xlu0 %v870_v44 }
 0x38e   :  { %v7460_v60 = vpop.f32.mrb[6].mxu1 }
 0x38f   :  { %v7462_v61 = vpop.f32.mrb[7].mxu1  ;;  %v879_v47 = vsel %vm857_vm3, %v7460_v60, -inf }
 0x390   :  { %880 = vmax.xlane.f32.xlu1 %v879_v47  ;;  %v876_v62 = vsel %vm857_vm3, %v7462_v61, -inf  ;;  %v7512_v59 = vpop.permute.xlu0 %1347 }
 0x391   :  { %877 = vmax.xlane.f32.xlu0 %v876_v62 }
 0x392   :  { %v7468_v63 = vpop.f32.mrb[16].mxu0 }
 0x393   :  { %v7470_v9 = vpop.f32.mrb[17].mxu0  ;;  %v885_v19 = vsel %vm857_vm3, %v7468_v63, -inf }
 0x394   :  { %v882_v45 = vsel %vm857_vm3, %v7470_v9, -inf }
 0x395   :  { %886 = vmax.xlane.f32.xlu0 %v885_v19 }
 0x396   :  { %v7474_v25 = vpop.f32.mrb[18].mxu0 }
 0x397   :  { %v7476_v3 = vpop.f32.mrb[19].mxu0  ;;  %v891_v6 = vsel %vm857_vm3, %v7474_v25, -inf }
 0x398   :  { %892 = vmax.xlane.f32.xlu1 %v891_v6  ;;  %v888_v41 = vsel %vm857_vm3, %v7476_v3, -inf }
 0x399   :  { %883 = vmax.xlane.f32.xlu0 %v882_v45 }
 0x39a   :  { %v7482_v12 = vpop.f32.mrb[20].mxu0 }
 0x39b   :  { %v7484_v14 = vpop.f32.mrb[21].mxu0  ;;  %v897_v20 = vsel %vm857_vm3, %v7482_v12, -inf }
 0x39c   :  { %898 = vmax.xlane.f32.xlu1 %v897_v20  ;;  %v894_v42 = vsel %vm857_vm3, %v7484_v14, -inf }
 0x39d   :  { %889 = vmax.xlane.f32.xlu0 %v888_v41 }
 0x39e   :  { %v7490_v34 = vpop.f32.mrb[22].mxu0 }
 0x39f   :  { %v7492_v39 = vpop.f32.mrb[23].mxu0  ;;  %v903_v48 = vsel %vm857_vm3, %v7490_v34, -inf }
 0x3a0   :  { %904 = vmax.xlane.f32.xlu1 %v903_v48  ;;  %v900_v43 = vsel %vm857_vm3, %v7492_v39, -inf }
 0x3a1   :  { %895 = vmax.xlane.f32.xlu0 %v894_v42 }
 0x3a5   :  { %901 = vmax.xlane.f32.xlu0 %v900_v43 }
 0x3b1   :  { %1351 = vrot.lane.b32.xlu1 %v7377_v37, %s6893_s23 }
 0x3bb   :  { %1349 = vrot.lane.b32.xlu0 %v7370_v17, %s6893_s23 }
 0x411   :  { %v863_v44 = vpop.xlane.xlu1 %862 }
 0x412   :  { %v907_v47 = vsub.f32 %v5337_v10, %v863_v44  ;;  %v860_v62 = vpop.xlane.xlu0 %859 }
 0x413   :  { %v906_v19 = vsub.f32 %v649_v11, %v860_v62 }
 0x414   :  { %v924_v6 = vmul.f32 1.442695, %v907_v47 }
 0x415   :  { %v922_v45 = vmul.f32 1.442695, %v906_v19  ;;  %v869_v20 = vpop.xlane.xlu1 %868 }
 0x416   :  { %6618 = vpow2.f32 %v924_v6  ;;  %v909_v41 = vsub.f32 %v5340_v29, %v869_v20  ;;  %v866_v48 = vpop.xlane.xlu0 %865 }
 0x417   :  { %6620 = vpow2.f32 %v922_v45  ;;  %v908_v42 = vsub.f32 %v659_v53, %v866_v48 }
 0x418   :  { %v928_v43 = vmul.f32 1.442695, %v909_v41 }
 0x419   :  { %v926_v37 = vmul.f32 1.442695, %v908_v42  ;;  %v875_v51 = vpop.xlane.xlu1 %874 }
 0x41a   :  { %6622 = vpow2.f32 %v928_v43  ;;  %v911_v30 = vsub.f32 %v7452_v58, %v875_v51  ;;  %v872_v17 = vpop.xlane.xlu0 %871 }
 0x41b   :  { %6624 = vpow2.f32 %v926_v37  ;;  %v910_v10 = vsub.f32 %v7454_v35, %v872_v17 }
 0x41c   :  { %v932_v44 = vmul.f32 1.442695, %v911_v30 }
 0x41d   :  { %v930_v11 = vmul.f32 1.442695, %v910_v10  ;;  %v881_v47 = vpop.xlane.xlu1 %880 }
 0x41e   :  { %6626 = vpow2.f32 %v932_v44  ;;  %v913_v62 = vsub.f32 %v7460_v60, %v881_v47  ;;  %v878_v29 = vpop.xlane.xlu0 %877 }
 0x41f   :  { %v912_v19 = vsub.f32 %v7462_v61, %v878_v29  ;;  %6628 = vpow2.f32 %v930_v11 }
 0x420   :  { %v7518_v53 = vpop.eup %6618  ;;  %v936_v6 = vmul.f32 1.442695, %v913_v62 }
 0x421   :  { %v7520_v45 = vpop.eup %6620  ;;  %v934_v51 = vmul.f32 1.442695, %v912_v19  ;;  %v957_v37 = vsel %vm857_vm3, %v7518_v53, 0.0 }
 0x422   :  { %6630 = vpow2.f32 %v936_v6  ;;  %958 = vadd.xlane.f32.xlu1 %v957_v37  ;;  %v887_v30 = vpop.xlane.xlu0 %886  ;;  %v954_v17 = vsel %vm857_vm3, %v7520_v45, 0.0 }
 0x423   :  { %v915_v58 = vsub.f32 %v7468_v63, %v887_v30  ;;  %955 = vadd.xlane.f32.xlu0 %v954_v17  ;;  %6632 = vpow2.f32 %v934_v51 }
 0x424   :  { %v7527_v35 = vpop.eup %6622 }
 0x425   :  { %v7529_v60 = vpop.eup %6624  ;;  %v940_v61 = vmul.f32 1.442695, %v915_v58  ;;  %v963_v20 = vsel %vm857_vm3, %v7527_v35, 0.0  ;;  %v893_v6 = vpop.xlane.xlu1 %892 }
 0x426   :  { %964 = vadd.xlane.f32.xlu1 %v963_v20  ;;  %v960_v41 = vsel %vm857_vm3, %v7529_v60, 0.0  ;;  %v884_v19 = vpop.xlane.xlu0 %883  ;;  %v917_v58 = vsub.f32 %v7474_v25, %v893_v6 }
 0x427   :  { %6634 = vpow2.f32 %v940_v61  ;;  %961 = vadd.xlane.f32.xlu0 %v960_v41  ;;  %v914_v37 = vsub.f32 %v7470_v9, %v884_v19 }
 0x428   :  { %v7535_v48 = vpop.eup %6626 }
 0x429   :  { %v969_v63 = vsel %vm857_vm3, %v7535_v48, 0.0  ;;  %v7539_v42 = vpop.eup %6628  ;;  %v899_v17 = vpop.xlane.xlu1 %898  ;;  %v938_v61 = vmul.f32 1.442695, %v914_v37 }
 0x42a   :  { %970 = vadd.xlane.f32.xlu1 %v969_v63  ;;  %v966_v10 = vsel %vm857_vm3, %v7539_v42, 0.0  ;;  %v890_v51 = vpop.xlane.xlu0 %889  ;;  %v919_v20 = vsub.f32 %v7482_v12, %v899_v17 }
 0x42b   :  { %v916_v30 = vsub.f32 %v7476_v3, %v890_v51  ;;  %6636 = vpow2.f32 %v938_v61 }
 0x42c   :  { %v7541_v43 = vpop.eup %6630 }
 0x42d   :  { %v975_v44 = vsel %vm857_vm3, %v7541_v43, 0.0  ;;  %v7547_v11 = vpop.eup %6632  ;;  %v942_v41 = vmul.f32 1.442695, %v916_v30 }
 0x42e   :  { %967 = vadd.xlane.f32.xlu1 %v966_v10  ;;  %976 = vadd.xlane.f32.xlu0 %v975_v44  ;;  %v972_v62 = vsel %vm857_vm3, %v7547_v11, 0.0  ;;  %v896_v63 = vpop.xlane.xlu0 %895  ;;  %v944_v10 = vmul.f32 1.442695, %v917_v58  ;;  %v948_v44 = vmul.f32 1.442695, %v919_v20 }
 0x42f   :  { %6638 = vpow2.f32 %v942_v41 }
 0x430   :  { %6640 = vpow2.f32 %v944_v10 }
 0x431   :  { %v7549_v47 = vpop.eup %6634  ;;  %6642 = vpow2.f32 %v948_v44 }
 0x432   :  { %973 = vadd.xlane.f32.xlu1 %v972_v62  ;;  %v981_v29 = vsel %vm857_vm3, %v7549_v47, 0.0  ;;  %v918_v62 = vsub.f32 %v7484_v14, %v896_v63  ;;  %v902_v41 = vpop.xlane.xlu0 %901 }
 0x433   :  { %982 = vadd.xlane.f32.xlu0 %v981_v29  ;;  %v905_v29 = vpop.xlane.xlu1 %904  ;;  %v920_v63 = vsub.f32 %v7492_v39, %v902_v41 }
 0x434   :  { %v921_v9 = vsub.f32 %v7490_v34, %v905_v29  ;;  %v946_v3 = vmul.f32 1.442695, %v918_v62 }
 0x435   :  { %v7565_v25 = vpop.eup %6636  ;;  %v950_v10 = vmul.f32 1.442695, %v920_v63 }
 0x436   :  { %v952_v19 = vmul.f32 1.442695, %v921_v9  ;;  %6644 = vpow2.f32 %v946_v3  ;;  %v978_v12 = vsel %vm857_vm3, %v7565_v25, 0.0  ;;  %v7610_v29 = vpop.permute.xlu0 %1349 }
 0x437   :  { %v7608_v62 = vpop.permute.xlu1 %1351 }
 0x438   :  { %6646 = vpow2.f32 %v952_v19 }
 0x439   :  { %v7567_v6 = vpop.eup %6638  ;;  %6648 = vpow2.f32 %v950_v10 }
 0x43a   :  { %v7571_v51 = vpop.eup %6640  ;;  %v984_v14 = vsel %vm857_vm3, %v7567_v6, 0.0 }
 0x43b   :  { %v7575_v37 = vpop.eup %6642  ;;  %v987_v34 = vsel %vm857_vm3, %v7571_v51, 0.0 }
 0x43c   :  { %v993_v30 = vsel %vm857_vm3, %v7575_v37, 0.0 }
 0x440   :  { %v7581_v17 = vpop.eup %6644 }
 0x441   :  { %v990_v58 = vsel %vm857_vm3, %v7581_v17, 0.0 }
 0x442   :  { %v7585_v61 = vpop.eup %6646 }
 0x443   :  { %1355 = vrot.lane.b32.xlu1 %v7391_v2, %s6893_s23  ;;  %v999_v20 = vsel %vm857_vm3, %v7585_v61, 0.0  ;;  %v7602_v44 = vpop.eup %6648 }
 0x444   :  { %v996_v39 = vsel %vm857_vm3, %v7602_v44, 0.0 }
 0x449   :  { %1353 = vrot.lane.b32.xlu0 %v7382_v13, %s6893_s23 }
 0x467   :  { %979 = vadd.xlane.f32.xlu1 %v978_v12 }
 0x468   :  { %985 = vadd.xlane.f32.xlu0 %v984_v14 }
 0x46b   :  { %988 = vadd.xlane.f32.xlu1 %v987_v34 }
 0x46c   :  { %994 = vadd.xlane.f32.xlu0 %v993_v30 }
 0x470   :  { %991 = vadd.xlane.f32.xlu0 %v990_v58  ;;  %v6350_v58 = vunpack.i.h.bf16 %v7379_v21 }
 0x474   :  { %1000 = vadd.xlane.f32.xlu0 %v999_v20  ;;  %v6349_v20 = vunpack.i.l.bf16 %v7379_v21 }
 0x47c   :  { %1512 = vrot.lane.b32.xlu1 %v7398_v38, %s6893_s23 }
 0x48a   :  { %1510 = vrot.lane.b32.xlu0 %v7260_v32, %s6893_s23 }
 0x48e   :  { %1514 = vrot.lane.b32.xlu0 %v7406_v7, %s6893_s23 }
 0x492   :  { %1518 = vrot.lane.b32.xlu0 %v7418_v22, %s6893_s23 }
 0x496   :  { %1522 = vrot.lane.b32.xlu0 %v7430_v33, %s6893_s23 }
 0x49a   :  { %6387 = vrot.lane.b32.xlu0 %v7217_v5, %s6894_s24 }
 0x49e   :  { %6397 = vrot.lane.b32.xlu0 %v7241_v15, %s6894_s24 }
 0x4a0   :  { %997 = vadd.xlane.f32.xlu1 %v996_v39 }
 0x4af   :  { %v959_v9 = vpop.xlane.xlu1 %958 }
 0x4b0   :  { %6650 = vrcp.f32 %v959_v9  ;;  %v956_v3 = vpop.xlane.xlu0 %955 }
 0x4b1   :  { %6652 = vrcp.f32 %v956_v3  ;;  %1516 = vrot.lane.b32.xlu1 %v7413_v26, %s6893_s23 }
 0x4b3   :  { %v965_v19 = vpop.xlane.xlu1 %964 }
 0x4b4   :  { %6654 = vrcp.f32 %v965_v19  ;;  %v962_v12 = vpop.xlane.xlu0 %961  ;;  %v5965_v19 = vpack.c.bf16 %v6350_v58, %v6349_v20 }
 0x4b5   :  { %6656 = vrcp.f32 %v962_v12  ;;  %1520 = vrot.lane.b32.xlu1 %v7425_v27, %s6893_s23 }
 0x4b7   :  { %v971_v14 = vpop.xlane.xlu1 %970 }
 0x4b8   :  { %6658 = vrcp.f32 %v971_v14  ;;  %v6354_v14 = vunpack.i.l.bf16 %v7504_v52 }
 0x4b9   :  { %1524 = vrot.lane.b32.xlu1 %v7437_v1, %s6893_s23 }
 0x4ba   :  { %v6651_v34 = vpop.eup %6650 }
 0x4bb   :  { %v6653_v30 = vpop.eup %6652  ;;  %v968_v41 = vpop.xlane.xlu1 %967  ;;  %v1019_v39 = vmul.f32 %v6651_v34, %v7518_v53 }
 0x4bc   :  { %6660 = vrcp.f32 %v968_v41  ;;  %v977_v63 = vpop.xlane.xlu0 %976  ;;  %v1018_v10 = vmul.f32 %v6653_v30, %v7520_v45  ;;  %v6355_v45 = vunpack.i.h.bf16 %v7504_v52  ;;  %v6365_v52 = vunpack.i.h.bf16 %v7506_v23 }
 0x4bd   :  { %6392 = vrot.lane.b32.xlu1 %v7231_v8, %s6894_s24  ;;  %6662 = vrcp.f32 %v977_v63  ;;  %v6364_v41 = vunpack.i.l.bf16 %v7506_v23 }
 0x4be   :  { %v6655_v9 = vpop.eup %6654  ;;  %5391 = vmatprep.mubr.msk.f32.mxu1 %vm857_vm3, %v1018_v10  ;;  %v5971_v58 = vpack.c.bf16 %v6355_v45, %v6354_v14 }
 0x4bf   :  { %v6657_v3 = vpop.eup %6656  ;;  %v974_v12 = vpop.xlane.xlu1 %973  ;;  %5392 = vmatmul.mubr.msk.f32.vlgmr.msra.gmra.mrb[8].mxu1 %vm857_vm3, %v1019_v39  ;;  %v1021_v53 = vmul.f32 %v6655_v9, %v7527_v35  ;;  %v6369_v9 = vunpack.i.l.bf16 %v7403_v54 }
 0x4c0   :  { %6664 = vrcp.f32 %v974_v12  ;;  %5964 = vmatpush3.bf16.xpose.msk.msra.mxu1 %vm7331_vm2, %v7395_v4  ;;  %v1020_v21 = vmul.f32 %v6657_v3, %v7529_v60  ;;  %v983_v23 = vpop.xlane.xlu0 %982 }
 0x4c1   :  { %5967 = vmatprep.subr.msk.bf16.mxu1 %vm7331_vm2, %v5965_v19  ;;  %6666 = vrcp.f32 %v983_v23 }
 0x4c2   :  { %5394 = vmatprep.mubr.msk.f32.mxu1 %vm857_vm3, %v1020_v21  ;;  %v6659_v34 = vpop.eup %6658 }
 0x4c3   :  { %5395 = vmatmul.mubr.msk.f32.gmra.mrb[10].mxu1 %vm857_vm3, %v1021_v53  ;;  %v1023_v60 = vmul.f32 %v6659_v34, %v7535_v48  ;;  %v5977_v48 = vpack.c.bf16 %v6365_v52, %v6364_v41  ;;  %v6374_v34 = vunpack.i.l.bf16 %v7415_v18 }
 0x4c6   :  { %v6661_v30 = vpop.eup %6660 }
 0x4c7   :  { %v1022_v4 = vmul.f32 %v6661_v30, %v7539_v42  ;;  %v6663_v20 = vpop.eup %6662 }
 0x4c8   :  { %5970 = vmatpush3.bf16.xpose.msk.msra.mxu1 %vm7331_vm2, %v5965_v19  ;;  %v1025_v63 = vmul.f32 %v6663_v20, %v7541_v43  ;;  %v1356_v43 = vpop.permute.xlu1 %1355  ;;  %v6384_v20 = vunpack.i.l.bf16 %v7510_v57 }
 0x4c9   :  { %5973 = vmatprep.subr.msk.bf16.mxu1 %vm7331_vm2, %v5971_v58  ;;  %5397 = vmatprep.mubr.msk.f32.mxu1 %vm857_vm3, %v1022_v4 }
 0x4ca   :  { %v6665_v35 = vpop.eup %6664  ;;  %5398 = vmatmul.mubr.msk.f32.gmra.mrb[12].mxu1 %vm857_vm3, %v1023_v60  ;;  %v6385_v60 = vunpack.i.h.bf16 %v7510_v57 }
 0x4cb   :  { %v1024_v42 = vmul.f32 %v6665_v35, %v7547_v11 }
 0x4cd   :  { %5400 = vmatprep.mubr.msk.f32.mxu1 %vm857_vm3, %v1024_v42 }
 0x4ce   :  { %5401 = vmatmul.mubr.msk.f32.gmra.mrb[14].mxu1 %vm857_vm3, %v1025_v63 }
 0x4cf   :  { %5447 = vmatprep.mubr.msk.f32.mxu1 %vm542_vm1, %v7427_v55  ;;  %v1354_v55 = vpop.permute.xlu0 %1353 }
 0x4d0   :  { %5976 = vmatpush3.bf16.xpose.msk.msra.mxu1 %vm7331_vm2, %v5971_v58 }
 0x4d1   :  { %5979 = vmatprep.subr.msk.bf16.mxu1 %vm7331_vm2, %v5977_v48 }
 0x4d8   :  { %5982 = vmatpush3.bf16.xpose.msk.msra.mxu1 %vm7331_vm2, %v5977_v48 }
 0x4df   :  { %5448 = vmatmul.mubr.msk.f32.vlgmr.msra.gmra.mrb[16].mxu1 %vm542_vm1, %v7508_v56 }
 0x4e0   :  { %5450 = vmatprep.mubr.msk.f32.mxu1 %vm542_vm1, %v7439_v31 }
 0x4e3   :  { %5451 = vmatmul.mubr.msk.f32.gmra.mrb[18].mxu1 %vm542_vm1, %v7512_v59 }
 0x4e4   :  { %5453 = vmatprep.mubr.msk.f32.mxu1 %vm542_vm1, %v7610_v29  ;;  %v6667_v29 = vpop.eup %6666 }
 0x4e5   :  { %v1027_v12 = vmul.f32 %v6667_v29, %v7549_v47 }
 0x4e7   :  { %5454 = vmatmul.mubr.msk.f32.gmra.mrb[20].mxu1 %vm542_vm1, %v7608_v62  ;;  %v6370_v62 = vunpack.i.h.bf16 %v7403_v54 }
 0x4e8   :  { %5456 = vmatprep.mubr.msk.f32.mxu1 %vm542_vm1, %v1354_v55 }
 0x4e9   :  { %v5989_v14 = vpack.c.bf16 %v6370_v62, %v6369_v9 }
 0x4eb   :  { %5457 = vmatmul.mubr.msk.f32.gmra.mrb[22].mxu1 %vm542_vm1, %v1356_v43 }
 0x4f4   :  { %v980_v56 = vpop.xlane.xlu1 %979 }
 0x4f5   :  { %6668 = vrcp.f32 %v980_v56  ;;  %v986_v31 = vpop.xlane.xlu0 %985 }
 0x4f6   :  { %6670 = vrcp.f32 %v986_v31 }
 0x4f8   :  { %v989_v11 = vpop.xlane.xlu1 %988 }
 0x4f9   :  { %6672 = vrcp.f32 %v989_v11  ;;  %v995_v59 = vpop.xlane.xlu0 %994 }
 0x4fa   :  { %6674 = vrcp.f32 %v995_v59 }
 0x4fc   :  { %v1513_v63 = vpop.permute.xlu1 %1512 }
 0x4fd   :  { %v992_v10 = vpop.xlane.xlu0 %991 }
 0x4fe   :  { %6676 = vrcp.f32 %v992_v10 }
 0x4ff   :  { %v6669_v39 = vpop.eup %6668 }
 0x500   :  { %v6671_v3 = vpop.eup %6670  ;;  %v1026_v19 = vmul.f32 %v6669_v39, %v7565_v25 }
 0x501   :  { %v1001_v21 = vpop.xlane.xlu0 %1000  ;;  %v1028_v53 = vmul.f32 %v6671_v3, %v7567_v6  ;;  %v6375_v6 = vunpack.i.h.bf16 %v7415_v18 }
 0x502   :  { %5419 = vmatprep.mubr.msk.f32.mxu0 %vm857_vm3, %v1026_v19  ;;  %6678 = vrcp.f32 %v1001_v21 }
 0x503   :  { %v6673_v45 = vpop.eup %6672  ;;  %5420 = vmatmul.mubr.msk.f32.vlgmr.msra.gmra.mrb[24].mxu0 %vm857_vm3, %v1027_v12 }
 0x504   :  { %5988 = vmatpush3.bf16.xpose.msk.msra.mxu0 %vm7331_vm2, %v7443_v24  ;;  %5422 = vmatprep.mubr.msk.f32.mxu0 %vm857_vm3, %v1028_v53  ;;  %v1029_v54 = vmul.f32 %v6673_v45, %v7571_v51  ;;  %v6675_v25 = vpop.eup %6674  ;;  %v5995_v24 = vpack.c.bf16 %v6375_v6, %v6374_v34 }
 0x505   :  { %5991 = vmatprep.subr.msk.bf16.mxu0 %vm7331_vm2, %v5989_v14  ;;  %v1511_v47 = vpop.permute.xlu0 %1510  ;;  %v1031_v51 = vmul.f32 %v6675_v25, %v7575_v37 }
 0x507   :  { %5423 = vmatmul.mubr.msk.f32.gmra.mrb[26].mxu0 %vm857_vm3, %v1029_v54 }
 0x508   :  { %v6677_v30 = vpop.eup %6676 }
 0x509   :  { %v1515_v58 = vpop.permute.xlu0 %1514  ;;  %v1030_v4 = vmul.f32 %v6677_v30, %v7581_v17  ;;  %v6001_v17 = vpack.c.bf16 %v6385_v60, %v6384_v20 }
 0x50b   :  { %5425 = vmatprep.mubr.msk.f32.mxu0 %vm857_vm3, %v1030_v4 }
 0x50c   :  { %5994 = vmatpush3.bf16.xpose.msk.msra.mxu0 %vm7331_vm2, %v5989_v14  ;;  %v6679_v55 = vpop.eup %6678 }
 0x50d   :  { %5426 = vmatmul.mubr.msk.f32.gmra.mrb[28].mxu0 %vm857_vm3, %v1031_v51  ;;  %5997 = vmatprep.subr.msk.bf16.mxu0 %vm7331_vm2, %v5995_v24  ;;  %v1519_v18 = vpop.permute.xlu0 %1518  ;;  %v1033_v11 = vmul.f32 %v6679_v55, %v7585_v61 }
 0x511   :  { %v1523_v35 = vpop.permute.xlu0 %1522 }
 0x514   :  { %6000 = vmatpush3.bf16.xpose.msk.msra.mxu0 %vm7331_vm2, %v5995_v24 }
 0x515   :  { %6003 = vmatprep.subr.msk.bf16.mxu0 %vm7331_vm2, %v6001_v17  ;;  %v6388_v37 = vpop.permute.xlu0 %6387 }
 0x516   :  { %v6390_v52 = vunpack.i.h.bf16 %v6388_v37  ;;  %v6389_v41 = vunpack.i.l.bf16 %v6388_v37 }
 0x518   :  { %v6007_v42 = vpack.c.bf16 %v6390_v52, %v6389_v41 }
 0x519   :  { %v6398_v59 = vpop.permute.xlu0 %6397 }
 0x51a   :  { %6008 = vmatprep.subr.bf16.mxu1 %v6007_v42  ;;  %v6400_v29 = vunpack.i.h.bf16 %v6398_v59  ;;  %v6399_v39 = vunpack.i.l.bf16 %v6398_v59 }
 0x51b   :  { %6010 = vmatpush3.bf16.msra.mxu1 %v6007_v42 }
 0x51c   :  { %6006 = vmatpush3.bf16.xpose.msk.msra.mxu0 %vm7331_vm2, %v6001_v17 }
 0x52d   :  { %v998_v57 = vpop.xlane.xlu1 %997 }
 0x52e   :  { %6680 = vrcp.f32 %v998_v57 }
 0x531   :  { %v1517_v48 = vpop.permute.xlu1 %1516 }
 0x535   :  { %v1521_v23 = vpop.permute.xlu1 %1520 }
 0x538   :  { %v6681_v43 = vpop.eup %6680 }
 0x539   :  { %v1525_v56 = vpop.permute.xlu1 %1524  ;;  %v1032_v31 = vmul.f32 %v6681_v43, %v7602_v44  ;;  %v6015_v44 = vpack.c.bf16 %v6400_v29, %v6399_v39 }
 0x53b   :  { %5428 = vmatprep.mubr.msk.f32.mxu0 %vm857_vm3, %v1032_v31 }
 0x53c   :  { %5429 = vmatmul.mubr.msk.f32.gmra.mrb[30].mxu0 %vm857_vm3, %v1033_v11 }
 0x53d   :  { %v6393_v10 = vpop.permute.xlu1 %6392  ;;  %5475 = vmatprep.mubr.msk.f32.mxu0 %vm542_vm1, %v1511_v47 }
 0x53e   :  { %v6395_v62 = vunpack.i.h.bf16 %v6393_v10  ;;  %v6394_v9 = vunpack.i.l.bf16 %v6393_v10 }
 0x540   :  { %5476 = vmatmul.mubr.msk.f32.vlgmr.msra.gmra.mrb[32].mxu0 %vm542_vm1, %v1513_v63  ;;  %v6011_v3 = vpack.c.bf16 %v6395_v62, %v6394_v9 }
 0x541   :  { %5478 = vmatprep.mubr.msk.f32.mxu0 %vm542_vm1, %v1515_v58 }
 0x542   :  { %6012 = vmatprep.subr.bf16.mxu1 %v6011_v3 }
 0x543   :  { %6014 = vmatpush3.bf16.msra.mxu1 %v6011_v3 }
 0x544   :  { %5479 = vmatmul.mubr.msk.f32.gmra.mrb[34].mxu0 %vm542_vm1, %v1517_v48  ;;  %6016 = vmatprep.subr.bf16.mxu1 %v6015_v44 }
 0x545   :  { %5481 = vmatprep.mubr.msk.f32.mxu0 %vm542_vm1, %v1519_v18 }
 0x547   :  { %6018 = vmatpush3.bf16.msra.mxu1 %v6015_v44 }
 0x548   :  { %5482 = vmatmul.mubr.msk.f32.gmra.mrb[36].mxu0 %vm542_vm1, %v1521_v23 }
 0x549   :  { %5484 = vmatprep.mubr.msk.f32.mxu0 %vm542_vm1, %v1523_v35 }
 0x54c   :  { %5485 = vmatmul.mubr.msk.f32.gmra.mrb[38].mxu0 %vm542_vm1, %v1525_v56 }
 0x592   :  { %v7716_v61 = vpop.f32.mrb[8].mxu1 }
 0x593   :  { %v7718_v19 = vpop.f32.mrb[9].mxu1 }
 0x596   :  { %v7720_v12 = vpop.f32.mrb[10].mxu1 }
 0x597   :  { %v7722_v21 = vpop.f32.mrb[11].mxu1 }
 0x59d   :  { %v7724_v53 = vpop.f32.mrb[12].mxu1 }
 0x59e   :  { %v7726_v45 = vpop.f32.mrb[13].mxu1 }
 0x5a1   :  { %v7728_v14 = vpop.f32.mrb[14].mxu1 }
 0x5a2   :  { %v7730_v54 = vpop.f32.mrb[15].mxu1 }
 0x5b2   :  { %v5449_v47 = vpop.f32.mrb[16].mxu1 }
 0x5b3   :  { %v7732_v25 = vpop.f32.mrb[17].mxu1  ;;  %v1682_v6 = vsel %vm857_vm3, %v5449_v47, -inf }
 0x5b4   :  { %1683 = vmax.xlane.f32.xlu1 %v1682_v6  ;;  %v1679_v34 = vsel %vm857_vm3, %v7732_v25, -inf }
 0x5b5   :  { %1680 = vmax.xlane.f32.xlu0 %v1679_v34 }
 0x5b6   :  { %v5452_v30 = vpop.f32.mrb[18].mxu1 }
 0x5b7   :  { %v7737_v58 = vpop.f32.mrb[19].mxu1  ;;  %v1688_v4 = vsel %vm857_vm3, %v5452_v30, -inf }
 0x5b8   :  { %v1685_v60 = vsel %vm857_vm3, %v7737_v58, -inf }
 0x5b9   :  { %1689 = vmax.xlane.f32.xlu0 %v1688_v4 }
 0x5ba   :  { %v5455_v24 = vpop.f32.mrb[20].mxu1 }
 0x5bb   :  { %v7740_v51 = vpop.f32.mrb[21].mxu1  ;;  %v1694_v18 = vsel %vm857_vm3, %v5455_v24, -inf }
 0x5bc   :  { %1695 = vmax.xlane.f32.xlu1 %v1694_v18  ;;  %v1691_v37 = vsel %vm857_vm3, %v7740_v51, -inf }
 0x5bd   :  { %1686 = vmax.xlane.f32.xlu0 %v1685_v60 }
 0x5be   :  { %v5458_v20 = vpop.f32.mrb[22].mxu1 }
 0x5bf   :  { %v7745_v35 = vpop.f32.mrb[23].mxu1  ;;  %v1700_v17 = vsel %vm857_vm3, %v5458_v20, -inf }
 0x5c0   :  { %1701 = vmax.xlane.f32.xlu1 %v1700_v17  ;;  %v1697_v52 = vsel %vm857_vm3, %v7745_v35, -inf }
 0x5c1   :  { %1692 = vmax.xlane.f32.xlu0 %v1691_v37 }
 0x5c5   :  { %1698 = vmax.xlane.f32.xlu0 %v1697_v52 }
 0x5d6   :  { %v7752_v41 = vpop.f32.mrb[24].mxu0 }
 0x5d7   :  { %v7754_v42 = vpop.f32.mrb[25].mxu0 }
 0x5da   :  { %v7756_v63 = vpop.f32.mrb[26].mxu0 }
 0x5db   :  { %8824 = vst [vmem:[#allocation13_spill] sm:$0xff] %v7756_v63  ;;  %v7758_v57 = vpop.f32.mrb[27].mxu0 }
 0x5dc   :  { %8825 = vst [vmem:[#allocation14_spill] sm:$0xff] %v7758_v57 }
 0x5e0   :  { %v7760_v48 = vpop.f32.mrb[28].mxu0 }
 0x5e1   :  { %8826 = vst [vmem:[#allocation15_spill] sm:$0xff] %v7760_v48  ;;  %v7762_v23 = vpop.f32.mrb[29].mxu0 }
 0x5e2   :  { %8827 = vst [vmem:[#allocation16_spill] sm:$0xff] %v7762_v23 }
 0x60f   :  { %v7764_v55 = vpop.f32.mrb[30].mxu0 }
 0x610   :  { %8828 = vst [vmem:[#allocation17_spill] sm:$0xff] %v7764_v55  ;;  %v7766_v43 = vpop.f32.mrb[31].mxu0 }
 0x611   :  { %8829 = vst [vmem:[#allocation18_spill] sm:$0xff] %v7766_v43 }
 0x613   :  { %v7768_v56 = vpop.f32.mrb[32].mxu0 }
 0x614   :  { %v7770_v31 = vpop.f32.mrb[33].mxu0  ;;  %v1706_v11 = vsel %vm857_vm3, %v7768_v56, -inf }
 0x615   :  { %1707 = vmax.xlane.f32.xlu1 %v1706_v11  ;;  %v1703_v59 = vsel %vm857_vm3, %v7770_v31, -inf }
 0x616   :  { %1704 = vmax.xlane.f32.xlu0 %v1703_v59 }
 0x617   :  { %v7776_v10 = vpop.f32.mrb[34].mxu0 }
 0x618   :  { %v7778_v29 = vpop.f32.mrb[35].mxu0  ;;  %v1712_v39 = vsel %vm857_vm3, %v7776_v10, -inf }
 0x619   :  { %1713 = vmax.xlane.f32.xlu1 %v1712_v39  ;;  %v1709_v62 = vsel %vm857_vm3, %v7778_v29, -inf }
 0x61a   :  { %1710 = vmax.xlane.f32.xlu0 %v1709_v62 }
 0x61b   :  { %v7784_v9 = vpop.f32.mrb[36].mxu0 }
 0x61c   :  { %v7786_v3 = vpop.f32.mrb[37].mxu0  ;;  %v1718_v44 = vsel %vm857_vm3, %v7784_v9, -inf }
 0x61d   :  { %1719 = vmax.xlane.f32.xlu1 %v1718_v44  ;;  %v1715_v6 = vsel %vm857_vm3, %v7786_v3, -inf }
 0x61e   :  { %1716 = vmax.xlane.f32.xlu0 %v1715_v6 }
 0x61f   :  { %v7792_v34 = vpop.f32.mrb[38].mxu0 }
 0x620   :  { %v7794_v4 = vpop.f32.mrb[39].mxu0  ;;  %v1724_v18 = vsel %vm857_vm3, %v7792_v34, -inf }
 0x621   :  { %1725 = vmax.xlane.f32.xlu1 %v1724_v18 }
 0x632   :  { %6402 = vrot.lane.b32.xlu1 %v7251_v16, %s6894_s24 }
 0x634   :  { %6407 = vrot.lane.b32.xlu0 %v7258_v0, %s6894_s24 }
 0x641   :  { %v1684_v60 = vpop.xlane.xlu1 %1683 }
 0x642   :  { %v1728_v17 = vsub.f32 %v5449_v47, %v1684_v60  ;;  %v1681_v37 = vpop.xlane.xlu0 %1680  ;;  %v1721_v47 = vsel %vm857_vm3, %v7794_v4, -inf }
 0x644   :  { %v1745_v52 = vmul.f32 1.442695, %v1728_v17 }
 0x646   :  { %v1690_v11 = vpop.xlane.xlu0 %1689  ;;  %6682 = vpow2.f32 %v1745_v52 }
 0x647   :  { %v1730_v59 = vsub.f32 %v5452_v30, %v1690_v11  ;;  %v1727_v11 = vsub.f32 %v7732_v25, %v1681_v37 }
 0x649   :  { %v1749_v39 = vmul.f32 1.442695, %v1730_v59  ;;  %v1696_v62 = vpop.xlane.xlu1 %1695  ;;  %v1743_v59 = vmul.f32 1.442695, %v1727_v11 }
 0x64a   :  { %v1732_v44 = vsub.f32 %v5455_v24, %v1696_v62  ;;  %v1687_v6 = vpop.xlane.xlu0 %1686 }
 0x64b   :  { %6684 = vpow2.f32 %v1749_v39  ;;  %v1729_v39 = vsub.f32 %v7737_v58, %v1687_v6 }
 0x64c   :  { %v1753_v55 = vmul.f32 1.442695, %v1732_v44 }
 0x64d   :  { %v1702_v18 = vpop.xlane.xlu1 %1701  ;;  %v1747_v62 = vmul.f32 1.442695, %v1729_v39 }
 0x64e   :  { %v1734_v43 = vsub.f32 %v5458_v20, %v1702_v18  ;;  %v1693_v48 = vpop.xlane.xlu0 %1692  ;;  %6686 = vpow2.f32 %v1753_v55 }
 0x64f   :  { %v1731_v44 = vsub.f32 %v7740_v51, %v1693_v48 }
 0x650   :  { %v1757_v23 = vmul.f32 1.442695, %v1734_v43  ;;  %v7802_v63 = vpop.eup %6682 }
 0x651   :  { %v1778_v24 = vsel %vm857_vm3, %v7802_v63, 0.0  ;;  %v1751_v18 = vmul.f32 1.442695, %v1731_v44 }
 0x652   :  { %v1699_v57 = vpop.xlane.xlu0 %1698  ;;  %6688 = vpow2.f32 %v1757_v23 }
 0x653   :  { %v1733_v30 = vsub.f32 %v7745_v35, %v1699_v57  ;;  %1722 = vmax.xlane.f32.xlu0 %v1721_v47 }
 0x655   :  { %v1755_v60 = vmul.f32 1.442695, %v1733_v30  ;;  %v7809_v17 = vpop.eup %6684 }
 0x656   :  { %1779 = vadd.xlane.f32.xlu1 %v1778_v24  ;;  %v1784_v20 = vsel %vm857_vm3, %v7809_v17, 0.0 }
 0x657   :  { %6690 = vpow2.f32 %v1755_v60 }
 0x658   :  { %v7813_v55 = vpop.eup %6686  ;;  %6692 = vpow2.f32 %v1743_v59 }
 0x659   :  { %v1790_v43 = vsel %vm857_vm3, %v7813_v55, 0.0  ;;  %6694 = vpow2.f32 %v1747_v62 }
 0x65a   :  { %1785 = vadd.xlane.f32.xlu1 %v1784_v20  ;;  %6696 = vpow2.f32 %v1751_v18 }
 0x65c   :  { %v7817_v35 = vpop.eup %6688 }
 0x65d   :  { %v1796_v57 = vsel %vm857_vm3, %v7817_v35, 0.0 }
 0x65e   :  { %1791 = vadd.xlane.f32.xlu1 %v1790_v43 }
 0x661   :  { %v7821_v23 = vpop.eup %6690 }
 0x662   :  { %1797 = vadd.xlane.f32.xlu1 %v1796_v57  ;;  %v1793_v52 = vsel %vm857_vm3, %v7821_v23, 0.0  ;;  %v7830_v47 = vpop.eup %6692 }
 0x663   :  { %v1775_v30 = vsel %vm857_vm3, %v7830_v47, 0.0  ;;  %v7834_v60 = vpop.eup %6694 }
 0x664   :  { %v1781_v25 = vsel %vm857_vm3, %v7834_v60, 0.0  ;;  %v7838_v37 = vpop.eup %6696 }
 0x665   :  { %v1787_v58 = vsel %vm857_vm3, %v7838_v37, 0.0 }
 0x666   :  { %1794 = vadd.xlane.f32.xlu1 %v1793_v52 }
 0x669   :  { %6412 = vrot.lane.b32.xlu0 %v7272_v40, %s6894_s24 }
 0x688   :  { %1776 = vadd.xlane.f32.xlu0 %v1775_v30 }
 0x68c   :  { %1782 = vadd.xlane.f32.xlu0 %v1781_v25 }
 0x690   :  { %1788 = vadd.xlane.f32.xlu0 %v1787_v58 }
 0x6a2   :  { %v1708_v51 = vpop.xlane.xlu1 %1707 }
 0x6a3   :  { %v1736_v48 = vsub.f32 %v7768_v56, %v1708_v51  ;;  %v1705_v6 = vpop.xlane.xlu0 %1704 }
 0x6a4   :  { %v1735_v24 = vsub.f32 %v7770_v31, %v1705_v6 }
 0x6a5   :  { %v1761_v20 = vmul.f32 1.442695, %v1736_v48 }
 0x6a6   :  { %v1759_v43 = vmul.f32 1.442695, %v1735_v24  ;;  %v1714_v57 = vpop.xlane.xlu1 %1713 }
 0x6a7   :  { %6698 = vpow2.f32 %v1761_v20  ;;  %v1738_v52 = vsub.f32 %v7776_v10, %v1714_v57  ;;  %v1711_v11 = vpop.xlane.xlu0 %1710 }
 0x6a8   :  { %6700 = vpow2.f32 %v1759_v43  ;;  %v1737_v59 = vsub.f32 %v7778_v29, %v1711_v11 }
 0x6a9   :  { %v1765_v39 = vmul.f32 1.442695, %v1738_v52 }
 0x6aa   :  { %v1763_v62 = vmul.f32 1.442695, %v1737_v59  ;;  %v1720_v44 = vpop.xlane.xlu1 %1719 }
 0x6ab   :  { %6702 = vpow2.f32 %v1765_v39  ;;  %v1740_v18 = vsub.f32 %v7784_v9, %v1720_v44  ;;  %v1717_v56 = vpop.xlane.xlu0 %1716 }
 0x6ac   :  { %v1739_v30 = vsub.f32 %v7786_v3, %v1717_v56  ;;  %6704 = vpow2.f32 %v1763_v62 }
 0x6ad   :  { %v1769_v31 = vmul.f32 1.442695, %v1740_v18 }
 0x6ae   :  { %v1767_v25 = vmul.f32 1.442695, %v1739_v30  ;;  %v1726_v58 = vpop.xlane.xlu1 %1725 }
 0x6af   :  { %v1742_v51 = vsub.f32 %v7792_v34, %v1726_v58  ;;  %v6408_v10 = vpop.permute.xlu0 %6407 }
 0x6b0   :  { %6706 = vpow2.f32 %v1767_v25  ;;  %v6410_v48 = vunpack.i.h.bf16 %v6408_v10  ;;  %v6409_v6 = vunpack.i.l.bf16 %v6408_v10 }
 0x6b1   :  { %v7849_v29 = vpop.eup %6698  ;;  %6708 = vpow2.f32 %v1769_v31  ;;  %v1773_v24 = vmul.f32 1.442695, %v1742_v51 }
 0x6b2   :  { %v7851_v20 = vpop.eup %6700  ;;  %v7853_v9 = vpack.c.bf16 %v6410_v48, %v6409_v6  ;;  %v6403_v43 = vpop.permute.xlu1 %6402  ;;  %v1802_v3 = vsel %vm857_vm3, %v7849_v29, 0.0 }
 0x6b3   :  { %v6405_v57 = vunpack.i.h.bf16 %v6403_v43  ;;  %v6404_v52 = vunpack.i.l.bf16 %v6403_v43  ;;  %1803 = vadd.xlane.f32.xlu1 %v1802_v3  ;;  %v1799_v34 = vsel %vm857_vm3, %v7851_v20, 0.0  ;;  %6710 = vpow2.f32 %v1773_v24 }
 0x6b4   :  { %1800 = vadd.xlane.f32.xlu0 %v1799_v34  ;;  %6024 = vmatprep.subr.bf16.mxu0 %v7853_v9 }
 0x6b5   :  { %v7860_v11 = vpop.eup %6702  ;;  %6026 = vmatpush3.bf16.msra.mxu0 %v7853_v9  ;;  %v6019_v59 = vpack.c.bf16 %v6405_v57, %v6404_v52  ;;  %v8830_v52 = vld [vmem:[#allocation4_spill] sm:$0xff] }
 0x6b6   :  { %v1808_v39 = vsel %vm857_vm3, %v7860_v11, 0.0  ;;  %v7865_v62 = vpop.eup %6704 }
 0x6b7   :  { %1809 = vadd.xlane.f32.xlu1 %v1808_v39  ;;  %6020 = vmatprep.subr.bf16.mxu1 %v6019_v59  ;;  %v1805_v18 = vsel %vm857_vm3, %v7865_v62, 0.0  ;;  %v8831_v39 = vld [vmem:[#allocation2_spill] sm:$0xff] }
 0x6b8   :  { %6022 = vmatpush3.bf16.msra.mxu1 %v6019_v59 }
 0x6b9   :  { %6199 = vmatprep.subr.bf16.mxu1 %v7853_v9 }
 0x6ba   :  { %v7868_v44 = vpop.eup %6706 }
 0x6bb   :  { %v7872_v56 = vpop.eup %6708  ;;  %1806 = vadd.xlane.f32.xlu1 %v1805_v18  ;;  %v1811_v30 = vsel %vm857_vm3, %v7868_v44, 0.0 }
 0x6bc   :  { %1812 = vadd.xlane.f32.xlu0 %v1811_v30  ;;  %v1814_v31 = vsel %vm857_vm3, %v7872_v56, 0.0  ;;  %v8832_v30 = vld [vmem:[#allocation3_spill] sm:$0xff] }
 0x6bd   :  { %v7878_v25 = vpop.eup %6710 }
 0x6be   :  { %v1820_v58 = vsel %vm857_vm3, %v7878_v25, 0.0 }
 0x6bf   :  { %1815 = vadd.xlane.f32.xlu1 %v1814_v31 }
 0x6c3   :  { %1821 = vadd.xlane.f32.xlu1 %v1820_v58 }
 0x6d2   :  { %6422 = vrot.lane.b32.xlu0 %v7292_v36, %s6894_s24 }
 0x6d6   :  { %6427 = vrot.lane.b32.xlu0 %v7217_v5, %s6895_s25 }
 0x6da   :  { %6432 = vrot.lane.b32.xlu0 %v7231_v8, %s6895_s25 }
 0x6de   :  { %6437 = vrot.lane.b32.xlu0 %v7241_v15, %s6895_s25 }
 0x6e0   :  { %v1723_v51 = vpop.xlane.xlu0 %1722 }
 0x6e1   :  { %v1741_v10 = vsub.f32 %v7794_v4, %v1723_v51 }
 0x6e2   :  { %6447 = vrot.lane.b32.xlu0 %v7258_v0, %s6895_s25 }
 0x6e3   :  { %v1771_v48 = vmul.f32 1.442695, %v1741_v10  ;;  %v1780_v34 = vpop.xlane.xlu1 %1779 }
 0x6e4   :  { %v6413_v6 = vpop.permute.xlu0 %6412 }
 0x6e5   :  { %6712 = vpow2.f32 %v1771_v48  ;;  %v6415_v24 = vunpack.i.h.bf16 %v6413_v6  ;;  %v6414_v43 = vunpack.i.l.bf16 %v6413_v6  ;;  %v8833_v48 = vld [vmem:[#allocation5_spill] sm:$0xff] }
 0x6e6   :  { %2550 = vrot.lane.b32.xlu0 %v7310_v49, %s6896_s26  ;;  %6714 = vrcp.f32 %v1780_v34 }
 0x6e7   :  { %v6027_v3 = vpack.c.bf16 %v6415_v24, %v6414_v43  ;;  %v1786_v59 = vpop.xlane.xlu1 %1785 }
 0x6e9   :  { %6028 = vmatprep.subr.bf16.mxu0 %v6027_v3 }
 0x6ea   :  { %6457 = vrot.lane.b32.xlu0 %v7282_v46, %s6895_s25  ;;  %6030 = vmatpush3.bf16.msra.mxu0 %v6027_v3 }
 0x6eb   :  { %v1792_v18 = vpop.xlane.xlu1 %1791 }
 0x6ee   :  { %2554 = vrot.lane.b32.xlu0 %v7316_v50, %s6896_s26 }
 0x6ef   :  { %v7899_v4 = vpop.eup %6712  ;;  %v1798_v31 = vpop.xlane.xlu1 %1797 }
 0x6f0   :  { %v1817_v57 = vsel %vm857_vm3, %v7899_v4, 0.0  ;;  %v6715_v24 = vpop.eup %6714 }
 0x6f1   :  { %1818 = vadd.xlane.f32.xlu1 %v1817_v57  ;;  %v1840_v34 = vmul.f32 %v6715_v24, %v7802_v63 }
 0x6f2   :  { %2556 = vrot.lane.b32.xlu0 %v8830_v52, %s6896_s26 }
 0x6f3   :  { %v1795_v10 = vpop.xlane.xlu1 %1794 }
 0x6f6   :  { %2560 = vrot.lane.b32.xlu0 %v7382_v13, %s6896_s26 }
 0x6fa   :  { %2717 = vrot.lane.b32.xlu0 %v7260_v32, %s6896_s26 }
 0x6fe   :  { %2721 = vrot.lane.b32.xlu0 %v7406_v7, %s6896_s26 }
 0x702   :  { %2725 = vrot.lane.b32.xlu0 %v7418_v22, %s6896_s26  ;;  %6417 = vrot.lane.b32.xlu1 %v7282_v46, %s6894_s24 }
 0x706   :  { %2729 = vrot.lane.b32.xlu0 %v7430_v33, %s6896_s26  ;;  %6442 = vrot.lane.b32.xlu1 %v7251_v16, %s6895_s25 }
 0x70a   :  { %6467 = vrot.lane.b32.xlu0 %v7217_v5, %s6897_s27  ;;  %2548 = vrot.lane.b32.xlu1 %v8831_v39, %s6896_s26 }
 0x70e   :  { %6477 = vrot.lane.b32.xlu0 %v7241_v15, %s6897_s27  ;;  %6452 = vrot.lane.b32.xlu1 %v7272_v40, %s6895_s25 }
 0x712   :  { %2552 = vrot.lane.b32.xlu1 %v8832_v30, %s6896_s26 }
 0x715   :  { %v1777_v58 = vpop.xlane.xlu0 %1776 }
 0x716   :  { %6716 = vrcp.f32 %v1777_v58  ;;  %6462 = vrot.lane.b32.xlu1 %v7292_v36, %s6895_s25 }
 0x717   :  { %6718 = vrcp.f32 %v1786_v59 }
 0x719   :  { %v1783_v51 = vpop.xlane.xlu0 %1782 }
 0x71a   :  { %6720 = vrcp.f32 %v1783_v51  ;;  %2558 = vrot.lane.b32.xlu1 %v8833_v48, %s6896_s26 }
 0x71b   :  { %6722 = vrcp.f32 %v1792_v18 }
 0x71c   :  { %6724 = vrcp.f32 %v1795_v10 }
 0x71d   :  { %v1789_v6 = vpop.xlane.xlu0 %1788 }
 0x71e   :  { %6726 = vrcp.f32 %v1789_v6  ;;  %2562 = vrot.lane.b32.xlu1 %v7391_v2, %s6896_s26 }
 0x71f   :  { %6728 = vrcp.f32 %v1798_v31 }
 0x720   :  { %v6717_v43 = vpop.eup %6716 }
 0x721   :  { %v1839_v57 = vmul.f32 %v6717_v43, %v7830_v47  ;;  %v6719_v59 = vpop.eup %6718 }
 0x722   :  { %2719 = vrot.lane.b32.xlu1 %v7398_v38, %s6896_s26  ;;  %v1842_v63 = vmul.f32 %v6719_v59, %v7809_v17 }
 0x723   :  { %5503 = vmatprep.mubr.msk.f32.mxu1 %vm857_vm3, %v1839_v57 }
 0x724   :  { %v6721_v18 = vpop.eup %6720  ;;  %5504 = vmatmul.mubr.msk.f32.vlgmr.msra.gmra.mrb[24].mxu1 %vm857_vm3, %v1840_v34 }
 0x725   :  { %6203 = vmatpush3.bf16.msra.mxu1 %v7853_v9  ;;  %v1841_v58 = vmul.f32 %v6721_v18, %v7834_v60  ;;  %v6723_v51 = vpop.eup %6722 }
 0x726   :  { %6200 = vmatprep.subr.bf16.mxu1 %v6027_v3  ;;  %2723 = vrot.lane.b32.xlu1 %v7413_v26, %s6896_s26  ;;  %v6725_v47 = vpop.eup %6724  ;;  %v1844_v60 = vmul.f32 %v6723_v51, %v7813_v55 }
 0x727   :  { %5506 = vmatprep.mubr.msk.f32.mxu1 %vm857_vm3, %v1841_v58  ;;  %v1845_v6 = vmul.f32 %v6725_v47, %v7821_v23 }
 0x728   :  { %v6727_v31 = vpop.eup %6726  ;;  %5507 = vmatmul.mubr.msk.f32.gmra.mrb[26].mxu1 %vm857_vm3, %v1842_v63 }
 0x729   :  { %6204 = vmatpush3.bf16.msra.mxu1 %v6027_v3  ;;  %v1843_v10 = vmul.f32 %v6727_v31, %v7838_v37  ;;  %v6729_v9 = vpop.eup %6728 }
 0x72a   :  { %2727 = vrot.lane.b32.xlu1 %v7425_v27, %s6896_s26  ;;  %v1846_v17 = vmul.f32 %v6729_v9, %v7817_v35 }
 0x72b   :  { %5509 = vmatprep.mubr.msk.f32.mxu1 %vm857_vm3, %v1843_v10 }
 0x72c   :  { %5510 = vmatmul.mubr.msk.f32.gmra.mrb[28].mxu1 %vm857_vm3, %v1844_v60 }
 0x72d   :  { %5512 = vmatprep.mubr.msk.f32.mxu1 %vm857_vm3, %v1845_v6 }
 0x72e   :  { %2731 = vrot.lane.b32.xlu1 %v7437_v1, %s6896_s26 }
 0x730   :  { %5513 = vmatmul.mubr.msk.f32.gmra.mrb[30].mxu1 %vm857_vm3, %v1846_v17 }
 0x732   :  { %6472 = vrot.lane.b32.xlu1 %v7231_v8, %s6897_s27 }
 0x740   :  { %v1804_v18 = vpop.xlane.xlu1 %1803 }
 0x741   :  { %v1801_v55 = vpop.xlane.xlu0 %1800 }
 0x742   :  { %6730 = vrcp.f32 %v1801_v55 }
 0x743   :  { %6732 = vrcp.f32 %v1804_v18 }
 0x744   :  { %v1810_v51 = vpop.xlane.xlu1 %1809 }
 0x749   :  { %v1813_v37 = vpop.xlane.xlu0 %1812 }
 0x74c   :  { %v6731_v3 = vpop.eup %6730 }
 0x74d   :  { %v6423_v24 = vpop.permute.xlu0 %6422  ;;  %v1847_v23 = vmul.f32 %v6731_v3, %v7851_v20  ;;  %v1807_v20 = vpop.xlane.xlu1 %1806 }
 0x74e   :  { %v6424_v1 = vunpack.i.l.bf16 %v6423_v24  ;;  %v6733_v18 = vpop.eup %6732 }
 0x74f   :  { %5531 = vmatprep.mubr.msk.f32.mxu0 %vm857_vm3, %v1847_v23  ;;  %v6425_v23 = vunpack.i.h.bf16 %v6423_v24 }
 0x751   :  { %v7964_v43 = vpop.permute.xlu0 %6427  ;;  %v1816_v10 = vpop.xlane.xlu1 %1815  ;;  %v6035_v30 = vpack.c.bf16 %v6425_v23, %v6424_v1  ;;  %v1340_v1 = vld [vmem:[%s8793_s5] sm:$0xff]  ;;  %v1848_v23 = vmul.f32 %v6733_v18, %v7849_v29 }
 0x755   :  { %v7966_v57 = vpop.permute.xlu0 %6432  ;;  %v1822_v6 = vpop.xlane.xlu1 %1821 }
 0x759   :  { %v7968_v34 = vpop.permute.xlu0 %6437 }
 0x75d   :  { %v7970_v35 = vpop.permute.xlu0 %6447 }
 0x761   :  { %v7972_v59 = vpop.permute.xlu0 %2550 }
 0x765   :  { %v7974_v58 = vpop.permute.xlu0 %6457 }
 0x769   :  { %v7976_v63 = vpop.permute.xlu0 %2554 }
 0x76d   :  { %v7978_v47 = vpop.permute.xlu0 %2556 }
 0x771   :  { %v7980_v31 = vpop.permute.xlu0 %2560 }
 0x775   :  { %v7982_v60 = vpop.permute.xlu0 %2717 }
 0x779   :  { %v7984_v9 = vpop.permute.xlu0 %2721 }
 0x77d   :  { %v7986_v17 = vpop.permute.xlu0 %2725 }
 0x77e   :  { %v1819_v55 = vpop.xlane.xlu1 %1818 }
 0x77f   :  { %6734 = vrcp.f32 %v1819_v55 }
 0x780   :  { %6736 = vrcp.f32 %v1822_v6 }
 0x781   :  { %6738 = vrcp.f32 %v1807_v20  ;;  %v7988_v27 = vpop.permute.xlu0 %2729 }
 0x782   :  { %v6418_v3 = vpop.permute.xlu1 %6417  ;;  %6740 = vrcp.f32 %v1810_v51 }
 0x783   :  { %v6420_v26 = vunpack.i.h.bf16 %v6418_v3  ;;  %v6419_v38 = vunpack.i.l.bf16 %v6418_v3  ;;  %6742 = vrcp.f32 %v1813_v37  ;;  %v6429_v37 = vunpack.i.l.bf16 %v7964_v43 }
 0x784   :  { %6744 = vrcp.f32 %v1816_v10 }
 0x785   :  { %v6031_v2 = vpack.c.bf16 %v6420_v26, %v6419_v38  ;;  %v6468_v6 = vpop.permute.xlu0 %6467  ;;  %v2161_v38 = vld [vmem:[%s8793_s5 + $0x8] sm:$0xff] }
 0x786   :  { %v7990_v48 = vpop.permute.xlu1 %6442  ;;  %v6470_v10 = vunpack.i.h.bf16 %v6468_v6  ;;  %v6469_v3 = vunpack.i.l.bf16 %v6468_v6 }
 0x787   :  { %6032 = vmatprep.subr.bf16.mxu0 %v6031_v2  ;;  %6201 = vmatprep.subr.bf16.mxu1 %v6031_v2 }
 0x788   :  { %6034 = vmatpush3.bf16.msra.mxu0 %v6031_v2  ;;  %6205 = vmatpush3.bf16.msra.mxu1 %v6031_v2  ;;  %v6430_v2 = vunpack.i.h.bf16 %v7964_v43  ;;  %v6087_v29 = vpack.c.bf16 %v6470_v10, %v6469_v3  ;;  %v6434_v10 = vunpack.i.l.bf16 %v7966_v57 }
 0x789   :  { %v6735_v20 = vpop.eup %6734  ;;  %6036 = vmatprep.subr.bf16.mxu0 %v6035_v30  ;;  %6202 = vmatprep.subr.bf16.mxu1 %v6035_v30 }
 0x78a   :  { %v6737_v24 = vpop.eup %6736  ;;  %v7992_v55 = vpop.permute.xlu1 %2548  ;;  %v1853_v51 = vmul.f32 %v6735_v20, %v7899_v4  ;;  %v6039_v43 = vpack.c.bf16 %v6430_v2, %v6429_v37  ;;  %v6435_v37 = vunpack.i.h.bf16 %v7966_v57  ;;  %v6439_v57 = vunpack.i.l.bf16 %v7968_v34 }
 0x78b   :  { %v6739_v26 = vpop.eup %6738  ;;  %v1854_v4 = vmul.f32 %v6737_v24, %v7878_v25 }
 0x78c   :  { %6038 = vmatpush3.bf16.msra.mxu0 %v6035_v30  ;;  %6206 = vmatpush3.bf16.msra.mxu1 %v6035_v30  ;;  %v6741_v20 = vpop.eup %6740  ;;  %v1849_v33 = vmul.f32 %v6739_v26, %v7865_v62 }
 0x78d   :  { %5540 = vmatprep.mubr.msk.f32.mxu1 %vm857_vm3, %v1853_v51  ;;  %5543 = vmatprep.subr.mxu0 %v2161_v38  ;;  %v6743_v22 = vpop.eup %6742  ;;  %v1850_v25 = vmul.f32 %v6741_v20, %v7860_v11  ;;  %v8837_v11 = vld [vmem:[#allocation15_spill] sm:$0xff] }
 0x78e   :  { %v8006_v39 = vpop.permute.xlu1 %6452  ;;  %5569 = vmatprep.subr.mxu1 %v1340_v1  ;;  %v6745_v30 = vpop.eup %6744  ;;  %v1851_v18 = vmul.f32 %v6743_v22, %v7868_v44  ;;  %v8839_v44 = vld [vmem:[#allocation17_spill] sm:$0xff] }
 0x78f   :  { %5532 = vmatmul.mubr.msk.f32.vlgmr.msra.gmra.mrb[40].mxu0 %vm857_vm3, %v1848_v23  ;;  %5541 = vmatmul.mubr.msk.f32.vlgmr.msra.gmra.mrb[32].mxu1 %vm857_vm3, %v1854_v4  ;;  %v6045_v4 = vpack.c.bf16 %v6435_v37, %v6434_v10  ;;  %v6459_v10 = vunpack.i.l.bf16 %v7974_v58 }
 0x790   :  { %5534 = vmatprep.mubr.msk.f32.mxu0 %vm857_vm3, %v1849_v33  ;;  %5544 = vmatpush3.msra.mxu0 %v2161_v38  ;;  %v1852_v33 = vmul.f32 %v6745_v30, %v7872_v56  ;;  %v6478_v56 = vpop.permute.xlu0 %6477 }
 0x791   :  { %5570 = vmatpush3.msra.mxu1 %v1340_v1  ;;  %5571 = vmatprep.mubr.msk.f32.mxu1 %vm542_vm1, %v7718_v19  ;;  %v6480_v24 = vunpack.i.h.bf16 %v6478_v56  ;;  %v6479_v51 = vunpack.i.l.bf16 %v6478_v56 }
 0x792   :  { %6041 = vmatprep.subr.msk.bf16.mxu0 %vm7331_vm2, %v6039_v43  ;;  %6088 = vmatprep.subr.bf16.mxu1 %v6087_v29  ;;  %v8017_v62 = vpop.permute.xlu1 %2552 }
 0x793   :  { %5535 = vmatmul.mubr.msk.f32.gmra.mrb[42].mxu0 %vm857_vm3, %v1850_v25  ;;  %5572 = vmatmul.mubr.msk.f32.vlgmr.msra.gmra.mrb[34].mxu1 %vm542_vm1, %v7716_v61  ;;  %v6095_v2 = vpack.c.bf16 %v6480_v24, %v6479_v51  ;;  %v6440_v25 = vunpack.i.h.bf16 %v7968_v34  ;;  %v6445_v34 = vunpack.i.h.bf16 %v7990_v48 }
 0x794   :  { %6090 = vmatpush3.bf16.msra.mxu1 %v6087_v29  ;;  %5537 = vmatprep.mubr.msk.f32.mxu0 %vm857_vm3, %v1851_v18 }
 0x795   :  { %5574 = vmatprep.mubr.msk.f32.mxu1 %vm542_vm1, %v7722_v21  ;;  %v8834_v21 = vld [vmem:[#allocation14_spill] sm:$0xff] }
 0x796   :  { %v8027_v19 = vpop.permute.xlu1 %6462 }
 0x797   :  { %5538 = vmatmul.mubr.msk.f32.gmra.mrb[44].mxu0 %vm857_vm3, %v1852_v33  ;;  %5575 = vmatmul.mubr.msk.f32.gmra.mrb[36].mxu1 %vm542_vm1, %v7720_v12  ;;  %v6051_v33 = vpack.c.bf16 %v6440_v25, %v6439_v57 }
 0x798   :  { %5577 = vmatprep.mubr.msk.f32.mxu1 %vm542_vm1, %v7726_v45  ;;  %v8835_v45 = vld [vmem:[#allocation13_spill] sm:$0xff] }
 0x79a   :  { %v8034_v22 = vpop.permute.xlu1 %2558 }
 0x79b   :  { %5578 = vmatmul.mubr.msk.f32.gmra.mrb[38].mxu1 %vm542_vm1, %v7724_v53 }
 0x79c   :  { %5580 = vmatprep.mubr.msk.f32.mxu1 %vm542_vm1, %v7730_v54  ;;  %v8836_v54 = vld [vmem:[#allocation16_spill] sm:$0xff] }
 0x79e   :  { %v8040_v61 = vpop.permute.xlu1 %2562 }
 0x79f   :  { %5581 = vmatmul.mubr.msk.f32.gmra.mrb[40].mxu1 %vm542_vm1, %v7728_v14 }
 0x7a0   :  { %5583 = vmatprep.mubr.msk.f32.mxu1 %vm542_vm1, %v7754_v42  ;;  %v8838_v42 = vld [vmem:[#allocation18_spill] sm:$0xff] }
 0x7a2   :  { %v8046_v12 = vpop.permute.xlu1 %2719 }
 0x7a3   :  { %5584 = vmatmul.mubr.msk.f32.gmra.mrb[42].mxu1 %vm542_vm1, %v7752_v41 }
 0x7a4   :  { %5586 = vmatprep.mubr.msk.f32.mxu1 %vm542_vm1, %v8834_v21 }
 0x7a6   :  { %v8052_v53 = vpop.permute.xlu1 %2723 }
 0x7a7   :  { %5587 = vmatmul.mubr.msk.f32.gmra.mrb[44].mxu1 %vm542_vm1, %v8835_v45  ;;  %v6444_v45 = vunpack.i.l.bf16 %v7990_v48 }
 0x7a8   :  { %5589 = vmatprep.mubr.msk.f32.mxu1 %vm542_vm1, %v8836_v54 }
 0x7a9   :  { %v6057_v54 = vpack.c.bf16 %v6445_v34, %v6444_v45 }
 0x7aa   :  { %v8058_v14 = vpop.permute.xlu1 %2727 }
 0x7ab   :  { %5590 = vmatmul.mubr.msk.f32.gmra.mrb[46].mxu1 %vm542_vm1, %v8837_v11  ;;  %v6450_v11 = vunpack.i.h.bf16 %v7970_v35 }
 0x7ac   :  { %5592 = vmatprep.mubr.msk.f32.mxu1 %vm542_vm1, %v8838_v42  ;;  %v6449_v42 = vunpack.i.l.bf16 %v7970_v35 }
 0x7ae   :  { %v8064_v41 = vpop.permute.xlu1 %2731 }
 0x7af   :  { %5593 = vmatmul.mubr.msk.f32.gmra.mrb[48].mxu1 %vm542_vm1, %v8839_v44  ;;  %v6063_v44 = vpack.c.bf16 %v6450_v11, %v6449_v42 }
 0x7b2   :  { %v6473_v6 = vpop.permute.xlu1 %6472 }
 0x7b3   :  { %v6475_v38 = vunpack.i.h.bf16 %v6473_v6  ;;  %v6474_v26 = vunpack.i.l.bf16 %v6473_v6 }
 0x7b5   :  { %v6091_v1 = vpack.c.bf16 %v6475_v38, %v6474_v26 }
 0x7b7   :  { %6092 = vmatprep.subr.bf16.mxu1 %v6091_v1 }
 0x7b8   :  { %6094 = vmatpush3.bf16.msra.mxu1 %v6091_v1  ;;  %v6455_v1 = vunpack.i.h.bf16 %v8006_v39 }
 0x7b9   :  { %6096 = vmatprep.subr.bf16.mxu1 %v6095_v2 }
 0x7bc   :  { %6098 = vmatpush3.bf16.msra.mxu1 %v6095_v2  ;;  %v6454_v2 = vunpack.i.l.bf16 %v8006_v39  ;;  %v6460_v39 = vunpack.i.h.bf16 %v7974_v58  ;;  %v6465_v58 = vunpack.i.h.bf16 %v8027_v19 }
 0x7be   :  { %v6069_v37 = vpack.c.bf16 %v6455_v1, %v6454_v2 }
 0x7f7   :  { %v5505_v3 = vpop.f32.mrb[24].mxu1 }
 0x7f8   :  { %v1969_v23 = vpop.f32.mrb[25].mxu1 }
 0x7f9   :  { %5545 = vmatprep.mubr.msk.f32.mxu0 %vm542_vm1, %v1969_v23 }
 0x7fa   :  { %5546 = vmatmul.mubr.msk.f32.vlgmr.msra.gmra.mrb[46].mxu0 %vm542_vm1, %v5505_v3 }
 0x7fb   :  { %6044 = vmatpush3.bf16.xpose.msk.msra.mxu0 %vm7331_vm2, %v6039_v43  ;;  %v5508_v20 = vpop.f32.mrb[26].mxu1 }
 0x7fc   :  { %6047 = vmatprep.subr.msk.bf16.mxu0 %vm7331_vm2, %v6045_v4  ;;  %v1979_v29 = vpop.f32.mrb[27].mxu1 }
 0x7fd   :  { %5548 = vmatprep.mubr.msk.f32.mxu0 %vm542_vm1, %v1979_v29 }
 0x7fe   :  { %5549 = vmatmul.mubr.msk.f32.gmra.mrb[48].mxu0 %vm542_vm1, %v5508_v20 }
 0x7ff   :  { %v5511_v30 = vpop.f32.mrb[28].mxu1 }
 0x800   :  { %v1989_v18 = vpop.f32.mrb[29].mxu1 }
 0x801   :  { %5551 = vmatprep.mubr.msk.f32.mxu0 %vm542_vm1, %v1989_v18 }
 0x802   :  { %5552 = vmatmul.mubr.msk.f32.gmra.mrb[50].mxu0 %vm542_vm1, %v5511_v30 }
 0x803   :  { %6050 = vmatpush3.bf16.xpose.msk.msra.mxu0 %vm7331_vm2, %v6045_v4  ;;  %v5514_v43 = vpop.f32.mrb[30].mxu1 }
 0x804   :  { %6053 = vmatprep.subr.msk.bf16.mxu0 %vm7331_vm2, %v6051_v33  ;;  %v1999_v21 = vpop.f32.mrb[31].mxu1 }
 0x805   :  { %5554 = vmatprep.mubr.msk.f32.mxu0 %vm542_vm1, %v1999_v21 }
 0x806   :  { %5555 = vmatmul.mubr.msk.f32.gmra.mrb[52].mxu0 %vm542_vm1, %v5514_v43 }
 0x80b   :  { %6056 = vmatpush3.bf16.xpose.msk.msra.mxu0 %vm7331_vm2, %v6051_v33 }
 0x80c   :  { %6059 = vmatprep.subr.msk.bf16.mxu0 %vm7331_vm2, %v6057_v54 }
 0x813   :  { %6062 = vmatpush3.bf16.xpose.msk.msra.mxu0 %vm7331_vm2, %v6057_v54 }
 0x814   :  { %6065 = vmatprep.subr.msk.bf16.mxu0 %vm7331_vm2, %v6063_v44 }
 0x862   :  { %v5533_v48 = vpop.f32.mrb[40].mxu0  ;;  %v5542_v56 = vpop.f32.mrb[32].mxu1 }
 0x863   :  { %v2122_v6 = vpop.f32.mrb[41].mxu0  ;;  %v2152_v24 = vpop.f32.mrb[33].mxu1 }
 0x864   :  { %5557 = vmatprep.mubr.msk.f32.mxu0 %vm542_vm1, %v2122_v6 }
 0x865   :  { %5558 = vmatmul.mubr.msk.f32.gmra.mrb[54].mxu0 %vm542_vm1, %v5533_v48 }
 0x866   :  { %v5536_v51 = vpop.f32.mrb[42].mxu0 }
 0x867   :  { %v2132_v38 = vpop.f32.mrb[43].mxu0 }
 0x868   :  { %5560 = vmatprep.mubr.msk.f32.mxu0 %vm542_vm1, %v2132_v38 }
 0x869   :  { %5561 = vmatmul.mubr.msk.f32.gmra.mrb[56].mxu0 %vm542_vm1, %v5536_v51 }
 0x86a   :  { %v5539_v35 = vpop.f32.mrb[44].mxu0 }
 0x86b   :  { %v2142_v26 = vpop.f32.mrb[45].mxu0 }
 0x86c   :  { %5563 = vmatprep.mubr.msk.f32.mxu0 %vm542_vm1, %v2142_v26 }
 0x86d   :  { %5564 = vmatmul.mubr.msk.f32.gmra.mrb[58].mxu0 %vm542_vm1, %v5539_v35 }
 0x86e   :  { %5566 = vmatprep.mubr.msk.f32.mxu0 %vm542_vm1, %v2152_v24 }
 0x871   :  { %5567 = vmatmul.mubr.msk.f32.gmra.mrb[60].mxu0 %vm542_vm1, %v5542_v56 }
 0x872   :  { %5611 = vmatprep.mubr.msk.f32.mxu0 %vm542_vm1, %v7992_v55 }
 0x875   :  { %5612 = vmatmul.mubr.msk.f32.vlgmr.msra.gmra.mrb[62].mxu0 %vm542_vm1, %v7972_v59  ;;  %v6075_v59 = vpack.c.bf16 %v6460_v39, %v6459_v10 }
 0x876   :  { %6068 = vmatpush3.bf16.xpose.msk.msra.mxu0 %vm7331_vm2, %v6063_v44  ;;  %5614 = vmatprep.mubr.msk.f32.mxu0 %vm542_vm1, %v8017_v62 }
 0x877   :  { %6071 = vmatprep.subr.msk.bf16.mxu0 %vm7331_vm2, %v6069_v37 }
 0x879   :  { %5615 = vmatmul.mubr.msk.f32.gmra.mrb[64].mxu0 %vm542_vm1, %v7976_v63  ;;  %v6464_v63 = vunpack.i.l.bf16 %v8027_v19 }
 0x87a   :  { %5617 = vmatprep.mubr.msk.f32.mxu0 %vm542_vm1, %v7978_v47 }
 0x87b   :  { %v6081_v47 = vpack.c.bf16 %v6465_v58, %v6464_v63 }
 0x87d   :  { %5618 = vmatmul.mubr.msk.f32.gmra.mrb[66].mxu0 %vm542_vm1, %v8034_v22 }
 0x87e   :  { %6074 = vmatpush3.bf16.xpose.msk.msra.mxu0 %vm7331_vm2, %v6069_v37  ;;  %5620 = vmatprep.mubr.msk.f32.mxu0 %vm542_vm1, %v7980_v31 }
 0x87f   :  { %6077 = vmatprep.subr.msk.bf16.mxu0 %vm7331_vm2, %v6075_v59 }
 0x881   :  { %5621 = vmatmul.mubr.msk.f32.gmra.mrb[68].mxu0 %vm542_vm1, %v8040_v61 }
 0x882   :  { %5639 = vmatprep.mubr.msk.f32.mxu0 %vm542_vm1, %v7982_v60 }
 0x886   :  { %6080 = vmatpush3.bf16.xpose.msk.msra.mxu0 %vm7331_vm2, %v6075_v59 }
 0x887   :  { %6083 = vmatprep.subr.msk.bf16.mxu0 %vm7331_vm2, %v6081_v47 }
 0x88e   :  { %6086 = vmatpush3.bf16.xpose.msk.msra.mxu0 %vm7331_vm2, %v6081_v47 }
 0x895   :  { %5640 = vmatmul.mubr.msk.f32.vlgmr.msra.gmra.mrb[70].mxu0 %vm542_vm1, %v8046_v12 }
 0x896   :  { %5642 = vmatprep.mubr.msk.f32.mxu0 %vm542_vm1, %v7984_v9 }
 0x899   :  { %5643 = vmatmul.mubr.msk.f32.gmra.mrb[72].mxu0 %vm542_vm1, %v8052_v53 }
 0x89a   :  { %5645 = vmatprep.mubr.msk.f32.mxu0 %vm542_vm1, %v7986_v17 }
 0x89d   :  { %5646 = vmatmul.mubr.msk.f32.gmra.mrb[74].mxu0 %vm542_vm1, %v8058_v14 }
 0x89e   :  { %5648 = vmatprep.mubr.msk.f32.mxu0 %vm542_vm1, %v7988_v27 }
 0x8a1   :  { %5649 = vmatmul.mubr.msk.f32.gmra.mrb[76].mxu0 %vm542_vm1, %v8064_v41 }
 0x8cd   :  { %v8160_v31 = vpop.f32.mrb[46].mxu0 }
 0x8ce   :  { %v8162_v60 = vpop.f32.mrb[47].mxu0 }
 0x8d1   :  { %v8164_v9 = vpop.f32.mrb[48].mxu0 }
 0x8d2   :  { %v8166_v55 = vpop.f32.mrb[49].mxu0 }
 0x8d5   :  { %v8168_v62 = vpop.f32.mrb[50].mxu0 }
 0x8d6   :  { %v8170_v17 = vpop.f32.mrb[51].mxu0 }
 0x8d9   :  { %v8172_v19 = vpop.f32.mrb[52].mxu0 }
 0x8da   :  { %v8174_v22 = vpop.f32.mrb[53].mxu0 }
 0x938   :  { %v8176_v27 = vpop.f32.mrb[54].mxu0 }
 0x939   :  { %v8178_v61 = vpop.f32.mrb[55].mxu0 }
 0x93c   :  { %v8180_v12 = vpop.f32.mrb[56].mxu0 }
 0x93d   :  { %v8182_v53 = vpop.f32.mrb[57].mxu0 }
 0x940   :  { %v8184_v14 = vpop.f32.mrb[58].mxu0 }
 0x941   :  { %v8186_v41 = vpop.f32.mrb[59].mxu0 }
 0x944   :  { %v8188_v3 = vpop.f32.mrb[60].mxu0 }
 0x945   :  { %v8190_v23 = vpop.f32.mrb[61].mxu0 }
 0x948   :  { %v5613_v4 = vpop.f32.mrb[62].mxu0 }
 0x949   :  { %v2678_v20 = vpop.f32.mrb[63].mxu0  ;;  %v2889_v29 = vsel %vm857_vm3, %v5613_v4, -inf }
 0x94a   :  { %2890 = vmax.xlane.f32.xlu1 %v2889_v29  ;;  %v2886_v25 = vsel %vm857_vm3, %v2678_v20, -inf }
 0x94b   :  { %2887 = vmax.xlane.f32.xlu0 %v2886_v25 }
 0x94c   :  { %v5616_v57 = vpop.f32.mrb[64].mxu0 }
 0x94d   :  { %v2688_v30 = vpop.f32.mrb[65].mxu0  ;;  %v2895_v18 = vsel %vm857_vm3, %v5616_v57, -inf }
 0x94e   :  { %v2892_v34 = vsel %vm857_vm3, %v2688_v30, -inf }
 0x94f   :  { %2896 = vmax.xlane.f32.xlu0 %v2895_v18 }
 0x950   :  { %v5619_v33 = vpop.f32.mrb[66].mxu0 }
 0x951   :  { %v8195_v43 = vpop.f32.mrb[67].mxu0  ;;  %v2901_v21 = vsel %vm857_vm3, %v5619_v33, -inf }
 0x952   :  { %2902 = vmax.xlane.f32.xlu1 %v2901_v21  ;;  %v2898_v42 = vsel %vm857_vm3, %v8195_v43, -inf }
 0x953   :  { %2893 = vmax.xlane.f32.xlu0 %v2892_v34 }
 0x954   :  { %v5622_v45 = vpop.f32.mrb[68].mxu0 }
 0x955   :  { %v8199_v54 = vpop.f32.mrb[69].mxu0  ;;  %v2907_v11 = vsel %vm857_vm3, %v5622_v45, -inf }
 0x956   :  { %2908 = vmax.xlane.f32.xlu1 %v2907_v11  ;;  %v2904_v44 = vsel %vm857_vm3, %v8199_v54, -inf }
 0x957   :  { %2899 = vmax.xlane.f32.xlu0 %v2898_v42 }
 0x95b   :  { %2905 = vmax.xlane.f32.xlu0 %v2904_v44 }
 0x968   :  { %v8206_v48 = vpop.f32.mrb[70].mxu0 }
 0x969   :  { %v8208_v56 = vpop.f32.mrb[71].mxu0  ;;  %v2913_v6 = vsel %vm857_vm3, %v8206_v48, -inf }
 0x96a   :  { %2914 = vmax.xlane.f32.xlu1 %v2913_v6  ;;  %v2910_v24 = vsel %vm857_vm3, %v8208_v56, -inf }
 0x96b   :  { %2911 = vmax.xlane.f32.xlu0 %v2910_v24 }
 0x96c   :  { %v8214_v51 = vpop.f32.mrb[72].mxu0 }
 0x96d   :  { %v8216_v38 = vpop.f32.mrb[73].mxu0  ;;  %v2919_v35 = vsel %vm857_vm3, %v8214_v51, -inf }
 0x96e   :  { %2920 = vmax.xlane.f32.xlu1 %v2919_v35  ;;  %v2916_v26 = vsel %vm857_vm3, %v8216_v38, -inf }
 0x96f   :  { %2917 = vmax.xlane.f32.xlu0 %v2916_v26 }
 0x970   :  { %v8222_v1 = vpop.f32.mrb[74].mxu0 }
 0x971   :  { %v8224_v2 = vpop.f32.mrb[75].mxu0  ;;  %v2925_v37 = vsel %vm857_vm3, %v8222_v1, -inf }
 0x972   :  { %2926 = vmax.xlane.f32.xlu1 %v2925_v37  ;;  %v2922_v39 = vsel %vm857_vm3, %v8224_v2, -inf }
 0x973   :  { %2923 = vmax.xlane.f32.xlu0 %v2922_v39 }
 0x974   :  { %v8230_v10 = vpop.f32.mrb[76].mxu0 }
 0x975   :  { %v8232_v59 = vpop.f32.mrb[77].mxu0  ;;  %v2931_v58 = vsel %vm857_vm3, %v8230_v10, -inf }
 0x976   :  { %2932 = vmax.xlane.f32.xlu1 %v2931_v58  ;;  %v2928_v63 = vsel %vm857_vm3, %v8232_v59, -inf }
 0x987   :  { %6482 = vrot.lane.b32.xlu1 %v7251_v16, %s6897_s27 }
 0x989   :  { %6487 = vrot.lane.b32.xlu0 %v7258_v0, %s6897_s27 }
 0x9a8   :  { %2929 = vmax.xlane.f32.xlu0 %v2928_v63 }
 0x9be   :  { %6492 = vrot.lane.b32.xlu0 %v7272_v40, %s6897_s27 }
 0x9d7   :  { %v2891_v47 = vpop.xlane.xlu1 %2890 }
 0x9d8   :  { %v2935_v29 = vsub.f32 %v5613_v4, %v2891_v47  ;;  %v2888_v25 = vpop.xlane.xlu0 %2887 }
 0x9d9   :  { %v2934_v18 = vsub.f32 %v2678_v20, %v2888_v25 }
 0x9da   :  { %v2952_v21 = vmul.f32 1.442695, %v2935_v29 }
 0x9db   :  { %v2950_v34 = vmul.f32 1.442695, %v2934_v18 }
 0x9dc   :  { %6746 = vpow2.f32 %v2952_v21  ;;  %v2897_v11 = vpop.xlane.xlu0 %2896 }
 0x9dd   :  { %6748 = vpow2.f32 %v2950_v34  ;;  %v2937_v42 = vsub.f32 %v5616_v57, %v2897_v11 }
 0x9df   :  { %v2956_v44 = vmul.f32 1.442695, %v2937_v42  ;;  %v2903_v6 = vpop.xlane.xlu1 %2902 }
 0x9e0   :  { %v2939_v24 = vsub.f32 %v5619_v33, %v2903_v6  ;;  %v2894_v35 = vpop.xlane.xlu0 %2893 }
 0x9e1   :  { %6750 = vpow2.f32 %v2956_v44  ;;  %v2936_v26 = vsub.f32 %v2688_v30, %v2894_v35 }
 0x9e2   :  { %v2960_v37 = vmul.f32 1.442695, %v2939_v24 }
 0x9e3   :  { %v2954_v39 = vmul.f32 1.442695, %v2936_v26  ;;  %v2909_v58 = vpop.xlane.xlu1 %2908 }
 0x9e4   :  { %6752 = vpow2.f32 %v2960_v37  ;;  %v2941_v63 = vsub.f32 %v5622_v45, %v2909_v58  ;;  %v2900_v4 = vpop.xlane.xlu0 %2899 }
 0x9e5   :  { %6754 = vpow2.f32 %v2954_v39  ;;  %v2938_v20 = vsub.f32 %v8195_v43, %v2900_v4 }
 0x9e6   :  { %v8245_v47 = vpop.eup %6746  ;;  %v2964_v29 = vmul.f32 1.442695, %v2941_v63 }
 0x9e7   :  { %v8247_v25 = vpop.eup %6748  ;;  %v2958_v57 = vmul.f32 1.442695, %v2938_v20  ;;  %v2985_v33 = vsel %vm857_vm3, %v8245_v47, 0.0 }
 0x9e8   :  { %6756 = vpow2.f32 %v2964_v29  ;;  %v2906_v30 = vpop.xlane.xlu0 %2905  ;;  %2986 = vadd.xlane.f32.xlu1 %v2985_v33  ;;  %v2982_v18 = vsel %vm857_vm3, %v8247_v25, 0.0 }
 0x9e9   :  { %6758 = vpow2.f32 %v2958_v57  ;;  %v2940_v45 = vsub.f32 %v8199_v54, %v2906_v30  ;;  %2983 = vadd.xlane.f32.xlu0 %v2982_v18 }
 0x9eb   :  { %v8254_v43 = vpop.eup %6750  ;;  %v2962_v21 = vmul.f32 1.442695, %v2940_v45 }
 0x9ec   :  { %v2991_v34 = vsel %vm857_vm3, %v8254_v43, 0.0 }
 0x9ed   :  { %6760 = vpow2.f32 %v2962_v21  ;;  %2992 = vadd.xlane.f32.xlu1 %v2991_v34 }
 0x9ee   :  { %v8258_v11 = vpop.eup %6752 }
 0x9ef   :  { %v8260_v42 = vpop.eup %6754  ;;  %v2997_v44 = vsel %vm857_vm3, %v8258_v11, 0.0 }
 0x9f0   :  { %v2988_v6 = vsel %vm857_vm3, %v8260_v42, 0.0 }
 0x9f1   :  { %2998 = vadd.xlane.f32.xlu1 %v2997_v44  ;;  %2989 = vadd.xlane.f32.xlu0 %v2988_v6 }
 0x9f2   :  { %v8266_v54 = vpop.eup %6756 }
 0x9f3   :  { %v8268_v24 = vpop.eup %6758  ;;  %v3003_v35 = vsel %vm857_vm3, %v8266_v54, 0.0 }
 0x9f4   :  { %v2994_v26 = vsel %vm857_vm3, %v8268_v24, 0.0 }
 0x9f5   :  { %3004 = vadd.xlane.f32.xlu1 %v3003_v35  ;;  %2995 = vadd.xlane.f32.xlu0 %v2994_v26 }
 0x9f7   :  { %v8274_v37 = vpop.eup %6760  ;;  %v2915_v39 = vpop.xlane.xlu1 %2914 }
 0x9f8   :  { %v2943_v58 = vsub.f32 %v8206_v48, %v2915_v39  ;;  %v2912_v63 = vpop.xlane.xlu0 %2911  ;;  %v3000_v4 = vsel %vm857_vm3, %v8274_v37, 0.0 }
 0x9f9   :  { %v2942_v20 = vsub.f32 %v8208_v56, %v2912_v63  ;;  %3001 = vadd.xlane.f32.xlu1 %v3000_v4 }
 0x9fa   :  { %v2968_v29 = vmul.f32 1.442695, %v2943_v58 }
 0x9fb   :  { %v2966_v57 = vmul.f32 1.442695, %v2942_v20  ;;  %v2921_v33 = vpop.xlane.xlu1 %2920 }
 0x9fc   :  { %6762 = vpow2.f32 %v2968_v29  ;;  %v2945_v30 = vsub.f32 %v8214_v51, %v2921_v33  ;;  %v2918_v18 = vpop.xlane.xlu0 %2917 }
 0x9fd   :  { %6764 = vpow2.f32 %v2966_v57  ;;  %v2944_v45 = vsub.f32 %v8216_v38, %v2918_v18 }
 0x9fe   :  { %v2972_v21 = vmul.f32 1.442695, %v2945_v30 }
 0x9ff   :  { %v2970_v34 = vmul.f32 1.442695, %v2944_v45  ;;  %v2927_v48 = vpop.xlane.xlu1 %2926 }
 0xa00   :  { %6766 = vpow2.f32 %v2972_v21  ;;  %v2947_v44 = vsub.f32 %v8222_v1, %v2927_v48  ;;  %v2924_v6 = vpop.xlane.xlu0 %2923 }
 0xa01   :  { %v2946_v56 = vsub.f32 %v8224_v2, %v2924_v6  ;;  %6768 = vpow2.f32 %v2970_v34 }
 0xa02   :  { %v2976_v35 = vmul.f32 1.442695, %v2947_v44 }
 0xa03   :  { %v2974_v26 = vmul.f32 1.442695, %v2946_v56  ;;  %v2933_v39 = vpop.xlane.xlu1 %2932 }
 0xa04   :  { %v2949_v58 = vsub.f32 %v8230_v10, %v2933_v39  ;;  %v6488_v51 = vpop.permute.xlu0 %6487 }
 0xa05   :  { %6770 = vpow2.f32 %v2974_v26  ;;  %v6490_v63 = vunpack.i.h.bf16 %v6488_v51  ;;  %v6489_v4 = vunpack.i.l.bf16 %v6488_v51 }
 0xa06   :  { %v8285_v38 = vpop.eup %6762  ;;  %6772 = vpow2.f32 %v2976_v35  ;;  %v2980_v20 = vmul.f32 1.442695, %v2949_v58 }
 0xa07   :  { %v8287_v29 = vpop.eup %6764  ;;  %v6103_v1 = vpack.c.bf16 %v6490_v63, %v6489_v4  ;;  %v6483_v57 = vpop.permute.xlu1 %6482  ;;  %v3009_v2 = vsel %vm857_vm3, %v8285_v38, 0.0 }
 0xa08   :  { %v6485_v33 = vunpack.i.h.bf16 %v6483_v57  ;;  %v6484_v30 = vunpack.i.l.bf16 %v6483_v57  ;;  %3010 = vadd.xlane.f32.xlu1 %v3009_v2  ;;  %v3006_v10 = vsel %vm857_vm3, %v8287_v29, 0.0  ;;  %6774 = vpow2.f32 %v2980_v20 }
 0xa09   :  { %6104 = vmatprep.subr.bf16.mxu0 %v6103_v1  ;;  %3007 = vadd.xlane.f32.xlu0 %v3006_v10 }
 0xa0a   :  { %v8293_v18 = vpop.eup %6766  ;;  %v6099_v45 = vpack.c.bf16 %v6485_v33, %v6484_v30  ;;  %6106 = vmatpush3.bf16.msra.mxu0 %v6103_v1  ;;  %v8845_v33 = vld [vmem:[#allocation6_spill] sm:$0xff] }
 0xa0b   :  { %v3015_v21 = vsel %vm857_vm3, %v8293_v18, 0.0  ;;  %v8297_v34 = vpop.eup %6768 }
 0xa0c   :  { %3016 = vadd.xlane.f32.xlu1 %v3015_v21  ;;  %6100 = vmatprep.subr.bf16.mxu1 %v6099_v45  ;;  %v3012_v44 = vsel %vm857_vm3, %v8297_v34, 0.0 }
 0xa0d   :  { %6102 = vmatpush3.bf16.msra.mxu1 %v6099_v45  ;;  %v8846_v45 = vld [vmem:[#allocation7_spill] sm:$0xff] }
 0xa0f   :  { %v8299_v48 = vpop.eup %6770 }
 0xa10   :  { %v8303_v6 = vpop.eup %6772  ;;  %3013 = vadd.xlane.f32.xlu1 %v3012_v44  ;;  %v3018_v56 = vsel %vm857_vm3, %v8299_v48, 0.0  ;;  %v8847_v44 = vld [vmem:[#allocation8_spill] sm:$0xff] }
 0xa11   :  { %3019 = vadd.xlane.f32.xlu0 %v3018_v56  ;;  %v3021_v35 = vsel %vm857_vm3, %v8303_v6, 0.0 }
 0xa12   :  { %v8309_v26 = vpop.eup %6774 }
 0xa13   :  { %v3027_v39 = vsel %vm857_vm3, %v8309_v26, 0.0 }
 0xa14   :  { %3022 = vadd.xlane.f32.xlu1 %v3021_v35 }
 0xa18   :  { %3028 = vadd.xlane.f32.xlu1 %v3027_v39  ;;  %v8848_v39 = vld [vmem:[#allocation10_spill] sm:$0xff] }
 0xa27   :  { %6502 = vrot.lane.b32.xlu0 %v7292_v36, %s6897_s27 }
 0xa2b   :  { %6507 = vrot.lane.b32.xlu0 %v7217_v5, %s6898_s9 }
 0xa2f   :  { %6512 = vrot.lane.b32.xlu0 %v7231_v8, %s6898_s9 }
 0xa33   :  { %6517 = vrot.lane.b32.xlu0 %v7241_v15, %s6898_s9 }
 0xa35   :  { %v2930_v58 = vpop.xlane.xlu0 %2929 }
 0xa36   :  { %v2948_v51 = vsub.f32 %v8232_v59, %v2930_v58 }
 0xa37   :  { %6527 = vrot.lane.b32.xlu0 %v7251_v16, %s6898_s9 }
 0xa38   :  { %v2978_v63 = vmul.f32 1.442695, %v2948_v51 }
 0xa39   :  { %v6493_v4 = vpop.permute.xlu0 %6492 }
 0xa3a   :  { %6776 = vpow2.f32 %v2978_v63  ;;  %v6495_v20 = vunpack.i.h.bf16 %v6493_v4  ;;  %v6494_v1 = vunpack.i.l.bf16 %v6493_v4 }
 0xa3b   :  { %6537 = vrot.lane.b32.xlu0 %v7282_v46, %s6898_s9 }
 0xa3c   :  { %v6107_v57 = vpack.c.bf16 %v6495_v20, %v6494_v1 }
 0xa3e   :  { %6108 = vmatprep.subr.bf16.mxu0 %v6107_v57 }
 0xa3f   :  { %3580 = vrot.lane.b32.xlu0 %v7310_v49, %s6899_s10  ;;  %6110 = vmatpush3.bf16.msra.mxu0 %v6107_v57  ;;  %v8840_v49 = vld [vmem:[#allocation9_spill] sm:$0xff]  ;;  %v8849_v57 = vld [vmem:[#allocation12_spill] sm:$0xff] }
 0xa43   :  { %3584 = vrot.lane.b32.xlu0 %v7316_v50, %s6899_s10  ;;  %v8841_v50 = vld [vmem:[#allocation11_spill] sm:$0xff] }
 0xa44   :  { %v8330_v59 = vpop.eup %6776 }
 0xa45   :  { %v3024_v2 = vsel %vm857_vm3, %v8330_v59, 0.0 }
 0xa46   :  { %3025 = vadd.xlane.f32.xlu1 %v3024_v2 }
 0xa47   :  { %3586 = vrot.lane.b32.xlu0 %v8830_v52, %s6899_s10  ;;  %v8844_v52 = vld [vmem:[#allocation5_spill] sm:$0xff] }
 0xa4b   :  { %3590 = vrot.lane.b32.xlu0 %v7382_v13, %s6899_s10  ;;  %v3368_v13 = vld [vmem:[%s8793_s5 + $0x10] sm:$0xff] }
 0xa4c   :  { %5707 = vmatprep.subr.mxu1 %v3368_v13 }
 0xa4f   :  { %3747 = vrot.lane.b32.xlu0 %v7260_v32, %s6899_s10  ;;  %v8842_v32 = vld [vmem:[#allocation2_spill] sm:$0xff] }
 0xa53   :  { %3751 = vrot.lane.b32.xlu0 %v7406_v7, %s6899_s10  ;;  %v8843_v7 = vld [vmem:[#allocation3_spill] sm:$0xff] }
 0xa57   :  { %3755 = vrot.lane.b32.xlu0 %v8840_v49, %s6899_s10  ;;  %6497 = vrot.lane.b32.xlu1 %v7282_v46, %s6897_s27 }
 0xa5b   :  { %3759 = vrot.lane.b32.xlu0 %v8841_v50, %s6899_s10  ;;  %6522 = vrot.lane.b32.xlu1 %v7258_v0, %s6898_s9 }
 0xa5f   :  { %6532 = vrot.lane.b32.xlu1 %v7272_v40, %s6898_s9 }
 0xa63   :  { %3578 = vrot.lane.b32.xlu1 %v8842_v32, %s6899_s10 }
 0xa67   :  { %3582 = vrot.lane.b32.xlu1 %v8843_v7, %s6899_s10 }
 0xa6b   :  { %6542 = vrot.lane.b32.xlu1 %v7292_v36, %s6898_s9 }
 0xa6f   :  { %3588 = vrot.lane.b32.xlu1 %v8844_v52, %s6899_s10 }
 0xa73   :  { %3592 = vrot.lane.b32.xlu1 %v8845_v33, %s6899_s10 }
 0xa75   :  { %v2987_v30 = vpop.xlane.xlu1 %2986 }
 0xa76   :  { %6778 = vrcp.f32 %v2987_v30  ;;  %v2984_v10 = vpop.xlane.xlu0 %2983 }
 0xa77   :  { %3749 = vrot.lane.b32.xlu1 %v8846_v45, %s6899_s10  ;;  %6780 = vrcp.f32 %v2984_v10 }
 0xa7a   :  { %v2993_v21 = vpop.xlane.xlu1 %2992 }
 0xa7b   :  { %3753 = vrot.lane.b32.xlu1 %v8847_v44, %s6899_s10  ;;  %6782 = vrcp.f32 %v2993_v21 }
 0xa7e   :  { %v2999_v56 = vpop.xlane.xlu1 %2998  ;;  %v2990_v35 = vpop.xlane.xlu0 %2989 }
 0xa7f   :  { %3757 = vrot.lane.b32.xlu1 %v8848_v39, %s6899_s10  ;;  %6784 = vrcp.f32 %v2990_v35 }
 0xa80   :  { %v6779_v58 = vpop.eup %6778  ;;  %6786 = vrcp.f32 %v2999_v56 }
 0xa81   :  { %v6781_v51 = vpop.eup %6780  ;;  %v3047_v1 = vmul.f32 %v6779_v58, %v8245_v47 }
 0xa82   :  { %v3005_v63 = vpop.xlane.xlu1 %3004  ;;  %v2996_v4 = vpop.xlane.xlu0 %2995  ;;  %v3046_v20 = vmul.f32 %v6781_v51, %v8247_v25 }
 0xa83   :  { %3761 = vrot.lane.b32.xlu1 %v8849_v57, %s6899_s10  ;;  %6788 = vrcp.f32 %v2996_v4 }
 0xa84   :  { %5667 = vmatprep.mubr.msk.f32.mxu1 %vm857_vm3, %v3046_v20  ;;  %6790 = vrcp.f32 %v3005_v63 }
 0xa85   :  { %5668 = vmatmul.mubr.msk.f32.vlgmr.msra.gmra.mrb[50].mxu1 %vm857_vm3, %v3047_v1  ;;  %v6783_v49 = vpop.eup %6782 }
 0xa86   :  { %v3002_v2 = vpop.xlane.xlu1 %3001  ;;  %5708 = vmatpush3.msra.mxu1 %v3368_v13  ;;  %v3049_v25 = vmul.f32 %v6783_v49, %v8254_v43 }
 0xa87   :  { %6792 = vrcp.f32 %v3002_v2 }
 0xa89   :  { %v6785_v50 = vpop.eup %6784 }
 0xa8a   :  { %v3048_v32 = vmul.f32 %v6785_v50, %v8260_v42  ;;  %v6787_v47 = vpop.eup %6786 }
 0xa8b   :  { %v3051_v30 = vmul.f32 %v6787_v47, %v8258_v11 }
 0xa8c   :  { %5670 = vmatprep.mubr.msk.f32.mxu1 %vm857_vm3, %v3048_v32 }
 0xa8d   :  { %v6789_v7 = vpop.eup %6788  ;;  %5671 = vmatmul.mubr.msk.f32.gmra.mrb[52].mxu1 %vm857_vm3, %v3049_v25 }
 0xa8e   :  { %v3050_v52 = vmul.f32 %v6789_v7, %v8268_v24  ;;  %v6791_v33 = vpop.eup %6790 }
 0xa8f   :  { %v3053_v43 = vmul.f32 %v6791_v33, %v8266_v54 }
 0xa90   :  { %5673 = vmatprep.mubr.msk.f32.mxu1 %vm857_vm3, %v3050_v52 }
 0xa91   :  { %v6793_v10 = vpop.eup %6792  ;;  %5674 = vmatmul.mubr.msk.f32.gmra.mrb[54].mxu1 %vm857_vm3, %v3051_v30 }
 0xa92   :  { %v3052_v42 = vmul.f32 %v6793_v10, %v8274_v37 }
 0xa94   :  { %5676 = vmatprep.mubr.msk.f32.mxu1 %vm857_vm3, %v3052_v42 }
 0xa95   :  { %5677 = vmatmul.mubr.msk.f32.gmra.mrb[56].mxu1 %vm857_vm3, %v3053_v43  ;;  %v3011_v11 = vpop.xlane.xlu1 %3010 }
 0xa96   :  { %v3008_v13 = vpop.xlane.xlu0 %3007 }
 0xa97   :  { %6794 = vrcp.f32 %v3008_v13 }
 0xa98   :  { %6796 = vrcp.f32 %v3011_v11 }
 0xa99   :  { %v3017_v21 = vpop.xlane.xlu1 %3016 }
 0xa9d   :  { %v3014_v44 = vpop.xlane.xlu1 %3013 }
 0xa9e   :  { %v3020_v35 = vpop.xlane.xlu0 %3019  ;;  %6798 = vrcp.f32 %v3014_v44 }
 0xa9f   :  { %6800 = vrcp.f32 %v3017_v21 }
 0xaa0   :  { %6802 = vrcp.f32 %v3020_v35 }
 0xaa1   :  { %v6795_v45 = vpop.eup %6794  ;;  %v3023_v56 = vpop.xlane.xlu1 %3022 }
 0xaa2   :  { %v3054_v24 = vmul.f32 %v6795_v45, %v8287_v29  ;;  %v6503_v37 = vpop.permute.xlu0 %6502  ;;  %6804 = vrcp.f32 %v3023_v56  ;;  %v6797_v7 = vpop.eup %6796 }
 0xaa3   :  { %v6505_v54 = vunpack.i.h.bf16 %v6503_v37  ;;  %v6504_v51 = vunpack.i.l.bf16 %v6503_v37  ;;  %v3055_v30 = vmul.f32 %v6797_v7, %v8285_v38 }
 0xaa4   :  { %5695 = vmatprep.mubr.msk.f32.mxu0 %vm857_vm3, %v3054_v24 }
 0xaa5   :  { %v3029_v39 = vpop.xlane.xlu1 %3028  ;;  %v6115_v57 = vpack.c.bf16 %v6505_v54, %v6504_v51 }
 0xaa6   :  { %v6508_v1 = vpop.permute.xlu0 %6507 }
 0xaa7   :  { %v6510_v49 = vunpack.i.h.bf16 %v6508_v1  ;;  %v6509_v50 = vunpack.i.l.bf16 %v6508_v1 }
 0xaa8   :  { %v6799_v52 = vpop.eup %6798 }
 0xaa9   :  { %v6119_v33 = vpack.c.bf16 %v6510_v49, %v6509_v50  ;;  %v6801_v42 = vpop.eup %6800  ;;  %v3056_v43 = vmul.f32 %v6799_v52, %v8297_v34 }
 0xaaa   :  { %v6513_v10 = vpop.permute.xlu0 %6512  ;;  %v6803_v13 = vpop.eup %6802  ;;  %v3057_v11 = vmul.f32 %v6801_v42, %v8293_v18 }
 0xaab   :  { %v6515_v45 = vunpack.i.h.bf16 %v6513_v10  ;;  %v6514_v24 = vunpack.i.l.bf16 %v6513_v10  ;;  %v3058_v44 = vmul.f32 %v6803_v13, %v8299_v48 }
 0xaac   :  { %v6805_v21 = vpop.eup %6804 }
 0xaad   :  { %v6125_v56 = vpack.c.bf16 %v6515_v45, %v6514_v24 }
 0xaae   :  { %v6518_v35 = vpop.permute.xlu0 %6517 }
 0xaaf   :  { %v6520_v48 = vunpack.i.h.bf16 %v6518_v35 }
 0xad3   :  { %v3026_v58 = vpop.xlane.xlu1 %3025 }
 0xad4   :  { %6806 = vrcp.f32 %v3026_v58  ;;  %v6519_v58 = vunpack.i.l.bf16 %v6518_v35 }
 0xad5   :  { %6808 = vrcp.f32 %v3029_v39  ;;  %v3059_v39 = vmul.f32 %v6805_v21, %v8303_v6  ;;  %v6528_v6 = vpop.permute.xlu0 %6527 }
 0xad7   :  { %v6498_v63 = vpop.permute.xlu1 %6497 }
 0xad8   :  { %v6500_v4 = vunpack.i.h.bf16 %v6498_v63  ;;  %v6499_v20 = vunpack.i.l.bf16 %v6498_v63  ;;  %v6131_v63 = vpack.c.bf16 %v6520_v48, %v6519_v58 }
 0xad9   :  { %v6538_v1 = vpop.permute.xlu0 %6537 }
 0xada   :  { %v6111_v29 = vpack.c.bf16 %v6500_v4, %v6499_v20  ;;  %v6529_v4 = vunpack.i.l.bf16 %v6528_v6  ;;  %v6540_v42 = vunpack.i.h.bf16 %v6538_v1 }
 0xadb   :  { %v6523_v2 = vpop.permute.xlu1 %6522 }
 0xadc   :  { %v6525_v32 = vunpack.i.h.bf16 %v6523_v2  ;;  %v6524_v25 = vunpack.i.l.bf16 %v6523_v2  ;;  %6112 = vmatprep.subr.bf16.mxu0 %v6111_v29 }
 0xadd   :  { %6114 = vmatpush3.bf16.msra.mxu0 %v6111_v29 }
 0xade   :  { %v8391_v47 = vpack.c.bf16 %v6525_v32, %v6524_v25  ;;  %6116 = vmatprep.subr.bf16.mxu0 %v6115_v57  ;;  %v6807_v38 = vpop.eup %6806 }
 0xadf   :  { %v6533_v34 = vpop.permute.xlu1 %6532  ;;  %v6809_v37 = vpop.eup %6808  ;;  %v3060_v18 = vmul.f32 %v6807_v38, %v8330_v59  ;;  %v6530_v59 = vunpack.i.h.bf16 %v6528_v6 }
 0xae0   :  { %6145 = vmatprep.subr.msk.bf16.mxu1 %vm7331_vm2, %v8391_v47  ;;  %v3061_v54 = vmul.f32 %v6809_v37, %v8309_v26  ;;  %v3581_v26 = vpop.permute.xlu0 %3580  ;;  %v6535_v7 = vunpack.i.h.bf16 %v6533_v34  ;;  %v6534_v52 = vunpack.i.l.bf16 %v6533_v34 }
 0xae1   :  { %6118 = vmatpush3.bf16.msra.mxu0 %v6115_v57  ;;  %v6137_v20 = vpack.c.bf16 %v6530_v59, %v6529_v4 }
 0xae2   :  { %6121 = vmatprep.subr.msk.bf16.mxu0 %vm7331_vm2, %v6119_v33  ;;  %v6149_v10 = vpack.c.bf16 %v6535_v7, %v6534_v52 }
 0xae3   :  { %v3579_v51 = vpop.permute.xlu1 %3578 }
 0xae4   :  { %5696 = vmatmul.mubr.msk.f32.vlgmr.msra.gmra.mrb[78].mxu0 %vm857_vm3, %v3055_v30  ;;  %v3585_v57 = vpop.permute.xlu0 %3584 }
 0xae5   :  { %5698 = vmatprep.mubr.msk.f32.mxu0 %vm857_vm3, %v3056_v43  ;;  %v6539_v43 = vunpack.i.l.bf16 %v6538_v1 }
 0xae7   :  { %v3583_v29 = vpop.permute.xlu1 %3582  ;;  %v6155_v24 = vpack.c.bf16 %v6540_v42, %v6539_v43 }
 0xae8   :  { %5699 = vmatmul.mubr.msk.f32.gmra.mrb[80].mxu0 %vm857_vm3, %v3057_v11  ;;  %v3587_v49 = vpop.permute.xlu0 %3586 }
 0xae9   :  { %5701 = vmatprep.mubr.msk.f32.mxu0 %vm857_vm3, %v3058_v44 }
 0xaea   :  { %6124 = vmatpush3.bf16.xpose.msk.msra.mxu0 %vm7331_vm2, %v6119_v33 }
 0xaeb   :  { %6127 = vmatprep.subr.msk.bf16.mxu0 %vm7331_vm2, %v6125_v56  ;;  %v6543_v2 = vpop.permute.xlu1 %6542 }
 0xaec   :  { %5702 = vmatmul.mubr.msk.f32.gmra.mrb[82].mxu0 %vm857_vm3, %v3059_v39  ;;  %v3591_v32 = vpop.permute.xlu0 %3590  ;;  %v6545_v21 = vunpack.i.h.bf16 %v6543_v2  ;;  %v6544_v44 = vunpack.i.l.bf16 %v6543_v2 }
 0xaed   :  { %5704 = vmatprep.mubr.msk.f32.mxu0 %vm857_vm3, %v3060_v18 }
 0xaee   :  { %v6161_v35 = vpack.c.bf16 %v6545_v21, %v6544_v44 }
 0xaef   :  { %v3589_v50 = vpop.permute.xlu1 %3588 }
 0xaf0   :  { %5705 = vmatmul.mubr.msk.f32.gmra.mrb[84].mxu0 %vm857_vm3, %v3061_v54  ;;  %v3748_v58 = vpop.permute.xlu0 %3747 }
 0xaf1   :  { %5749 = vmatprep.mubr.msk.f32.mxu0 %vm542_vm1, %v3579_v51 }
 0xaf2   :  { %6130 = vmatpush3.bf16.xpose.msk.msra.mxu0 %vm7331_vm2, %v6125_v56 }
 0xaf3   :  { %6133 = vmatprep.subr.msk.bf16.mxu0 %vm7331_vm2, %v6131_v63  ;;  %v3593_v25 = vpop.permute.xlu1 %3592 }
 0xaf4   :  { %v3752_v6 = vpop.permute.xlu0 %3751 }
 0xaf7   :  { %v3750_v28 = vpop.permute.xlu1 %3749 }
 0xaf8   :  { %v3756_v4 = vpop.permute.xlu0 %3755 }
 0xafa   :  { %6136 = vmatpush3.bf16.xpose.msk.msra.mxu0 %vm7331_vm2, %v6131_v63 }
 0xafb   :  { %6139 = vmatprep.subr.msk.bf16.mxu0 %vm7331_vm2, %v6137_v20  ;;  %v3754_v59 = vpop.permute.xlu1 %3753 }
 0xafc   :  { %v3760_v1 = vpop.permute.xlu0 %3759 }
 0xb02   :  { %6142 = vmatpush3.bf16.xpose.msk.msra.mxu0 %vm7331_vm2, %v6137_v20  ;;  %v3758_v20 = vpop.permute.xlu1 %3757 }
 0xb09   :  { %5750 = vmatmul.mubr.msk.f32.vlgmr.msra.gmra.mrb[86].mxu0 %vm542_vm1, %v3581_v26  ;;  %v3762_v26 = vpop.permute.xlu1 %3761 }
 0xb0a   :  { %5752 = vmatprep.mubr.msk.f32.mxu0 %vm542_vm1, %v3583_v29 }
 0xb0d   :  { %5753 = vmatmul.mubr.msk.f32.gmra.mrb[88].mxu0 %vm542_vm1, %v3585_v57 }
 0xb0e   :  { %5755 = vmatprep.mubr.msk.f32.mxu0 %vm542_vm1, %v3587_v49 }
 0xb11   :  { %5756 = vmatmul.mubr.msk.f32.gmra.mrb[90].mxu0 %vm542_vm1, %v3589_v50 }
 0xb12   :  { %5758 = vmatprep.mubr.msk.f32.mxu0 %vm542_vm1, %v3591_v32 }
 0xb15   :  { %5759 = vmatmul.mubr.msk.f32.gmra.mrb[92].mxu0 %vm542_vm1, %v3593_v25 }
 0xb58   :  { %v5669_v33 = vpop.f32.mrb[50].mxu1 }
 0xb59   :  { %v3176_v30 = vpop.f32.mrb[51].mxu1 }
 0xb5a   :  { %5709 = vmatprep.mubr.msk.f32.mxu1 %vm542_vm1, %v3176_v30 }
 0xb5b   :  { %5710 = vmatmul.mubr.msk.f32.vlgmr.msra.gmra.mrb[34].mxu1 %vm542_vm1, %v5669_v33 }
 0xb5c   :  { %6148 = vmatpush3.bf16.xpose.msk.msra.mxu1 %vm7331_vm2, %v8391_v47 }
 0xb5d   :  { %6151 = vmatprep.subr.msk.bf16.mxu1 %vm7331_vm2, %v6149_v10 }
 0xb60   :  { %v5672_v13 = vpop.f32.mrb[52].mxu1 }
 0xb61   :  { %v3186_v45 = vpop.f32.mrb[53].mxu1 }
 0xb62   :  { %5712 = vmatprep.mubr.msk.f32.mxu1 %vm542_vm1, %v3186_v45 }
 0xb63   :  { %5713 = vmatmul.mubr.msk.f32.gmra.mrb[36].mxu1 %vm542_vm1, %v5672_v13 }
 0xb64   :  { %6154 = vmatpush3.bf16.xpose.msk.msra.mxu1 %vm7331_vm2, %v6149_v10  ;;  %v5675_v11 = vpop.f32.mrb[54].mxu1 }
 0xb65   :  { %6157 = vmatprep.subr.msk.bf16.mxu1 %vm7331_vm2, %v6155_v24  ;;  %v3196_v47 = vpop.f32.mrb[55].mxu1 }
 0xb66   :  { %5715 = vmatprep.mubr.msk.f32.mxu1 %vm542_vm1, %v3196_v47 }
 0xb67   :  { %5716 = vmatmul.mubr.msk.f32.gmra.mrb[38].mxu1 %vm542_vm1, %v5675_v11 }
 0xb68   :  { %v5678_v38 = vpop.f32.mrb[56].mxu1 }
 0xb69   :  { %v3206_v56 = vpop.f32.mrb[57].mxu1 }
 0xb6a   :  { %5718 = vmatprep.mubr.msk.f32.mxu1 %vm542_vm1, %v3206_v56 }
 0xb6b   :  { %5719 = vmatmul.mubr.msk.f32.gmra.mrb[40].mxu1 %vm542_vm1, %v5678_v38 }
 0xb6c   :  { %6160 = vmatpush3.bf16.xpose.msk.msra.mxu1 %vm7331_vm2, %v6155_v24 }
 0xb6d   :  { %6163 = vmatprep.subr.msk.bf16.mxu1 %vm7331_vm2, %v6161_v35 }
 0xb74   :  { %6166 = vmatpush3.bf16.xpose.msk.msra.mxu1 %vm7331_vm2, %v6161_v35 }
 0xbb7   :  { %v5697_v34 = vpop.f32.mrb[78].mxu0 }
 0xbb8   :  { %v3329_v39 = vpop.f32.mrb[79].mxu0 }
 0xbb9   :  { %5721 = vmatprep.mubr.msk.f32.mxu1 %vm542_vm1, %v3329_v39 }
 0xbba   :  { %5722 = vmatmul.mubr.msk.f32.gmra.mrb[42].mxu1 %vm542_vm1, %v5697_v34 }
 0xbbb   :  { %v5700_v37 = vpop.f32.mrb[80].mxu0 }
 0xbbc   :  { %v3339_v18 = vpop.f32.mrb[81].mxu0 }
 0xbbd   :  { %5724 = vmatprep.mubr.msk.f32.mxu1 %vm542_vm1, %v3339_v18 }
 0xbbe   :  { %5725 = vmatmul.mubr.msk.f32.gmra.mrb[44].mxu1 %vm542_vm1, %v5700_v37 }
 0xbbf   :  { %v5703_v48 = vpop.f32.mrb[82].mxu0 }
 0xbc0   :  { %v3349_v54 = vpop.f32.mrb[83].mxu0 }
 0xbc1   :  { %5727 = vmatprep.mubr.msk.f32.mxu1 %vm542_vm1, %v3349_v54 }
 0xbc2   :  { %5728 = vmatmul.mubr.msk.f32.gmra.mrb[46].mxu1 %vm542_vm1, %v5703_v48 }
 0xbc3   :  { %v5706_v51 = vpop.f32.mrb[84].mxu0 }
 0xbc4   :  { %v3359_v63 = vpop.f32.mrb[85].mxu0 }
 0xbc5   :  { %5730 = vmatprep.mubr.msk.f32.mxu1 %vm542_vm1, %v3359_v63 }
 0xbc6   :  { %5731 = vmatmul.mubr.msk.f32.gmra.mrb[48].mxu1 %vm542_vm1, %v5706_v51 }
 0xbc7   :  { %5777 = vmatprep.mubr.msk.f32.mxu1 %vm542_vm1, %v3748_v58 }
 0xbca   :  { %5778 = vmatmul.mubr.msk.f32.vlgmr.msra.gmra.mrb[58].mxu1 %vm542_vm1, %v3750_v28 }
 0xbcb   :  { %5780 = vmatprep.mubr.msk.f32.mxu1 %vm542_vm1, %v3752_v6 }
 0xbce   :  { %5781 = vmatmul.mubr.msk.f32.gmra.mrb[60].mxu1 %vm542_vm1, %v3754_v59 }
 0xbcf   :  { %5783 = vmatprep.mubr.msk.f32.mxu1 %vm542_vm1, %v3756_v4 }
 0xbd2   :  { %5784 = vmatmul.mubr.msk.f32.gmra.mrb[62].mxu1 %vm542_vm1, %v3758_v20 }
 0xbd3   :  { %5786 = vmatprep.mubr.msk.f32.mxu1 %vm542_vm1, %v3760_v1 }
 0xbd6   :  { %5787 = vmatmul.mubr.msk.f32.gmra.mrb[64].mxu1 %vm542_vm1, %v3762_v26 }
 0xbdc   :  { %v5751_v29 = vpop.f32.mrb[86].mxu0 }
 0xbdd   :  { %v3708_v57 = vpop.f32.mrb[87].mxu0  ;;  %v3919_v2 = vsel %vm857_vm3, %v5751_v29, -inf }
 0xbde   :  { %3920 = vmax.xlane.f32.xlu1 %v3919_v2  ;;  %v3916_v49 = vsel %vm857_vm3, %v3708_v57, -inf }
 0xbdf   :  { %3917 = vmax.xlane.f32.xlu0 %v3916_v49 }
 0xbe0   :  { %v5754_v50 = vpop.f32.mrb[88].mxu0 }
 0xbe1   :  { %v3718_v32 = vpop.f32.mrb[89].mxu0  ;;  %v3925_v25 = vsel %vm857_vm3, %v5754_v50, -inf }
 0xbe2   :  { %v3922_v30 = vsel %vm857_vm3, %v3718_v32, -inf }
 0xbe3   :  { %3926 = vmax.xlane.f32.xlu0 %v3925_v25 }
 0xbe4   :  { %v5757_v7 = vpop.f32.mrb[90].mxu0 }
 0xbe5   :  { %v3728_v52 = vpop.f32.mrb[91].mxu0  ;;  %v3931_v33 = vsel %vm857_vm3, %v5757_v7, -inf }
 0xbe6   :  { %3932 = vmax.xlane.f32.xlu1 %v3931_v33  ;;  %v3928_v13 = vsel %vm857_vm3, %v3728_v52, -inf }
 0xbe7   :  { %3923 = vmax.xlane.f32.xlu0 %v3922_v30 }
 0xbe8   :  { %v5760_v10 = vpop.f32.mrb[92].mxu0 }
 0xbe9   :  { %v3738_v42 = vpop.f32.mrb[93].mxu0  ;;  %v3937_v43 = vsel %vm857_vm3, %v5760_v10, -inf }
 0xbea   :  { %3938 = vmax.xlane.f32.xlu1 %v3937_v43  ;;  %v3934_v45 = vsel %vm857_vm3, %v3738_v42, -inf }
 0xbeb   :  { %3929 = vmax.xlane.f32.xlu0 %v3928_v13 }
 0xbef   :  { %3935 = vmax.xlane.f32.xlu0 %v3934_v45 }
 0xc6b   :  { %v3921_v24 = vpop.xlane.xlu1 %3920 }
 0xc6c   :  { %v3965_v11 = vsub.f32 %v5751_v29, %v3921_v24  ;;  %v3918_v47 = vpop.xlane.xlu0 %3917 }
 0xc6d   :  { %v3964_v21 = vsub.f32 %v3708_v57, %v3918_v47 }
 0xc6e   :  { %v3982_v44 = vmul.f32 1.442695, %v3965_v11 }
 0xc6f   :  { %v3980_v38 = vmul.f32 1.442695, %v3964_v21 }
 0xc70   :  { %6810 = vpow2.f32 %v3982_v44  ;;  %v3927_v56 = vpop.xlane.xlu0 %3926 }
 0xc71   :  { %6812 = vpow2.f32 %v3980_v38  ;;  %v3967_v35 = vsub.f32 %v5754_v50, %v3927_v56 }
 0xc73   :  { %v3986_v34 = vmul.f32 1.442695, %v3967_v35  ;;  %v3933_v39 = vpop.xlane.xlu1 %3932 }
 0xc74   :  { %v3969_v37 = vsub.f32 %v5757_v7, %v3933_v39  ;;  %v3924_v18 = vpop.xlane.xlu0 %3923 }
 0xc75   :  { %6814 = vpow2.f32 %v3986_v34  ;;  %v3966_v48 = vsub.f32 %v3718_v32, %v3924_v18 }
 0xc76   :  { %v3990_v58 = vmul.f32 1.442695, %v3969_v37 }
 0xc77   :  { %v3984_v54 = vmul.f32 1.442695, %v3966_v48 }
 0xc78   :  { %6816 = vpow2.f32 %v3990_v58  ;;  %v3930_v28 = vpop.xlane.xlu0 %3929 }
 0xc79   :  { %6818 = vpow2.f32 %v3984_v54  ;;  %v3968_v51 = vsub.f32 %v3728_v52, %v3930_v28  ;;  %v3939_v52 = vpop.xlane.xlu1 %3938 }
 0xc7a   :  { %v8481_v63 = vpop.eup %6810  ;;  %v3971_v33 = vsub.f32 %v5760_v10, %v3939_v52 }
 0xc7b   :  { %v8483_v6 = vpop.eup %6812  ;;  %v3988_v59 = vmul.f32 1.442695, %v3968_v51  ;;  %v4015_v4 = vsel %vm857_vm3, %v8481_v63, 0.0 }
 0xc7c   :  { %4016 = vadd.xlane.f32.xlu1 %v4015_v4  ;;  %v4012_v20 = vsel %vm857_vm3, %v8483_v6, 0.0  ;;  %v3936_v25 = vpop.xlane.xlu0 %3935  ;;  %v3994_v11 = vmul.f32 1.442695, %v3971_v33 }
 0xc7d   :  { %6820 = vpow2.f32 %v3988_v59  ;;  %4013 = vadd.xlane.f32.xlu0 %v4012_v20  ;;  %v3970_v7 = vsub.f32 %v3738_v42, %v3936_v25 }
 0xc7f   :  { %v8489_v1 = vpop.eup %6814  ;;  %v3992_v30 = vmul.f32 1.442695, %v3970_v7 }
 0xc80   :  { %v4021_v26 = vsel %vm857_vm3, %v8489_v1, 0.0 }
 0xc81   :  { %4022 = vadd.xlane.f32.xlu1 %v4021_v26  ;;  %6822 = vpow2.f32 %v3992_v30 }
 0xc82   :  { %v8493_v29 = vpop.eup %6816  ;;  %6824 = vpow2.f32 %v3994_v11 }
 0xc83   :  { %v8495_v57 = vpop.eup %6818  ;;  %v4027_v2 = vsel %vm857_vm3, %v8493_v29, 0.0 }
 0xc84   :  { %v4018_v49 = vsel %vm857_vm3, %v8495_v57, 0.0 }
 0xc85   :  { %4028 = vadd.xlane.f32.xlu1 %v4027_v2  ;;  %4019 = vadd.xlane.f32.xlu0 %v4018_v49 }
 0xc87   :  { %v8501_v50 = vpop.eup %6820 }
 0xc88   :  { %v4024_v32 = vsel %vm857_vm3, %v8501_v50, 0.0 }
 0xc89   :  { %4025 = vadd.xlane.f32.xlu0 %v4024_v32 }
 0xc8b   :  { %v8514_v18 = vpop.eup %6822 }
 0xc8c   :  { %v4030_v58 = vsel %vm857_vm3, %v8514_v18, 0.0  ;;  %v8520_v54 = vpop.eup %6824 }
 0xc8d   :  { %v4033_v28 = vsel %vm857_vm3, %v8520_v54, 0.0 }
 0xc9d   :  { %v5779_v43 = vpop.f32.mrb[58].mxu1 }
 0xc9e   :  { %v3877_v13 = vpop.f32.mrb[59].mxu1  ;;  %v3943_v45 = vsel %vm857_vm3, %v5779_v43, -inf }
 0xc9f   :  { %3944 = vmax.xlane.f32.xlu1 %v3943_v45  ;;  %v3940_v24 = vsel %vm857_vm3, %v3877_v13, -inf }
 0xca0   :  { %3941 = vmax.xlane.f32.xlu0 %v3940_v24 }
 0xca1   :  { %v5782_v47 = vpop.f32.mrb[60].mxu1 }
 0xca2   :  { %v3887_v21 = vpop.f32.mrb[61].mxu1  ;;  %v3949_v44 = vsel %vm857_vm3, %v5782_v47, -inf }
 0xca3   :  { %3950 = vmax.xlane.f32.xlu1 %v3949_v44  ;;  %v3946_v42 = vsel %vm857_vm3, %v3887_v21, -inf }
 0xca4   :  { %3947 = vmax.xlane.f32.xlu0 %v3946_v42 }
 0xca5   :  { %v5785_v10 = vpop.f32.mrb[62].mxu1 }
 0xca6   :  { %v3897_v38 = vpop.f32.mrb[63].mxu1  ;;  %v3955_v56 = vsel %vm857_vm3, %v5785_v10, -inf }
 0xca7   :  { %3956 = vmax.xlane.f32.xlu1 %v3955_v56  ;;  %v3952_v35 = vsel %vm857_vm3, %v3897_v38, -inf }
 0xca8   :  { %3953 = vmax.xlane.f32.xlu0 %v3952_v35 }
 0xca9   :  { %v5788_v34 = vpop.f32.mrb[64].mxu1 }
 0xcaa   :  { %v8511_v39 = vpop.f32.mrb[65].mxu1  ;;  %v3961_v37 = vsel %vm857_vm3, %v5788_v34, -inf }
 0xcab   :  { %3962 = vmax.xlane.f32.xlu1 %v3961_v37  ;;  %v3958_v48 = vsel %vm857_vm3, %v8511_v39, -inf }
 0xcac   :  { %3959 = vmax.xlane.f32.xlu0 %v3958_v48 }
 0xcaf   :  { %4031 = vadd.xlane.f32.xlu1 %v4030_v58 }
 0xcb3   :  { %4034 = vadd.xlane.f32.xlu1 %v4033_v28 }
 0xcc2   :  { %6547 = vrot.lane.b32.xlu0 %v7217_v5, %s6900_s13 }
 0xcc4   :  { %6552 = vrot.lane.b32.xlu1 %v7231_v8, %s6900_s13 }
 0xcc6   :  { %6557 = vrot.lane.b32.xlu0 %v7241_v15, %s6900_s13 }
 0xcc8   :  { %6562 = vrot.lane.b32.xlu1 %v7251_v16, %s6900_s13 }
 0xcca   :  { %6567 = vrot.lane.b32.xlu0 %v7258_v0, %s6900_s13 }
 0xcce   :  { %6572 = vrot.lane.b32.xlu0 %v7272_v40, %s6900_s13 }
 0xd09   :  { %v8538_v8 = vpop.xlane.xlu1 %4016 }
 0xd0a   :  { %v4014_v51 = vpop.xlane.xlu0 %4013 }
 0xd0b   :  { %6826 = vrcp.f32 %v4014_v51 }
 0xd0e   :  { %v8540_v4 = vpop.xlane.xlu1 %4022 }
 0xd12   :  { %v8542_v15 = vpop.xlane.xlu0 %4019  ;;  %v8544_v16 = vpop.xlane.xlu1 %4028 }
 0xd15   :  { %v6827_v59 = vpop.eup %6826 }
 0xd16   :  { %v4076_v5 = vmul.f32 %v6827_v59, %v8483_v6  ;;  %v8546_v20 = vpop.xlane.xlu0 %4025 }
 0xd18   :  { %5805 = vmatprep.mubr.msk.f32.mxu0 %vm857_vm3, %v4076_v5 }
 0xd2c   :  { %v3945_v0 = vpop.xlane.xlu1 %3944 }
 0xd2d   :  { %v3973_v26 = vsub.f32 %v5779_v43, %v3945_v0  ;;  %v3942_v40 = vpop.xlane.xlu0 %3941 }
 0xd2e   :  { %v3972_v2 = vsub.f32 %v3877_v13, %v3942_v40 }
 0xd2f   :  { %v3998_v49 = vmul.f32 1.442695, %v3973_v26 }
 0xd30   :  { %v3996_v32 = vmul.f32 1.442695, %v3972_v2  ;;  %v3951_v25 = vpop.xlane.xlu1 %3950 }
 0xd31   :  { %6828 = vpow2.f32 %v3998_v49  ;;  %v3975_v6 = vsub.f32 %v5782_v47, %v3951_v25  ;;  %v3948_v7 = vpop.xlane.xlu0 %3947 }
 0xd32   :  { %6830 = vpow2.f32 %v3996_v32  ;;  %v3974_v52 = vsub.f32 %v3887_v21, %v3948_v7 }
 0xd33   :  { %v4002_v33 = vmul.f32 1.442695, %v3975_v6 }
 0xd34   :  { %v4000_v30 = vmul.f32 1.442695, %v3974_v52  ;;  %v3957_v45 = vpop.xlane.xlu1 %3956 }
 0xd35   :  { %6832 = vpow2.f32 %v4002_v33  ;;  %v3977_v24 = vsub.f32 %v5785_v10, %v3957_v45  ;;  %v3954_v11 = vpop.xlane.xlu0 %3953 }
 0xd36   :  { %v3976_v44 = vsub.f32 %v3897_v38, %v3954_v11  ;;  %6834 = vpow2.f32 %v4000_v30 }
 0xd37   :  { %v4006_v42 = vmul.f32 1.442695, %v3977_v24 }
 0xd38   :  { %v4004_v43 = vmul.f32 1.442695, %v3976_v44  ;;  %v3963_v56 = vpop.xlane.xlu1 %3962 }
 0xd39   :  { %v3979_v13 = vsub.f32 %v5788_v34, %v3963_v56  ;;  %v3960_v35 = vpop.xlane.xlu0 %3959 }
 0xd3a   :  { %6836 = vpow2.f32 %v4004_v43  ;;  %v3978_v21 = vsub.f32 %v8511_v39, %v3960_v35 }
 0xd3b   :  { %v8548_v37 = vpop.eup %6828  ;;  %6838 = vpow2.f32 %v4006_v42  ;;  %v4010_v47 = vmul.f32 1.442695, %v3979_v13 }
 0xd3c   :  { %v8551_v48 = vpop.eup %6830  ;;  %v4032_v58 = vpop.xlane.xlu1 %4031  ;;  %v4039_v10 = vsel %vm857_vm3, %v8548_v37, 0.0  ;;  %v4008_v5 = vmul.f32 1.442695, %v3978_v21 }
 0xd3d   :  { %4040 = vadd.xlane.f32.xlu1 %v4039_v10  ;;  %v6548_v38 = vpop.permute.xlu0 %6547  ;;  %v4036_v28 = vsel %vm857_vm3, %v8551_v48, 0.0  ;;  %6840 = vpow2.f32 %v4010_v47 }
 0xd3e   :  { %v6550_v34 = vunpack.i.h.bf16 %v6548_v38  ;;  %v6549_v51 = vunpack.i.l.bf16 %v6548_v38  ;;  %4037 = vadd.xlane.f32.xlu0 %v4036_v28  ;;  %6842 = vpow2.f32 %v4008_v5 }
 0xd3f   :  { %v8557_v59 = vpop.eup %6832  ;;  %6844 = vrcp.f32 %v8538_v8 }
 0xd40   :  { %v6167_v0 = vpack.c.bf16 %v6550_v34, %v6549_v51  ;;  %v4035_v39 = vpop.xlane.xlu1 %4034  ;;  %v4045_v26 = vsel %vm857_vm3, %v8557_v59, 0.0  ;;  %v8561_v40 = vpop.eup %6834  ;;  %6846 = vrcp.f32 %v8542_v15 }
 0xd41   :  { %4046 = vadd.xlane.f32.xlu1 %v4045_v26  ;;  %v6558_v2 = vpop.permute.xlu0 %6557  ;;  %v4042_v6 = vsel %vm857_vm3, %v8561_v40, 0.0  ;;  %6848 = vrcp.f32 %v8540_v4 }
 0xd42   :  { %6168 = vmatprep.subr.bf16.mxu0 %v6167_v0  ;;  %v6560_v32 = vunpack.i.h.bf16 %v6558_v2  ;;  %v6559_v52 = vunpack.i.l.bf16 %v6558_v2  ;;  %6850 = vrcp.f32 %v8546_v20 }
 0xd43   :  { %6170 = vmatpush3.bf16.msra.mxu0 %v6167_v0  ;;  %6852 = vrcp.f32 %v8544_v16 }
 0xd44   :  { %v8563_v49 = vpop.eup %6836  ;;  %v6553_v25 = vpop.permute.xlu1 %6552  ;;  %v6175_v47 = vpack.c.bf16 %v6560_v32, %v6559_v52  ;;  %6854 = vrcp.f32 %v4032_v58 }
 0xd45   :  { %v8567_v7 = vpop.eup %6838  ;;  %v6555_v33 = vunpack.i.h.bf16 %v6553_v25  ;;  %v6554_v30 = vunpack.i.l.bf16 %v6553_v25  ;;  %4043 = vadd.xlane.f32.xlu1 %v4042_v6  ;;  %v6568_v45 = vpop.permute.xlu0 %6567  ;;  %v4048_v24 = vsel %vm857_vm3, %v8563_v49, 0.0  ;;  %6856 = vrcp.f32 %v4035_v39 }
 0xd46   :  { %v6570_v11 = vunpack.i.h.bf16 %v6568_v45  ;;  %v6569_v44 = vunpack.i.l.bf16 %v6568_v45  ;;  %4049 = vadd.xlane.f32.xlu0 %v4048_v24  ;;  %v4051_v13 = vsel %vm857_vm3, %v8567_v7, 0.0 }
 0xd47   :  { %v6171_v42 = vpack.c.bf16 %v6555_v33, %v6554_v30  ;;  %v8575_v35 = vpop.eup %6840 }
 0xd48   :  { %v6183_v43 = vpack.c.bf16 %v6570_v11, %v6569_v44  ;;  %v6563_v56 = vpop.permute.xlu1 %6562  ;;  %v4057_v34 = vsel %vm857_vm3, %v8575_v35, 0.0  ;;  %v8581_v51 = vpop.eup %6842 }
 0xd49   :  { %v6565_v21 = vunpack.i.h.bf16 %v6563_v56  ;;  %v6564_v10 = vunpack.i.l.bf16 %v6563_v56  ;;  %4052 = vadd.xlane.f32.xlu1 %v4051_v13  ;;  %v6573_v38 = vpop.permute.xlu0 %6572  ;;  %6172 = vmatprep.subr.bf16.mxu0 %v6171_v42  ;;  %v6845_v4 = vpop.eup %6844  ;;  %v4054_v20 = vsel %vm857_vm3, %v8581_v51, 0.0 }
 0xd4a   :  { %v6575_v8 = vunpack.i.h.bf16 %v6573_v38  ;;  %v6574_v28 = vunpack.i.l.bf16 %v6573_v38  ;;  %6174 = vmatpush3.bf16.msra.mxu0 %v6171_v42  ;;  %6184 = vmatprep.subr.bf16.mxu1 %v6183_v43  ;;  %v6847_v0 = vpop.eup %6846  ;;  %v4077_v26 = vmul.f32 %v6845_v4, %v8481_v63 }
 0xd4b   :  { %6176 = vmatprep.subr.bf16.mxu0 %v6175_v47  ;;  %6186 = vmatpush3.bf16.msra.mxu1 %v6183_v43  ;;  %v6179_v5 = vpack.c.bf16 %v6565_v21, %v6564_v10  ;;  %v6849_v2 = vpop.eup %6848  ;;  %v4078_v32 = vmul.f32 %v6847_v0, %v8495_v57  ;;  %v4398_v10 = vld [vmem:[%s8793_s5 + $0x18] sm:$0xff] }
 0xd4c   :  { %v6187_v15 = vpack.c.bf16 %v6575_v8, %v6574_v28  ;;  %v6851_v25 = vpop.eup %6850  ;;  %v4079_v16 = vmul.f32 %v6849_v2, %v8489_v1 }
 0xd4d   :  { %4058 = vadd.xlane.f32.xlu1 %v4057_v34  ;;  %v6853_v58 = vpop.eup %6852  ;;  %v4080_v6 = vmul.f32 %v6851_v25, %v8501_v50 }
 0xd4e   :  { %6178 = vmatpush3.bf16.msra.mxu0 %v6175_v47  ;;  %6188 = vmatprep.subr.bf16.mxu1 %v6187_v15  ;;  %v6855_v52 = vpop.eup %6854  ;;  %v4081_v63 = vmul.f32 %v6853_v58, %v8493_v29 }
 0xd4f   :  { %6180 = vmatprep.subr.bf16.mxu0 %v6179_v5  ;;  %6190 = vmatpush3.bf16.msra.mxu1 %v6187_v15  ;;  %v6857_v39 = vpop.eup %6856  ;;  %v4082_v57 = vmul.f32 %v6855_v52, %v8514_v18 }
 0xd50   :  { %v4083_v1 = vmul.f32 %v6857_v39, %v8520_v54 }
 0xd51   :  { %4055 = vadd.xlane.f32.xlu1 %v4054_v20 }
 0xd52   :  { %6182 = vmatpush3.bf16.msra.mxu0 %v6179_v5 }
 0xd55   :  { %5806 = vmatmul.mubr.msk.f32.vlgmr.msra.gmra.mrb[94].mxu0 %vm857_vm3, %v4077_v26 }
 0xd56   :  { %5808 = vmatprep.mubr.msk.f32.mxu0 %vm857_vm3, %v4078_v32 }
 0xd59   :  { %5809 = vmatmul.mubr.msk.f32.gmra.mrb[96].mxu0 %vm857_vm3, %v4079_v16 }
 0xd5a   :  { %5811 = vmatprep.mubr.msk.f32.mxu0 %vm857_vm3, %v4080_v6 }
 0xd5c   :  { %6582 = vrot.lane.b32.xlu0 %v7292_v36, %s6900_s13 }
 0xd5d   :  { %5812 = vmatmul.mubr.msk.f32.gmra.mrb[98].mxu0 %vm857_vm3, %v4081_v63 }
 0xd5e   :  { %5814 = vmatprep.mubr.msk.f32.mxu0 %vm857_vm3, %v4082_v57 }
 0xd61   :  { %5815 = vmatmul.mubr.msk.f32.gmra.mrb[100].mxu0 %vm857_vm3, %v4083_v1 }
 0xd62   :  { %6577 = vrot.lane.b32.xlu1 %v7282_v46, %s6900_s13 }
 0xdca   :  { %v4041_v50 = vpop.xlane.xlu1 %4040 }
 0xdcb   :  { %v4038_v33 = vpop.xlane.xlu0 %4037 }
 0xdcc   :  { %6858 = vrcp.f32 %v4038_v33 }
 0xdcd   :  { %6860 = vrcp.f32 %v4041_v50 }
 0xdce   :  { %v4047_v29 = vpop.xlane.xlu1 %4046 }
 0xdd2   :  { %v4044_v30 = vpop.xlane.xlu1 %4043 }
 0xdd3   :  { %v4050_v24 = vpop.xlane.xlu0 %4049  ;;  %6862 = vrcp.f32 %v4044_v30 }
 0xdd4   :  { %6864 = vrcp.f32 %v4047_v29  ;;  %v8642_v29 = vld [vmem:[%s8794_s6] ss:$0 sm:$0xff] }
 0xdd5   :  { %6866 = vrcp.f32 %v4050_v24 }
 0xdd6   :  { %v6859_v45 = vpop.eup %6858  ;;  %v4053_v36 = vpop.xlane.xlu1 %4052 }
 0xdd7   :  { %v4084_v18 = vmul.f32 %v6859_v45, %v8551_v48  ;;  %v6583_v54 = vpop.permute.xlu0 %6582  ;;  %6868 = vrcp.f32 %v4053_v36  ;;  %v6861_v48 = vpop.eup %6860 }
 0xdd8   :  { %v6585_v43 = vunpack.i.h.bf16 %v6583_v54  ;;  %v6584_v46 = vunpack.i.l.bf16 %v6583_v54  ;;  %v4085_v8 = vmul.f32 %v6861_v48, %v8548_v37 }
 0xdd9   :  { %5833 = vmatprep.mubr.msk.f32.mxu1 %vm857_vm3, %v4084_v18 }
 0xdda   :  { %v4059_v11 = vpop.xlane.xlu1 %4058  ;;  %v6195_v21 = vpack.c.bf16 %v6585_v43, %v6584_v46 }
 0xddd   :  { %v6863_v38 = vpop.eup %6862 }
 0xdde   :  { %v4056_v44 = vpop.xlane.xlu1 %4055  ;;  %v6865_v28 = vpop.eup %6864  ;;  %v4086_v15 = vmul.f32 %v6863_v38, %v8561_v40 }
 0xddf   :  { %6870 = vrcp.f32 %v4056_v44  ;;  %v6867_v34 = vpop.eup %6866  ;;  %v4087_v5 = vmul.f32 %v6865_v28, %v8557_v59  ;;  %v6874_v44 = vld [vmem:[%s8788_s0 + $0x8] sm:$0xff] }
 0xde0   :  { %6872 = vrcp.f32 %v4059_v11  ;;  %v4088_v20 = vmul.f32 %v6867_v34, %v8563_v49  ;;  %v6878_v34 = vld [vmem:[%s8788_s0 + $0x28] sm:$0xff] }
 0xde1   :  { %v6869_v4 = vpop.eup %6868 }
 0xde2   :  { %v6578_v42 = vpop.permute.xlu1 %6577  ;;  %v4089_v37 = vmul.f32 %v6869_v4, %v8567_v7 }
 0xde3   :  { %v6580_v56 = vunpack.i.h.bf16 %v6578_v42  ;;  %v6579_v13 = vunpack.i.l.bf16 %v6578_v42 }
 0xde5   :  { %v6191_v47 = vpack.c.bf16 %v6580_v56, %v6579_v13 }
 0xde7   :  { %6192 = vmatprep.subr.bf16.mxu1 %v6191_v47 }
 0xde8   :  { %6194 = vmatpush3.bf16.msra.mxu1 %v6191_v47  ;;  %v6876_v47 = vld [vmem:[%s8788_s0 + $0x18] sm:$0xff] }
 0xde9   :  { %6196 = vmatprep.subr.bf16.mxu1 %v6195_v21  ;;  %v6871_v0 = vpop.eup %6870 }
 0xdea   :  { %v6873_v26 = vpop.eup %6872  ;;  %v4090_v40 = vmul.f32 %v6871_v0, %v8581_v51 }
 0xdeb   :  { %v4091_v2 = vmul.f32 %v6873_v26, %v8575_v35 }
 0xdec   :  { %6198 = vmatpush3.bf16.msra.mxu1 %v6195_v21 }
 0xded   :  { %5845 = vmatprep.subr.mxu1 %v4398_v10 }
 0xdef   :  { %5834 = vmatmul.mubr.msk.f32.vlgmr.msra.gmra.mrb[66].mxu1 %vm857_vm3, %v4085_v8 }
 0xdf0   :  { %5836 = vmatprep.mubr.msk.f32.mxu1 %vm857_vm3, %v4086_v15  ;;  %5846 = vmatpush3.msra.mxu1 %v4398_v10  ;;  %v6877_v10 = vld [vmem:[%s8788_s0 + $0x10] sm:$0xff] }
 0xdf3   :  { %5837 = vmatmul.mubr.msk.f32.gmra.mrb[68].mxu1 %vm857_vm3, %v4087_v5 }
 0xdf4   :  { %5839 = vmatprep.mubr.msk.f32.mxu1 %vm857_vm3, %v4088_v20  ;;  %v6879_v20 = vld [vmem:[%s8788_s0 + $0x20] sm:$0xff] }
 0xdf7   :  { %5840 = vmatmul.mubr.msk.f32.gmra.mrb[70].mxu1 %vm857_vm3, %v4089_v37 }
 0xdf8   :  { %5842 = vmatprep.mubr.msk.f32.mxu1 %vm857_vm3, %v4090_v40  ;;  %v6880_v40 = vld [vmem:[%s8788_s0 + $0x38] sm:$0xff] }
 0xdfb   :  { %5843 = vmatmul.mubr.msk.f32.gmra.mrb[72].mxu1 %vm857_vm3, %v4091_v2 }
 0xe28   :  { %v5807_v59 = vpop.f32.mrb[94].mxu0 }
 0xe29   :  { %v4206_v49 = vpop.f32.mrb[95].mxu0 }
 0xe2a   :  { %5847 = vmatprep.mubr.msk.f32.mxu1 %vm542_vm1, %v4206_v49 }
 0xe2b   :  { %5848 = vmatmul.mubr.msk.f32.vlgmr.msra.gmra.mrb[34].mxu1 %vm542_vm1, %v5807_v59 }
 0xe2c   :  { %v5810_v32 = vpop.f32.mrb[96].mxu0 }
 0xe2d   :  { %v4216_v25 = vpop.f32.mrb[97].mxu0 }
 0xe2e   :  { %5850 = vmatprep.mubr.msk.f32.mxu1 %vm542_vm1, %v4216_v25 }
 0xe2f   :  { %5851 = vmatmul.mubr.msk.f32.gmra.mrb[36].mxu1 %vm542_vm1, %v5810_v32 }
 0xe30   :  { %v5813_v7 = vpop.f32.mrb[98].mxu0 }
 0xe31   :  { %v4226_v51 = vpop.f32.mrb[99].mxu0 }
 0xe32   :  { %5853 = vmatprep.mubr.msk.f32.mxu1 %vm542_vm1, %v4226_v51 }
 0xe33   :  { %5854 = vmatmul.mubr.msk.f32.gmra.mrb[38].mxu1 %vm542_vm1, %v5813_v7 }
 0xe34   :  { %v5816_v35 = vpop.f32.mrb[100].mxu0 }
 0xe35   :  { %v4236_v16 = vpop.f32.mrb[101].mxu0 }
 0xe36   :  { %5856 = vmatprep.mubr.msk.f32.mxu1 %vm542_vm1, %v4236_v16 }
 0xe37   :  { %5857 = vmatmul.mubr.msk.f32.gmra.mrb[40].mxu1 %vm542_vm1, %v5816_v35 }
 0xec2   :  { %v5835_v58 = vpop.f32.mrb[66].mxu1 }
 0xec3   :  { %v4359_v6 = vpop.f32.mrb[67].mxu1 }
 0xec4   :  { %5859 = vmatprep.mubr.msk.f32.mxu1 %vm542_vm1, %v4359_v6 }
 0xec5   :  { %5860 = vmatmul.mubr.msk.f32.gmra.mrb[42].mxu1 %vm542_vm1, %v5835_v58  ;;  %v6882_v58 = vld [vmem:[%s8788_s0 + $0x48] sm:$0xff] }
 0xec6   :  { %v5838_v52 = vpop.f32.mrb[68].mxu1 }
 0xec7   :  { %v4369_v63 = vpop.f32.mrb[69].mxu1 }
 0xec8   :  { %5862 = vmatprep.mubr.msk.f32.mxu1 %vm542_vm1, %v4369_v63 }
 0xec9   :  { %5863 = vmatmul.mubr.msk.f32.gmra.mrb[44].mxu1 %vm542_vm1, %v5838_v52 }
 0xeca   :  { %v5841_v39 = vpop.f32.mrb[70].mxu1 }
 0xecb   :  { %v4379_v57 = vpop.f32.mrb[71].mxu1 }
 0xecc   :  { %5865 = vmatprep.mubr.msk.f32.mxu1 %vm542_vm1, %v4379_v57 }
 0xecd   :  { %5866 = vmatmul.mubr.msk.f32.gmra.mrb[46].mxu1 %vm542_vm1, %v5841_v39 }
 0xece   :  { %v5844_v1 = vpop.f32.mrb[72].mxu1 }
 0xecf   :  { %v4389_v50 = vpop.f32.mrb[73].mxu1 }
 0xed0   :  { %5868 = vmatprep.mubr.msk.f32.mxu1 %vm542_vm1, %v4389_v50  ;;  %v6884_v50 = vld [vmem:[%s8788_s0 + $0x58] sm:$0xff] }
 0xed1   :  { %5869 = vmatmul.mubr.msk.f32.gmra.mrb[48].mxu1 %vm542_vm1, %v5844_v1 }
 0xefe   :  { %v5849_v33 = vpop.f32.mrb[34].mxu1 }
 0xeff   :  { %v6207_v30 = vadd.f32 %v5849_v33, %v8160_v31  ;;  %v4513_v45 = vpop.f32.mrb[35].mxu1  ;;  %v6875_v31 = vld [vmem:[%s8788_s0] sm:$0xff] }
 0xf00   :  { %v6208_v36 = vadd.f32 %v4513_v45, %v8162_v60  ;;  %v6885_v45 = vld [vmem:[%s8788_s0 + $0x50] sm:$0xff] }
 0xf01   :  { %v4616_v18 = vadd.f32 %v6207_v30, %v8642_v29 }
 0xf02   :  { %v4615_v24 = vadd.f32 %v6208_v36, %v8642_v29  ;;  %v5852_v11 = vpop.f32.mrb[36].mxu1 }
 0xf03   :  { %v4632_v54 = vadd.f32 %v6874_v44, %v4616_v18  ;;  %v6209_v42 = vadd.f32 %v5852_v11, %v8164_v9  ;;  %v4523_v43 = vpop.f32.mrb[37].mxu1  ;;  %v6886_v44 = vld [vmem:[%s8788_s0 + $0x68] sm:$0xff] }
 0xf04   :  { %v4631_v46 = vadd.f32 %v6875_v31, %v4615_v24  ;;  %v6210_v60 = vadd.f32 %v4523_v43, %v8166_v55  ;;  %v6887_v43 = vld [vmem:[%s8788_s0 + $0x60] sm:$0xff] }
 0xf05   :  { %4648 = vst.msk [vmem:[%s8795_s7 + $0x8] sm:$0xff] %vm42_vm0, %v4632_v54  ;;  %v4618_v56 = vadd.f32 %v6209_v42, %v8642_v29 }
 0xf06   :  { %4647 = vst.msk [vmem:[%s8795_s7] sm:$0xff] %vm42_vm0, %v4631_v46  ;;  %v4617_v9 = vadd.f32 %v6210_v60, %v8642_v29  ;;  %v5855_v13 = vpop.f32.mrb[38].mxu1 }
 0xf07   :  { %v4634_v55 = vadd.f32 %v6876_v47, %v4618_v56  ;;  %v6211_v21 = vadd.f32 %v5855_v13, %v8168_v62  ;;  %v4533_v48 = vpop.f32.mrb[39].mxu1  ;;  %v6888_v56 = vld [vmem:[%s8788_s0 + $0x78] sm:$0xff] }
 0xf08   :  { %v4633_v38 = vadd.f32 %v6877_v10, %v4617_v9  ;;  %v6212_v8 = vadd.f32 %v4533_v48, %v8170_v17 }
 0xf09   :  { %4650 = vst.msk [vmem:[%s8795_s7 + $0x18] sm:$0xff] %vm42_vm0, %v4634_v55  ;;  %v4620_v28 = vadd.f32 %v6211_v21, %v8642_v29 }
 0xf0a   :  { %4649 = vst.msk [vmem:[%s8795_s7 + $0x10] sm:$0xff] %vm42_vm0, %v4633_v38  ;;  %v4619_v62 = vadd.f32 %v6212_v8, %v8642_v29  ;;  %v5858_v15 = vpop.f32.mrb[40].mxu1 }
 0xf0b   :  { %v4636_v17 = vadd.f32 %v6878_v34, %v4620_v28  ;;  %v6213_v5 = vadd.f32 %v5858_v15, %v8172_v19  ;;  %v4543_v4 = vpop.f32.mrb[41].mxu1 }
 0xf0c   :  { %v4635_v0 = vadd.f32 %v6879_v20, %v4619_v62  ;;  %v6214_v37 = vadd.f32 %v4543_v4, %v8174_v22  ;;  %v6881_v22 = vld [vmem:[%s8788_s0 + $0x30] sm:$0xff] }
 0xf0d   :  { %4652 = vst.msk [vmem:[%s8795_s7 + $0x28] sm:$0xff] %vm42_vm0, %v4636_v17  ;;  %v4622_v26 = vadd.f32 %v6213_v5, %v8642_v29 }
 0xf0e   :  { %4651 = vst.msk [vmem:[%s8795_s7 + $0x20] sm:$0xff] %vm42_vm0, %v4635_v0  ;;  %v4621_v19 = vadd.f32 %v6214_v37, %v8642_v29 }
 0xf0f   :  { %v4638_v2 = vadd.f32 %v6880_v40, %v4622_v26 }
 0xf10   :  { %v4637_v59 = vadd.f32 %v6881_v22, %v4621_v19 }
 0xf11   :  { %4654 = vst.msk [vmem:[%s8795_s7 + $0x38] sm:$0xff] %vm42_vm0, %v4638_v2 }
 0xf12   :  { %4653 = vst.msk [vmem:[%s8795_s7 + $0x30] sm:$0xff] %vm42_vm0, %v4637_v59 }
 0xf98   :  { %v5861_v49 = vpop.f32.mrb[42].mxu1 }
 0xf99   :  { %v6215_v32 = vadd.f32 %v5861_v49, %v8176_v27  ;;  %v4553_v25 = vpop.f32.mrb[43].mxu1  ;;  %v6883_v27 = vld [vmem:[%s8788_s0 + $0x40] sm:$0xff] }
 0xf9a   :  { %v6216_v7 = vadd.f32 %v4553_v25, %v8178_v61 }
 0xf9b   :  { %v4624_v51 = vadd.f32 %v6215_v32, %v8642_v29 }
 0xf9c   :  { %v4623_v35 = vadd.f32 %v6216_v7, %v8642_v29  ;;  %v5864_v16 = vpop.f32.mrb[44].mxu1 }
 0xf9d   :  { %v4640_v6 = vadd.f32 %v6882_v58, %v4624_v51  ;;  %v6217_v52 = vadd.f32 %v5864_v16, %v8180_v12  ;;  %v4563_v63 = vpop.f32.mrb[45].mxu1 }
 0xf9e   :  { %v4639_v39 = vadd.f32 %v6883_v27, %v4623_v35  ;;  %v6218_v61 = vadd.f32 %v4563_v63, %v8182_v53 }
 0xf9f   :  { %4656 = vst.msk [vmem:[%s8795_s7 + $0x48] sm:$0xff] %vm42_vm0, %v4640_v6  ;;  %v4626_v57 = vadd.f32 %v6217_v52, %v8642_v29 }
 0xfa0   :  { %4655 = vst.msk [vmem:[%s8795_s7 + $0x40] sm:$0xff] %vm42_vm0, %v4639_v39  ;;  %v4625_v12 = vadd.f32 %v6218_v61, %v8642_v29  ;;  %v5867_v1 = vpop.f32.mrb[46].mxu1 }
 0xfa1   :  { %v4642_v53 = vadd.f32 %v6884_v50, %v4626_v57  ;;  %v6219_v33 = vadd.f32 %v5867_v1, %v8184_v14  ;;  %v4573_v30 = vpop.f32.mrb[47].mxu1 }
 0xfa2   :  { %v4641_v36 = vadd.f32 %v6885_v45, %v4625_v12  ;;  %v6220_v18 = vadd.f32 %v4573_v30, %v8186_v41 }
 0xfa3   :  { %4658 = vst.msk [vmem:[%s8795_s7 + $0x58] sm:$0xff] %vm42_vm0, %v4642_v53  ;;  %v4628_v24 = vadd.f32 %v6219_v33, %v8642_v29 }
 0xfa4   :  { %4657 = vst.msk [vmem:[%s8795_s7 + $0x50] sm:$0xff] %vm42_vm0, %v4641_v36  ;;  %v4627_v14 = vadd.f32 %v6220_v18, %v8642_v29  ;;  %v5870_v11 = vpop.f32.mrb[48].mxu1 }
 0xfa5   :  { %v4644_v41 = vadd.f32 %v6886_v44, %v4628_v24  ;;  %v6221_v54 = vadd.f32 %v5870_v11, %v8188_v3  ;;  %v4583_v42 = vpop.f32.mrb[49].mxu1 }
 0xfa6   :  { %v4643_v31 = vadd.f32 %v6887_v43, %v4627_v14  ;;  %v6222_v46 = vadd.f32 %v4583_v42, %v8190_v23  ;;  %v6889_v23 = vld [vmem:[%s8788_s0 + $0x70] sm:$0xff] }
 0xfa7   :  { %4660 = vst.msk [vmem:[%s8795_s7 + $0x68] sm:$0xff] %vm42_vm0, %v4644_v41  ;;  %v4630_v60 = vadd.f32 %v6221_v54, %v8642_v29 }
 0xfa8   :  { %4659 = vst.msk [vmem:[%s8795_s7 + $0x60] sm:$0xff] %vm42_vm0, %v4643_v31  ;;  %v4629_v3 = vadd.f32 %v6222_v46, %v8642_v29 }
 0xfa9   :  { %v4646_v9 = vadd.f32 %v6888_v56, %v4630_v60 }
 0xfaa   :  { %v4645_v13 = vadd.f32 %v6889_v23, %v4629_v3 }
 0xfab   :  { %4662 = vst.msk [vmem:[%s8795_s7 + $0x78] sm:$0xff] %vm42_vm0, %v4646_v9 }
 0xfac   :  { %4661 = vst.msk [vmem:[%s8795_s7 + $0x70] sm:$0xff] %vm42_vm0, %v4645_v13 }

</bundles_post_ra>
